<compile_context>
chip_gen: v5e
topology: v5e:2x2
jax: 0.10.0
libtpu: 0.0.40
codegen_flags: <defaults>
</compile_context>

<pallas_src>
import functools
import math

import jax
import jax.numpy as jnp
from jax.experimental import pallas as pl
from jax.experimental.pallas import tpu as pltpu


def _round_up(v, m):
    return ((v + m - 1) // m) * m


def _chip_profile():
    """Returns (vmem_capacity_bytes_per_core, tensorcores_per_chip)."""
    kind = ""
    try:
        kind = jax.devices()[0].device_kind.lower()
    except Exception:
        pass
    if "v5" in kind or "v6" in kind:       # v5e / v5p / v6e: 128 MiB VMEM per core
        return 128 * 1024 * 1024, 1
    if "7" in kind:                        # v7x: 64 MiB VMEM per TC, 2 TCs/chip
        return 64 * 1024 * 1024, 2
    try:                                   # unknown name: ask the runtime
        cap = int(getattr(pltpu.get_tpu_info(), "vmem_capacity_bytes", 0) or 0)
        if cap >= 100 * 1024 * 1024:
            return cap, 1
    except Exception:
        pass
    return 64 * 1024 * 1024, 2             # conservative default (v7x-like)


def _biasfree_ln_kernel(x_ref, w_ref, o_ref):
    # Plain path: x_ref (block_rows, C), w_ref (1, C), o_ref (block_rows, C).
    xf = x_ref[...].astype(jnp.float32)
    mu = jnp.mean(xf, axis=-1, keepdims=True)
    var = jnp.mean(jnp.square(xf - mu), axis=-1, keepdims=True)  # biased var
    inv = jax.lax.rsqrt(var + 1e-5)
    w = w_ref[...].astype(jnp.float32)                           # broadcasts
    # Re-read x_ref so the f32 cast above need not stay live across the
    # reduction (fewer full-block f32 temporaries -> bigger blocks fit VMEM).
    o_ref[...] = (x_ref[...].astype(jnp.float32) * inv * w).astype(o_ref.dtype)


def _biasfree_ln_grouped_kernel(x_ref, w_ref, o_ref, *, g, C):
    # Lane-dense path: each kernel row packs g original rows -> width W = g*C
    # (a multiple of 128).  Per-row mean/var are segmented reductions over the
    # lane axis, done with tiny one-hot projections on the (idle) MXU.
    W = g * C
    xf = x_ref[...].astype(jnp.float32)                          # (bg, W)

    lane_w = jax.lax.broadcasted_iota(jnp.int32, (W, g), 0)
    seg_w = jax.lax.broadcasted_iota(jnp.int32, (W, g), 1)
    proj = jnp.logical_and(lane_w >= seg_w * C,
                           lane_w < (seg_w + 1) * C).astype(jnp.float32)   # (W, g)
    lane_t = jax.lax.broadcasted_iota(jnp.int32, (g, W), 1)
    seg_t = jax.lax.broadcasted_iota(jnp.int32, (g, W), 0)
    projT = jnp.logical_and(lane_t >= seg_t * C,
                            lane_t < (seg_t + 1) * C).astype(jnp.float32)  # (g, W)

    hp = jax.lax.Precision.HIGHEST
    inv_c = jnp.float32(1.0 / C)
    s1 = jnp.dot(xf, proj, preferred_element_type=jnp.float32, precision=hp)
    mu = s1 * inv_c                                              # (bg, g)
    mu_full = jnp.dot(mu, projT, preferred_element_type=jnp.float32, precision=hp)
    d = xf - mu_full
    s2 = jnp.dot(d * d, proj, preferred_element_type=jnp.float32, precision=hp)
    inv = jax.lax.rsqrt(s2 * inv_c + 1e-5)                       # (bg, g)
    inv_full = jnp.dot(inv, projT, preferred_element_type=jnp.float32, precision=hp)
    w = w_ref[...].astype(jnp.float32)                           # (1, W)
    o_ref[...] = (xf * inv_full * w).astype(o_ref.dtype)


def biasfree_layernorm(x, weight, *, block_rows=None):
    """BiasFree LayerNorm over the last axis.  x: (..., C), weight: (C,)."""
    orig_shape = x.shape
    C = orig_shape[-1]
    assert weight.shape == (C,), f"weight shape {weight.shape} != ({C},)"

    x2d = x.reshape(-1, C)
    R = x2d.shape[0]
    itemsize = jnp.dtype(x.dtype).itemsize
    sublane = {4: 8, 2: 16, 1: 32}.get(itemsize, 8)   # sublane packing per dtype

    # --- lane density: fold g rows per kernel row when C is not 128-aligned ---
    g = 1
    if C % 128 != 0:
        g_cand = 128 // math.gcd(C, 128)              # smallest g with (g*C)%128==0
        if g_cand > 1 and R % g_cand == 0:
            g = g_cand
    if g > 1:
        rows, width = R // g, g * C
        x_in = x2d.reshape(rows, width)               # free row-major reshape
        w_in = jnp.tile(weight, g).reshape(1, width)  # w_full[l] == weight[l % C]
        kernel = functools.partial(_biasfree_ln_grouped_kernel, g=g, C=C)
    else:
        rows, width = R, C
        x_in = x2d
        w_in = weight.reshape(1, C)
        kernel = _biasfree_ln_kernel
        # If C % 128 != 0 here (R not divisible by g), stores fall back to
        # masked vst.msk — still correct, just slower.

    # --- generation-aware block sizing (mem-bound => biggest block that fits) ---
    vmem_cap, n_cores = _chip_profile()
    if vmem_cap <= 64 * 1024 * 1024:                  # v7x-like: 64 MiB physical/TC
        footprint_budget = 44 * 1024 * 1024
        vmem_limit = 56 * 1024 * 1024
    else:                                             # v5e / v6e: 128 MiB physical
        footprint_budget = 72 * 1024 * 1024
        vmem_limit = 96 * 1024 * 1024

    if block_rows is None:
        # Per-step footprint: 2x input + 2x output double buffers (x.dtype)
        # plus ~3 full-block f32 temporaries in the kernel body.
        bytes_per_row = width * (4 * itemsize + 3 * 4)
        block_rows = footprint_budget // max(bytes_per_row, 1)
        # Only shrink blocks on multi-TC chips so dimension_semantics=("parallel",)
        # can shard >=2 grid steps across the TensorCores.
        if n_cores > 1 and rows > n_cores * sublane:
            block_rows = min(block_rows, pl.cdiv(rows, n_cores))
        block_rows = max(sublane, (block_rows // sublane) * sublane)
        block_rows = min(block_rows, _round_up(rows, sublane))

    grid = pl.cdiv(rows, block_rows)
    if n_cores > 1 and grid > 1 and grid % n_cores != 0:
        # Prefer a grid that divides evenly over the TensorCores (balanced work).
        grid_even = _round_up(grid, n_cores)
        block_rows = max(sublane, _round_up(pl.cdiv(rows, grid_even), sublane))
        grid = pl.cdiv(rows, block_rows)

    w_bytes = weight.size * jnp.dtype(weight.dtype).itemsize
    cost = pl.CostEstimate(
        flops=8 * R * C,
        transcendentals=R,
        bytes_accessed=2 * R * C * itemsize + grid * w_bytes,
    )

    out = pl.pallas_call(
        kernel,
        out_shape=jax.ShapeDtypeStruct((rows, width), x.dtype),
        grid_spec=pltpu.PrefetchScalarGridSpec(
            num_scalar_prefetch=0,
            grid=(grid,),
            in_specs=[
                pl.BlockSpec((block_rows, width), lambda i: (i, 0)),
                pl.BlockSpec((1, width), lambda i: (0, 0)),
            ],
            out_specs=pl.BlockSpec((block_rows, width), lambda i: (i, 0)),
        ),
        compiler_params=pltpu.CompilerParams(
            dimension_semantics=("parallel",),
            vmem_limit_bytes=vmem_limit,
        ),
        cost_estimate=cost,
    )(x_in, w_in)

    return out.reshape(orig_shape)


def _reference(x, weight):
    sigma = jnp.var(x.astype(jnp.float32), axis=-1, keepdims=True)  # unbiased=False
    out = x.astype(jnp.float32) / jnp.sqrt(sigma + 1e-5) * weight.astype(jnp.float32)
    return out.astype(x.dtype)


if __name__ == "__main__":
    key = jax.random.PRNGKey(0)

    cases = [
        ((2, 64, 48), 1e-4),   # Restormer-like tokens; C=48 -> lane-dense grouped path (g=8)
        ((2, 8, 128), 1e-5),   # C multiple of 128 -> plain path, full-width stores
        ((3, 5, 48), 1e-5),    # R not divisible by g -> plain fallback + partial block
    ]
    for i, (shape, tol) in enumerate(cases):
        key, sub = jax.random.split(key)
        C = shape[-1]
        x = jax.random.normal(sub, shape, dtype=jnp.float32)
        # Non-trivial deterministic weight (module init is ones, but this also
        # exercises the weight-tiling of the lane-dense path).
        weight = jnp.linspace(0.5, 1.5, C, dtype=jnp.float32)

        y = jax.block_until_ready(biasfree_layernorm(x, weight))
        y_ref = _reference(x, weight)
        assert y.shape == x.shape and y.dtype == x.dtype, f"case {i} shape/dtype"
        assert jnp.allclose(y, y_ref, atol=tol, rtol=tol), f"case {i} mismatch"

    print("KERNEL_OK")
</pallas_src>

<mosaic_0001>
module attributes {stable_mosaic.version = 11 : i64} {
  func.func @_biasfree_ln_grouped_kernel(%arg0: i32, %arg1: memref<16x384xf32, #tpu.memory_space<vmem>>, %arg2: memref<1x384xf32, #tpu.memory_space<vmem>>, %arg3: memref<16x384xf32, #tpu.memory_space<vmem>>) attributes {dimension_semantics = [#tpu.dimension_semantics<parallel>], iteration_bounds = array<i64: 1>, scalar_prefetch = 0 : i64, scratch_operands = 0 : i64, tpu.core_type = #tpu.core_type<tc>, window_params = [{transform_indices = @transform_0, window_bounds = array<i64: 16, 384>}, {pipeline_mode = #tpu.pipeline_mode<synchronous>, transform_indices = @transform_1, window_bounds = array<i64: 1, 384>}, {transform_indices = @transform_2, window_bounds = array<i64: 16, 384>}]} {
    %c0 = arith.constant 0 : index
    %c0_0 = arith.constant 0 : index
    %0 = vector.load %arg1[%c0, %c0_0] : memref<16x384xf32, #tpu.memory_space<vmem>>, vector<16x384xf32>
    %1 = tpu.iota {dimensions = array<i32: 0>} : vector<384x8xi32>
    %2 = tpu.iota {dimensions = array<i32: 1>} : vector<384x8xi32>
    %c48_i32 = arith.constant 48 : i32
    %3 = vector.broadcast %c48_i32 : i32 to vector<384x8xi32>
    %4 = arith.muli %2, %3 : vector<384x8xi32>
    %5 = arith.cmpi sge, %1, %4 : vector<384x8xi32>
    %c1_i32 = arith.constant 1 : i32
    %6 = vector.broadcast %c1_i32 : i32 to vector<384x8xi32>
    %7 = arith.addi %2, %6 : vector<384x8xi32>
    %c48_i32_1 = arith.constant 48 : i32
    %8 = vector.broadcast %c48_i32_1 : i32 to vector<384x8xi32>
    %9 = arith.muli %7, %8 : vector<384x8xi32>
    %10 = arith.cmpi slt, %1, %9 : vector<384x8xi32>
    %11 = arith.andi %5, %10 : vector<384x8xi1>
    %12 = arith.extui %11 : vector<384x8xi1> to vector<384x8xi32>
    %13 = arith.sitofp %12 : vector<384x8xi32> to vector<384x8xf32>
    %14 = tpu.iota {dimensions = array<i32: 1>} : vector<8x384xi32>
    %15 = tpu.iota {dimensions = array<i32: 0>} : vector<8x384xi32>
    %c48_i32_2 = arith.constant 48 : i32
    %16 = vector.broadcast %c48_i32_2 : i32 to vector<8x384xi32>
    %17 = arith.muli %15, %16 : vector<8x384xi32>
    %18 = arith.cmpi sge, %14, %17 : vector<8x384xi32>
    %c1_i32_3 = arith.constant 1 : i32
    %19 = vector.broadcast %c1_i32_3 : i32 to vector<8x384xi32>
    %20 = arith.addi %15, %19 : vector<8x384xi32>
    %c48_i32_4 = arith.constant 48 : i32
    %21 = vector.broadcast %c48_i32_4 : i32 to vector<8x384xi32>
    %22 = arith.muli %20, %21 : vector<8x384xi32>
    %23 = arith.cmpi slt, %14, %22 : vector<8x384xi32>
    %24 = arith.andi %18, %23 : vector<8x384xi1>
    %25 = arith.extui %24 : vector<8x384xi1> to vector<8x384xi32>
    %26 = arith.sitofp %25 : vector<8x384xi32> to vector<8x384xf32>
    %cst = arith.constant dense<0.000000e+00> : vector<16x8xf32>
    %27 = tpu.matmul %0, %13, %cst {dimension_numbers = #tpu.dot_dimension_numbers<[1], [0], [0], [1], [0, 0, 1, 1], [], []>, precision = #tpu.contract_precision<fp32>} : vector<16x384xf32>, vector<384x8xf32>, vector<16x8xf32> -> vector<16x8xf32>
    %cst_5 = arith.constant 0.020833334 : f32
    %28 = vector.broadcast %cst_5 : f32 to vector<16x8xf32>
    %29 = arith.mulf %27, %28 : vector<16x8xf32>
    %cst_6 = arith.constant dense<0.000000e+00> : vector<16x384xf32>
    %30 = tpu.matmul %29, %26, %cst_6 {dimension_numbers = #tpu.dot_dimension_numbers<[1], [0], [0], [1], [0, 0, 1, 1], [], []>, precision = #tpu.contract_precision<fp32>} : vector<16x8xf32>, vector<8x384xf32>, vector<16x384xf32> -> vector<16x384xf32>
    %31 = arith.subf %0, %30 : vector<16x384xf32>
    %32 = arith.mulf %31, %31 : vector<16x384xf32>
    %cst_7 = arith.constant dense<0.000000e+00> : vector<16x8xf32>
    %33 = tpu.matmul %32, %13, %cst_7 {dimension_numbers = #tpu.dot_dimension_numbers<[1], [0], [0], [1], [0, 0, 1, 1], [], []>, precision = #tpu.contract_precision<fp32>} : vector<16x384xf32>, vector<384x8xf32>, vector<16x8xf32> -> vector<16x8xf32>
    %cst_8 = arith.constant 0.020833334 : f32
    %34 = vector.broadcast %cst_8 : f32 to vector<16x8xf32>
    %35 = arith.mulf %33, %34 : vector<16x8xf32>
    %cst_9 = arith.constant 9.99999974E-6 : f32
    %36 = vector.broadcast %cst_9 : f32 to vector<16x8xf32>
    %37 = arith.addf %35, %36 : vector<16x8xf32>
    %38 = math.rsqrt %37 : vector<16x8xf32>
    %cst_10 = arith.constant dense<0.000000e+00> : vector<16x384xf32>
    %39 = tpu.matmul %38, %26, %cst_10 {dimension_numbers = #tpu.dot_dimension_numbers<[1], [0], [0], [1], [0, 0, 1, 1], [], []>, precision = #tpu.contract_precision<fp32>} : vector<16x8xf32>, vector<8x384xf32>, vector<16x384xf32> -> vector<16x384xf32>
    %c0_11 = arith.constant 0 : index
    %c0_12 = arith.constant 0 : index
    %40 = vector.load %arg2[%c0_11, %c0_12] : memref<1x384xf32, #tpu.memory_space<vmem>>, vector<1x384xf32>
    %41 = arith.mulf %0, %39 : vector<16x384xf32>
    %42 = vector.broadcast %40 : vector<1x384xf32> to vector<16x384xf32>
    %43 = arith.mulf %41, %42 : vector<16x384xf32>
    %c0_13 = arith.constant 0 : index
    %c0_14 = arith.constant 0 : index
    %44 = vector.load %arg3[%c0_13, %c0_14] : memref<16x384xf32, #tpu.memory_space<vmem>>, vector<16x384xf32>
    tpu.vector_store %arg3[%c0_13, %c0_14], %43 {strides = array<i32>} : memref<16x384xf32, #tpu.memory_space<vmem>>, vector<16x384xf32>,
    return
  }
  func.func @transform_0(%arg0: i32) -> (i32, i32) {
    %c0_i32 = arith.constant 0 : i32
    %c0_i32_0 = arith.constant 0 : i32
    return %arg0, %c0_i32 : i32, i32
  }
  func.func @transform_1(%arg0: i32) -> (i32, i32) {
    %c0_i32 = arith.constant 0 : i32
    %c0_i32_0 = arith.constant 0 : i32
    %c0_i32_1 = arith.constant 0 : i32
    return %c0_i32, %c0_i32_0 : i32, i32
  }
  func.func @transform_2(%arg0: i32) -> (i32, i32) {
    %c0_i32 = arith.constant 0 : i32
    %c0_i32_0 = arith.constant 0 : i32
    return %arg0, %c0_i32 : i32, i32
  }
}

</mosaic_0001>

<bundles_post_ra>
// kernel: tpu_custom_call.1
= control target key start
LH: loop header
LB: loop body
LE: loop exit
PB: predicated region body
PF: predicated region fallthrough
CT: control target
= control target key end

     0   :  { %7 = vsyncpa [#allocation3], 0  ;;  %s6730_s0 = inlined_call_operand.hbm [shape: f32[16,384], index: 0, kind: input, shape index: {}]   ;;  %s6731_s1 = inlined_call_operand.hbm [shape: f32[1,384], index: 1, kind: input, shape index: {}]   ;;  %s6732_s2 = inlined_call_operand.hbm [shape: f32[16,384], index: 2, kind: output, shape index: {}]  }
   0x1   :  { %8 = vsyncpa [#allocation6], 0 }
   0x2   :  { %9 = vsyncpa [#allocation4], 0  ;;  %s14_s11 = sshll.u32 %s6730_s0, 4  ;;  %s4205_s12 = smov [#allocation2]   ;;  %s15_s11 = int_to_ptr.hbm [resolvable:$true] %s14_s11 }
   0x3   :  { %s16_s13 = sshll.u32 %s4205_s12, 4  ;;  %s28_s16 = sshll.u32 %s6731_s1, 4  ;;  %s17_s13 = int_to_ptr.vmem [resolvable:$true] %s16_s13  ;;  %s29_s16 = int_to_ptr.hbm [resolvable:$true] %s28_s16 }
   0x4   :  { %s4206_s17 = smov 384   ;;  %s4207_s18 = smov 24  }
   0x5   :  { %22 = dma.hbm_to_vmem [thread:$0]  %s15_s11, 768, %s17_s13, [#allocation3], %s4206_s17, %s4206_s17, %s4207_s18  }
   0x6   :  { %s4208_s19 = smov [#allocation5]  }
   0x7   :  { %s30_s20 = sshll.u32 %s4208_s19, 4  ;;  %s31_s20 = int_to_ptr.vmem [resolvable:$true] %s30_s20 }
   0x8   :  { %33 = dma.hbm_to_vmem [thread:$0]  %s29_s16, 48, %s31_s20, [#allocation6]  }
   0x9   :  { %4199 = dma.done.wait [#allocation3], 768  }
   0xa   :  { %4200 = vsyncadd [#allocation3], 4294966528  ;;  %v48_v0 = vlaneseq }
   0xb   :  { %4201 = dma.done.wait [#allocation6], 48  }
   0xc   :  { %4202 = vsyncadd [#allocation6], 4294967248  ;;  %v4236_v1 = vshrl.u32 %v48_v0, 7  ;;  %v4238_v2 = vand.u32 127, %v48_v0  ;;  %v7055_v13 = vmov 0  ;;  %v6742_v14 = vmov 1.0  }
   0xd   :  { %v7058_v15 = vmov 0  ;;  %v6739_v16 = vmov 0.0   ;;  %v7061_v21 = vmov 0  ;;  %v7065_v26 = vmov 0  ;;  %s4211_s0 = smov [#allocation7]   ;;  %s3739_s23 = sshll.u32 %s6732_s2, 4  ;;  %s3740_s23 = int_to_ptr.hbm [resolvable:$true] %s3739_s23 }
   0xe   :  { %7054 = vst [vmem:[#allocation11_spill] sm:$0xff] %v4238_v2  ;;  %v64_v3 = vadd.s32 120, %v4236_v1  ;;  %v4242_v4 = vmul.u32 48, %v4238_v2  ;;  %v148_v5 = vadd.s32 1, %v4238_v2  ;;  %v63_v6 = vadd.s32 112, %v4236_v1  ;;  %s3737_s1 = sshll.u32 %s4211_s0, 4  ;;  %s3738_s1 = int_to_ptr.vmem [resolvable:$true] %s3737_s1 }
   0xf   :  { %v62_v7 = vadd.s32 104, %v4236_v1  ;;  %v61_v8 = vadd.s32 96, %v4236_v1  ;;  %v60_v9 = vadd.s32 88, %v4236_v1  ;;  %v59_v10 = vadd.s32 80, %v4236_v1 }
  0x10   :  { %vm115_vm0 = vcmp.ge.s32.totalorder %v64_v3, %v4242_v4  ;;  %v4251_v11 = vmul.u32 48, %v148_v5  ;;  %vm114_vm1 = vcmp.ge.s32.totalorder %v63_v6, %v4242_v4  ;;  %v58_v12 = vadd.s32 72, %v4236_v1 }
  0x11   :  { %vm113_vm2 = vcmp.ge.s32.totalorder %v62_v7, %v4242_v4  ;;  %vm112_vm3 = vcmp.ge.s32.totalorder %v61_v8, %v4242_v4  ;;  %vm111_vm4 = vcmp.ge.s32.totalorder %v60_v9, %v4242_v4  ;;  %vm110_vm5 = vcmp.ge.s32.totalorder %v59_v10, %v4242_v4 }
  0x12   :  { %vm165_vm6 = vcmp.lt.s32.totalorder %v64_v3, %v4251_v11  ;;  %vm164_vm7 = vcmp.lt.s32.totalorder %v63_v6, %v4251_v11  ;;  %vm163_vm8 = vcmp.lt.s32.totalorder %v62_v7, %v4251_v11  ;;  %vm162_vm9 = vcmp.lt.s32.totalorder %v61_v8, %v4251_v11 }
  0x13   :  { %vm4263_vm10 = vmand %vm115_vm0, %vm165_vm6  ;;  %vm161_vm11 = vcmp.lt.s32.totalorder %v60_v9, %v4251_v11  ;;  %vm160_vm12 = vcmp.lt.s32.totalorder %v59_v10, %v4251_v11  ;;  %vm109_vm13 = vcmp.ge.s32.totalorder %v58_v12, %v4242_v4  ;;  %vm159_vm14 = vcmp.lt.s32.totalorder %v58_v12, %v4251_v11 }
  0x14   :  { %v7056_v13 = vsel %vm4263_vm10, 4294967295, %v7055_v13  ;;  %3804 = vmatpush.msk.msra.mxu0 %vm4263_vm10, %v6742_v14  ;;  %vm4276_vm15 = vmand %vm114_vm1, %vm164_vm7  ;;  %v3768_v17 = vsel %vm4263_vm10, 1.0, %v6739_v16  ;;  %3820 = vmatpush.msk.msra.mxu3 %vm4263_vm10, %v6742_v14  ;;  %v57_v18 = vadd.s32 64, %v4236_v1  ;;  %v56_v19 = vadd.s32 56, %v4236_v1 }
  0x15   :  { %7057 = vst [vmem:[#allocation12_spill] sm:$0xff] %v7056_v13  ;;  %v7059_v15 = vsel %vm4276_vm15, 4294967295, %v7058_v15  ;;  %v55_v20 = vadd.s32 48, %v4236_v1  ;;  %vm4293_vm0 = vmand %vm113_vm2, %vm163_vm8  ;;  %v4297_v22 = vsub.f32 %v3768_v17, %v3768_v17  ;;  %v3767_v23 = vsel %vm4276_vm15, 1.0, %v6739_v16  ;;  %v42_v13 = vld [vmem:[#allocation2] sm:$0xff] }
  0x16   :  { %7060 = vst [vmem:[#allocation13_spill] sm:$0xff] %v7059_v15  ;;  %v7062_v21 = vsel %vm4293_vm0, 4294967295, %v7061_v21  ;;  %v4303_v24 = vadd.s32 40, %v4236_v1  ;;  %v4306_v25 = vadd.s32 32, %v4236_v1  ;;  %3805 = vmatpush.msk.msra.mxu0 %vm4276_vm15, %v6742_v14  ;;  %vm4315_vm1 = vmand %vm112_vm3, %vm162_vm9  ;;  %v4319_v27 = vsub.f32 %v3767_v23, %v3767_v23  ;;  %3821 = vmatpush.msk.msra.mxu3 %vm4276_vm15, %v6742_v14 }
  0x17   :  { %7063 = vst [vmem:[#allocation14_spill] sm:$0xff] %v7062_v21  ;;  %v7066_v26 = vsel %vm4315_vm1, 4294967295, %v7065_v26  ;;  %v3766_v28 = vsel %vm4293_vm0, 1.0, %v6739_v16  ;;  %vm108_vm2 = vcmp.ge.s32.totalorder %v57_v18, %v4242_v4  ;;  %vm158_vm6 = vcmp.lt.s32.totalorder %v57_v18, %v4251_v11  ;;  %518 = vmatpush.msra.mxu2 %v4297_v22  ;;  %vm4334_vm3 = vmand %vm111_vm4, %vm161_vm11 }
  0x18   :  { %7064 = vst [vmem:[#allocation15_spill] sm:$0xff] %v4297_v22  ;;  %v7069_v29 = vmov 0  ;;  %v4339_v30 = vand.u32 4294901760, %v4297_v22  ;;  %v4341_v31 = vsub.f32 %v3766_v28, %v3766_v28  ;;  %v3765_v32 = vsel %vm4315_vm1, 1.0, %v6739_v16  ;;  %3806 = vmatpush.msk.msra.mxu0 %vm4293_vm0, %v6742_v14  ;;  %vm4354_vm4 = vmand %vm110_vm5, %vm160_vm12  ;;  %3822 = vmatpush.msk.msra.mxu3 %vm4293_vm0, %v6742_v14 }
  0x19   :  { %7067 = vst [vmem:[#allocation16_spill] sm:$0xff] %v7066_v26  ;;  %v7070_v29 = vsel %vm4334_vm3, 4294967295, %v7069_v29  ;;  %vm107_vm7 = vcmp.ge.s32.totalorder %v56_v19, %v4242_v4  ;;  %v7074_v33 = vmov 0  ;;  %v4359_v34 = vand.u32 4294901760, %v4319_v27  ;;  %521 = vmatpush.msra.mxu2 %v4319_v27  ;;  %vm4377_vm5 = vmand %vm109_vm13, %vm159_vm14 }
  0x1a   :  { %7068 = vst [vmem:[#allocation17_spill] sm:$0xff] %v4319_v27  ;;  %v7075_v33 = vsel %vm4354_vm4, 4294967295, %v7074_v33  ;;  %v4361_v35 = vsub.f32 %v3765_v32, %v3765_v32  ;;  %v3764_v36 = vsel %vm4334_vm3, 1.0, %v6739_v16  ;;  %vm157_vm8 = vcmp.lt.s32.totalorder %v56_v19, %v4251_v11  ;;  %3807 = vmatpush.msk.msra.mxu0 %vm4315_vm1, %v6742_v14  ;;  %3823 = vmatpush.msk.msra.mxu3 %vm4315_vm1, %v6742_v14  ;;  %vm4401_vm9 = vmand %vm108_vm2, %vm158_vm6 }
  0x1b   :  { %7071 = vst [vmem:[#allocation18_spill] sm:$0xff] %v7070_v29  ;;  %v414_v37 = vsub.f32 %v4297_v22, %v4339_v30  ;;  %v7079_v38 = vmov 0  ;;  %v4382_v39 = vand.u32 4294901760, %v4341_v31  ;;  %v4384_v40 = vsub.f32 %v3764_v36, %v3764_v36  ;;  %524 = vmatpush.msra.mxu2 %v4341_v31  ;;  %vm4437_vm11 = vmand %vm107_vm7, %vm157_vm8 }
  0x1c   :  { %7072 = vst [vmem:[#allocation19_spill] sm:$0xff] %v4339_v30  ;;  %v7080_v38 = vsel %vm4377_vm5, 4294967295, %v7079_v38  ;;  %v3763_v41 = vsel %vm4354_vm4, 1.0, %v6739_v16  ;;  %v420_v42 = vsub.f32 %v4319_v27, %v4359_v34  ;;  %v7084_v43 = vmov 0  ;;  %3808 = vmatpush.msk.msra.mxu0 %vm4334_vm3, %v6742_v14  ;;  %3824 = vmatpush.msk.msra.mxu3 %vm4334_vm3, %v6742_v14 }
  0x1d   :  { %7073 = vst [vmem:[#allocation20_spill] sm:$0xff] %v4341_v31  ;;  %v7085_v43 = vsel %vm4401_vm9, 4294967295, %v7084_v43  ;;  %v4406_v44 = vand.u32 4294901760, %v4361_v35  ;;  %v4408_v45 = vsub.f32 %v3763_v41, %v3763_v41  ;;  %v3762_v46 = vsel %vm4377_vm5, 1.0, %v6739_v16  ;;  %527 = vmatpush.msra.mxu2 %v4361_v35 }
  0x1e   :  { %7076 = vst [vmem:[#allocation21_spill] sm:$0xff] %v7075_v33  ;;  %v4413_v47 = vand.u32 4294901760, %v414_v37  ;;  %v426_v48 = vsub.f32 %v4341_v31, %v4382_v39  ;;  %v4419_v49 = vand.u32 4294901760, %v4384_v40  ;;  %v4421_v50 = vsub.f32 %v3762_v46, %v3762_v46  ;;  %3809 = vmatpush.msk.msra.mxu0 %vm4354_vm4, %v6742_v14  ;;  %3825 = vmatpush.msk.msra.mxu3 %vm4354_vm4, %v6742_v14 }
  0x1f   :  { %7077 = vst [vmem:[#allocation22_spill] sm:$0xff] %v4359_v34  ;;  %v4426_v51 = vand.u32 4294901760, %v420_v42  ;;  %v432_v52 = vsub.f32 %v4361_v35, %v4406_v44  ;;  %v7093_v53 = vmov 0  ;;  %vm106_vm12 = vcmp.ge.s32.totalorder %v55_v20, %v4242_v4  ;;  %530 = vmatpush.msra.mxu2 %v4384_v40 }
  0x20   :  { %7078 = vst [vmem:[#allocation23_spill] sm:$0xff] %v4361_v35  ;;  %v7094_v53 = vsel %vm4437_vm11, 4294967295, %v7093_v53  ;;  %vm156_vm13 = vcmp.lt.s32.totalorder %v55_v20, %v4251_v11  ;;  %416 = vmatpush.msra.mxu1 %v4413_v47  ;;  %v4445_v54 = vand.u32 4294901760, %v426_v48  ;;  %v438_v55 = vsub.f32 %v4384_v40, %v4419_v49  ;;  %3810 = vmatpush.msk.msra.mxu0 %vm4377_vm5, %v6742_v14 }
  0x21   :  { %7081 = vst [vmem:[#allocation24_spill] sm:$0xff] %v7080_v38  ;;  %v4450_v56 = vand.u32 4294901760, %v4408_v45  ;;  %v3761_v57 = vsel %vm4401_vm9, 1.0, %v6739_v16  ;;  %v4458_v58 = vand.u32 4294901760, %v432_v52  ;;  %vm4463_vm14 = vmand %vm106_vm12, %vm156_vm13  ;;  %v7099_v59 = vmov 0  ;;  %3826 = vmatpush.msk.msra.mxu3 %vm4377_vm5, %v6742_v14  ;;  %533 = vmatpush.msra.mxu2 %v4408_v45 }
  0x22   :  { %7082 = vst [vmem:[#allocation25_spill] sm:$0xff] %v4382_v39  ;;  %v7100_v59 = vsel %vm4463_vm14, 4294967295, %v7099_v59  ;;  %v4467_v60 = vsub.f32 %v3761_v57, %v3761_v57  ;;  %vm105_vm2 = vcmp.ge.s32.totalorder %v4303_v24, %v4242_v4  ;;  %vm155_vm6 = vcmp.lt.s32.totalorder %v4303_v24, %v4251_v11  ;;  %422 = vmatpush.msra.mxu1 %v4426_v51 }
  0x23   :  { %7083 = vst [vmem:[#allocation26_spill] sm:$0xff] %v4384_v40  ;;  %v4475_v61 = vand.u32 4294901760, %v438_v55  ;;  %v444_v62 = vsub.f32 %v4408_v45, %v4450_v56  ;;  %vm4479_vm7 = vmand %vm105_vm2, %vm155_vm6  ;;  %v7104_v63 = vmov 0  ;;  %v4484_v0 = vand.u32 4294901760, %v4421_v50  ;;  %3811 = vmatpush.msk.msra.mxu0 %vm4401_vm9, %v6742_v14  ;;  %3827 = vmatpush.msk.msra.mxu3 %vm4401_vm9, %v6742_v14 }
  0x24   :  { %7086 = vst [vmem:[#allocation27_spill] sm:$0xff] %v7085_v43  ;;  %v7105_v63 = vsel %vm4479_vm7, 4294967295, %v7104_v63  ;;  %v3760_v3 = vsel %vm4437_vm11, 1.0, %v6739_v16  ;;  %vm104_vm8 = vcmp.ge.s32.totalorder %v4306_v25, %v4242_v4  ;;  %vm154_vm12 = vcmp.lt.s32.totalorder %v4306_v25, %v4251_v11  ;;  %428 = vmatpush.msra.mxu1 %v4445_v54  ;;  %536 = vmatpush.msra.mxu2 %v4421_v50 }
  0x25   :  { %7087 = vst [vmem:[#allocation28_spill] sm:$0xff] %v4406_v44  ;;  %v4495_v5 = vsub.f32 %v3760_v3, %v3760_v3  ;;  %v4502_v6 = vand.u32 4294901760, %v4467_v60  ;;  %v4506_v7 = vand.u32 4294901760, %v444_v62  ;;  %v450_v8 = vsub.f32 %v4421_v50, %v4484_v0  ;;  %vm4520_vm13 = vmand %vm104_vm8, %vm154_vm12  ;;  %3812 = vmatpush.msk.msra.mxu0 %vm4437_vm11, %v6742_v14  ;;  %3828 = vmatpush.msk.msra.mxu3 %vm4437_vm11, %v6742_v14 }
  0x26   :  { %7088 = vst [vmem:[#allocation29_spill] sm:$0xff] %v4408_v45  ;;  %v3759_v9 = vsel %vm4463_vm14, 1.0, %v6739_v16  ;;  %v52_v10 = vadd.s32 24, %v4236_v1  ;;  %v7110_v12 = vmov 0  ;;  %v3758_v20 = vsel %vm4479_vm7, 1.0, %v6739_v16  ;;  %434 = vmatpush.msra.mxu1 %v4458_v58  ;;  %539 = vmatpush.msra.mxu2 %v4467_v60 }
  0x27   :  { %7089 = vst [vmem:[#allocation30_spill] sm:$0xff] %v4413_v47  ;;  %v7111_v12 = vsel %vm4520_vm13, 4294967295, %v7110_v12  ;;  %v456_v17 = vsub.f32 %v4467_v60, %v4502_v6  ;;  %v4526_v18 = vsub.f32 %v3759_v9, %v3759_v9  ;;  %v4529_v19 = vand.u32 4294901760, %v4495_v5  ;;  %3813 = vmatpush.msk.msra.mxu0 %vm4463_vm14, %v6742_v14  ;;  %3829 = vmatpush.msk.msra.mxu3 %vm4463_vm14, %v6742_v14 }
  0x28   :  { %7090 = vst [vmem:[#allocation31_spill] sm:$0xff] %v4419_v49  ;;  %v4536_v23 = vand.u32 4294901760, %v450_v8  ;;  %vm103_vm2 = vcmp.ge.s32.totalorder %v52_v10, %v4242_v4  ;;  %vm153_vm6 = vcmp.lt.s32.totalorder %v52_v10, %v4251_v11  ;;  %v4540_v24 = vsub.f32 %v3758_v20, %v3758_v20  ;;  %440 = vmatpush.msra.mxu1 %v4475_v61 }
  0x29   :  { %7091 = vst [vmem:[#allocation32_spill] sm:$0xff] %v4421_v50  ;;  %v4545_v25 = vand.u32 4294901760, %v456_v17  ;;  %vm4550_vm8 = vmand %vm103_vm2, %vm153_vm6  ;;  %v7117_v28 = vmov 0  ;;  %v462_v32 = vsub.f32 %v4495_v5, %v4529_v19  ;;  %v51_v36 = vadd.s32 16, %v4236_v1  ;;  %542 = vmatpush.msra.mxu2 %v4495_v5  ;;  %3814 = vmatpush.msk.msra.mxu0 %vm4479_vm7, %v6742_v14 }
  0x2a   :  { %7092 = vst [vmem:[#allocation33_spill] sm:$0xff] %v4426_v51  ;;  %v7118_v28 = vsel %vm4550_vm8, 4294967295, %v7117_v28  ;;  %v4558_v37 = vand.u32 4294901760, %v4526_v18  ;;  %v3757_v41 = vsel %vm4520_vm13, 1.0, %v6739_v16  ;;  %v50_v42 = vadd.s32 8, %v4236_v1  ;;  %446 = vmatpush.msra.mxu1 %v4506_v7  ;;  %3830 = vmatpush.msk.msra.mxu3 %vm4479_vm7, %v6742_v14 }
  0x2b   :  { %7095 = vst [vmem:[#allocation34_spill] sm:$0xff] %v7094_v53  ;;  %v4567_v46 = vand.u32 4294901760, %v4540_v24  ;;  %v3756_v48 = vsel %vm4550_vm8, 1.0, %v6739_v16  ;;  %v4575_v52 = vand.u32 4294901760, %v462_v32  ;;  %vm102_vm12 = vcmp.ge.s32.totalorder %v51_v36, %v4242_v4  ;;  %545 = vmatpush.msra.mxu2 %v4526_v18  ;;  %3815 = vmatpush.msk.msra.mxu0 %vm4520_vm13, %v6742_v14 }
  0x2c   :  { %7096 = vst [vmem:[#allocation35_spill] sm:$0xff] %v4445_v54  ;;  %vm152_vm2 = vcmp.lt.s32.totalorder %v51_v36, %v4251_v11  ;;  %v468_v55 = vsub.f32 %v4526_v18, %v4558_v37  ;;  %v7122_v57 = vmov 0  ;;  %v4590_v62 = vsub.f32 %v3757_v41, %v3757_v41  ;;  %452 = vmatpush.msra.mxu1 %v4536_v23 }
  0x2d   :  { %7097 = vst [vmem:[#allocation36_spill] sm:$0xff] %v4450_v56  ;;  %vm4586_vm6 = vmand %vm102_vm12, %vm152_vm2  ;;  %vm101_vm11 = vcmp.ge.s32.totalorder %v50_v42, %v4242_v4  ;;  %vm151_vm14 = vcmp.lt.s32.totalorder %v50_v42, %v4251_v11  ;;  %v80_v3 = vadd.s32 248, %v4236_v1  ;;  %v7126_v9 = vmov 0  ;;  %3831 = vmatpush.msk.msra.mxu3 %vm4520_vm13, %v6742_v14  ;;  %548 = vmatpush.msra.mxu2 %v4540_v24 }
  0x2e   :  { %7098 = vst [vmem:[#allocation37_spill] sm:$0xff] %v4458_v58  ;;  %v7123_v57 = vsel %vm4586_vm6, 4294967295, %v7122_v57  ;;  %v4598_v8 = vand.u32 4294901760, %v468_v55  ;;  %vm4603_vm12 = vmand %vm101_vm11, %vm151_vm14  ;;  %v474_v10 = vsub.f32 %v4540_v24, %v4567_v46  ;;  %v4609_v17 = vsub.f32 %v3756_v48, %v3756_v48  ;;  %458 = vmatpush.msra.mxu1 %v4545_v25 }
  0x2f   :  { %7101 = vst [vmem:[#allocation38_spill] sm:$0xff] %v7100_v59  ;;  %v7127_v9 = vsel %vm4603_vm12, 4294967295, %v7126_v9  ;;  %vm100_vm2 = vcmp.ge.s32.totalorder %v4236_v1, %v4242_v4  ;;  %vm150_vm9 = vcmp.lt.s32.totalorder %v4236_v1, %v4251_v11  ;;  %v4618_v20 = vand.u32 4294901760, %v4590_v62  ;;  %551 = vmatpush.msra.mxu2 %v4590_v62 }
  0x30   :  { %7102 = vst [vmem:[#allocation39_spill] sm:$0xff] %v4467_v60  ;;  %v3755_v32 = vsel %vm4586_vm6, 1.0, %v6739_v16  ;;  %v3754_v36 = vsel %vm4603_vm12, 1.0, %v6739_v16  ;;  %v4629_v41 = vand.u32 4294901760, %v474_v10  ;;  %vm4634_vm11 = vmand %vm100_vm2, %vm150_vm9  ;;  %v7131_v42 = vmov 0  ;;  %464 = vmatpush.msra.mxu1 %v4575_v52 }
  0x31   :  { %7103 = vst [vmem:[#allocation40_spill] sm:$0xff] %v4475_v61  ;;  %v7132_v42 = vsel %vm4634_vm11, 4294967295, %v7131_v42  ;;  %v4638_v48 = vsub.f32 %v3755_v32, %v3755_v32  ;;  %v4641_v55 = vand.u32 4294901760, %v4609_v17  ;;  %v4643_v16 = vsub.f32 %v3754_v36, %v3754_v36  ;;  %554 = vmatpush.msra.mxu2 %v4609_v17 }
  0x32   :  { %7106 = vst [vmem:[#allocation41_spill] sm:$0xff] %v4484_v0  ;;  %v480_v10 = vsub.f32 %v4590_v62, %v4618_v20  ;;  %vm131_vm9 = vcmp.ge.s32.totalorder %v80_v3, %v4242_v4  ;;  %vm181_vm14 = vcmp.lt.s32.totalorder %v80_v3, %v4251_v11  ;;  %v7137_v32 = vmov 1.0   ;;  %470 = vmatpush.msra.mxu1 %v4598_v8 }
  0x33   :  { %7107 = vst [vmem:[#allocation42_spill] sm:$0xff] %v4495_v5  ;;  %3816 = vmatpush.msk.msra.mxu0 %vm4550_vm8, %v7137_v32  ;;  %3832 = vmatpush.msk.msra.mxu3 %vm4550_vm8, %v7137_v32  ;;  %v486_v36 = vsub.f32 %v4609_v17, %v4641_v55  ;;  %vm4667_vm2 = vmand %vm131_vm9, %vm181_vm14  ;;  %v4672_v3 = vand.u32 4294901760, %v4643_v16  ;;  %v78_v58 = vadd.s32 232, %v4236_v1  ;;  %v77_v60 = vadd.s32 224, %v4236_v1 }
  0x34   :  { %7108 = vst [vmem:[#allocation43_spill] sm:$0xff] %v4502_v6  ;;  %v4676_v61 = vand.u32 4294901760, %v480_v10  ;;  %476 = vmatpush.msra.mxu1 %v4629_v41  ;;  %557 = vmatpush.msra.mxu2 %v4638_v48  ;;  %v76_v51 = vadd.s32 216, %v4236_v1  ;;  %v75_v50 = vadd.s32 208, %v4236_v1  ;;  %v7159_v35 = vmov 0 }
  0x35   :  { %7109 = vst [vmem:[#allocation44_spill] sm:$0xff] %v4506_v7  ;;  %3817 = vmatpush.msk.msra.mxu0 %vm4586_vm6, %v7137_v32  ;;  %v4686_v5 = vand.u32 4294901760, %v486_v36  ;;  %3833 = vmatpush.msk.msra.mxu3 %vm4586_vm6, %v7137_v32  ;;  %vm129_vm6 = vcmp.ge.s32.totalorder %v78_v58, %v4242_v4  ;;  %vm179_vm13 = vcmp.lt.s32.totalorder %v78_v58, %v4251_v11  ;;  %v71_v31 = vadd.s32 176, %v4236_v1 }
  0x36   :  { %7112 = vst [vmem:[#allocation45_spill] sm:$0xff] %v4526_v18  ;;  %v79_v18 = vadd.s32 240, %v4236_v1  ;;  %vm4727_vm7 = vmand %vm129_vm6, %vm179_vm13  ;;  %482 = vmatpush.msra.mxu1 %v4676_v61  ;;  %vm128_vm13 = vcmp.ge.s32.totalorder %v77_v60, %v4242_v4  ;;  %vm178_vm6 = vcmp.lt.s32.totalorder %v77_v60, %v4251_v11  ;;  %560 = vmatpush.msra.mxu2 %v4643_v16  ;;  %v7185_v22 = vmov 0 }
  0x37   :  { %7113 = vst [vmem:[#allocation46_spill] sm:$0xff] %v4529_v19  ;;  %3818 = vmatpush.msk.msra.mxu0 %vm4603_vm12, %v7137_v32  ;;  %3834 = vmatpush.msk.msra.mxu3 %vm4603_vm12, %v7137_v32 }
  0x38   :  { %7114 = vst [vmem:[#allocation47_spill] sm:$0xff] %v4536_v23  ;;  %v7136_v23 = vmov 0.0   ;;  %vm130_vm9 = vcmp.ge.s32.totalorder %v79_v18, %v4242_v4  ;;  %vm180_vm14 = vcmp.lt.s32.totalorder %v79_v18, %v4251_v11  ;;  %488 = vmatpush.msra.mxu1 %v4686_v5 }
  0x39   :  { %7115 = vst [vmem:[#allocation48_spill] sm:$0xff] %v4540_v24  ;;  %v3753_v14 = vsel %vm4634_vm11, 1.0, %v7136_v23  ;;  %v7140_v24 = vmov 0  ;;  %vm4715_vm8 = vmand %vm130_vm9, %vm180_vm14  ;;  %3819 = vmatpush.msk.msra.mxu0 %vm4634_vm11, %v7137_v32  ;;  %3835 = vmatpush.msk.msra.mxu3 %vm4634_vm11, %v7137_v32  ;;  %vm127_vm14 = vcmp.ge.s32.totalorder %v76_v51, %v4242_v4  ;;  %vm177_vm11 = vcmp.lt.s32.totalorder %v76_v51, %v4251_v11 }
  0x3a   :  { %7116 = vst [vmem:[#allocation49_spill] sm:$0xff] %v4545_v25  ;;  %v4663_v25 = vand.u32 4294901760, %v4638_v48  ;;  %v4665_v7 = vsub.f32 %v3753_v14, %v3753_v14  ;;  %v7141_v24 = vsel %vm4667_vm2, 4294967295, %v7140_v24  ;;  %v3784_v14 = vsel %vm4667_vm2, 1.0, %v7136_v23  ;;  %vm4764_vm9 = vmand %vm128_vm13, %vm178_vm6 }
  0x3b   :  { %7119 = vst [vmem:[#allocation50_spill] sm:$0xff] %v4558_v37  ;;  %623 = vmatpush.msrb.mxu0 %v4339_v30  ;;  %v7160_v35 = vsel %vm4764_vm9, 4294967295, %v7159_v35  ;;  %vm4775_vm12 = vmand %vm127_vm14, %vm177_vm11  ;;  %vm126_vm13 = vcmp.ge.s32.totalorder %v75_v50, %v4242_v4  ;;  %vm176_vm6 = vcmp.lt.s32.totalorder %v75_v50, %v4251_v11 }
  0x3c   :  { %7120 = vst [vmem:[#allocation51_spill] sm:$0xff] %v4567_v46  ;;  %v492_v10 = vsub.f32 %v4638_v48, %v4663_v25  ;;  %v4702_v36 = vand.u32 4294901760, %v4665_v7  ;;  %563 = vmatpush.msra.mxu2 %v4665_v7  ;;  %vm4790_vm11 = vmand %vm126_vm13, %vm176_vm6  ;;  %v3780_v30 = vsel %vm4775_vm12, 1.0, %v7136_v23 }
  0x3d   :  { %7121 = vst [vmem:[#allocation52_spill] sm:$0xff] %v4575_v52  ;;  %v498_v52 = vsub.f32 %v4643_v16, %v4672_v3  ;;  %627 = vmatpush.msrb.mxu0 %v4359_v34  ;;  %v7165_v34 = vmov 0 }
  0x3e   :  { %7124 = vst [vmem:[#allocation53_spill] sm:$0xff] %v4590_v62  ;;  %v4695_v62 = vsub.f32 %v3784_v14, %v3784_v14  ;;  %v4708_v54 = vand.u32 4294901760, %v492_v10  ;;  %v504_v10 = vsub.f32 %v4665_v7, %v4702_v36  ;;  %v7166_v34 = vsel %vm4790_vm11, 4294967295, %v7165_v34  ;;  %3852 = vmatpush.msk.msrb.mxu2 %vm4667_vm2, %v7137_v32 }
  0x3f   :  { %7125 = vst [vmem:[#allocation54_spill] sm:$0xff] %v4598_v8  ;;  %v4713_v14 = vand.u32 4294901760, %v498_v52  ;;  %v7149_v8 = vmov 0  ;;  %v3783_v52 = vsel %vm4715_vm8, 1.0, %v7136_v23  ;;  %631 = vmatpush.msrb.mxu0 %v4382_v39 }
  0x40   :  { %7128 = vst [vmem:[#allocation55_spill] sm:$0xff] %v4609_v17  ;;  %v7150_v8 = vsel %vm4715_vm8, 4294967295, %v7149_v8  ;;  %v4720_v18 = vand.u32 4294901760, %v4695_v62  ;;  %v7152_v17 = vmov 0  ;;  %v4752_v47 = vand.u32 4294901760, %v504_v10  ;;  %494 = vmatpush.msra.mxu1 %v4708_v54  ;;  %3853 = vmatpush.msk.msrb.mxu2 %vm4715_vm8, %v7137_v32 }
  0x41   :  { %7129 = vst [vmem:[#allocation56_spill] sm:$0xff] %v4618_v20  ;;  %v7153_v17 = vsel %vm4727_vm7, 4294967295, %v7152_v17  ;;  %v3781_v10 = vsel %vm4764_vm9, 1.0, %v7136_v23  ;;  %635 = vmatpush.msrb.mxu0 %v4406_v44 }
  0x42   :  { %7130 = vst [vmem:[#allocation57_spill] sm:$0xff] %v4629_v41  ;;  %v786_v58 = vsub.f32 %v4695_v62, %v4720_v18  ;;  %v4744_v41 = vsub.f32 %v3783_v52, %v3783_v52  ;;  %500 = vmatpush.msra.mxu1 %v4713_v14  ;;  %3854 = vmatpush.msk.msrb.mxu2 %vm4727_vm7, %v7137_v32 }
  0x43   :  { %7133 = vst [vmem:[#allocation58_spill] sm:$0xff] %v4638_v48  ;;  %v3782_v48 = vsel %vm4727_vm7, 1.0, %v7136_v23  ;;  %639 = vmatpush.msrb.mxu0 %v4419_v49  ;;  %vm172_vm7 = vcmp.lt.s32.totalorder %v71_v31, %v4251_v11 }
  0x44   :  { %7134 = vst [vmem:[#allocation59_spill] sm:$0xff] %v4641_v55  ;;  %v4756_v45 = vsub.f32 %v3782_v48, %v3782_v48  ;;  %v4759_v52 = vand.u32 4294901760, %v786_v58  ;;  %v4762_v40 = vand.u32 4294901760, %v4744_v41  ;;  %v7162_v48 = vmov 0  ;;  %506 = vmatpush.msra.mxu1 %v4752_v47  ;;  %3855 = vmatpush.msk.msrb.mxu2 %vm4764_vm9, %v7137_v32 }
  0x45   :  { %7135 = vst [vmem:[#allocation60_spill] sm:$0xff] %v4643_v16  ;;  %v7163_v48 = vsel %vm4775_vm12, 4294967295, %v7162_v48  ;;  %v4788_v58 = vsub.f32 %v3781_v10, %v3781_v10  ;;  %v3779_v10 = vsel %vm4790_vm11, 1.0, %v7136_v23  ;;  %v7173_v16 = vmov 0  ;;  %643 = vmatpush.msrb.mxu0 %v4450_v56 }
  0x46   :  { %7138 = vst [vmem:[#allocation61_spill] sm:$0xff] %v4663_v25  ;;  %v4773_v60 = vand.u32 4294901760, %v4756_v45  ;;  %788 = vmatpush.msrb.mxu3 %v4759_v52  ;;  %v792_v51 = vsub.f32 %v4744_v41, %v4762_v40  ;;  %3836 = vmatpush.msk.msrb.mxu1 %vm4263_vm10, %v7137_v32  ;;  %vm122_vm10 = vcmp.ge.s32.totalorder %v71_v31, %v4242_v4  ;;  %v7191_v31 = vmov 0 }
  0x47   :  { %7139 = vst [vmem:[#allocation62_spill] sm:$0xff] %v4665_v7  ;;  %647 = vmatpush.msrb.mxu0 %v4484_v0  ;;  %3856 = vmatpush.msk.msrb.mxu2 %vm4775_vm12, %v7137_v32  ;;  %v4923_v0 = vand.u32 4294901760, %v42_v13 }
  0x48   :  { %7142 = vst [vmem:[#allocation63_spill] sm:$0xff] %v4672_v3  ;;  %v798_v50 = vsub.f32 %v4756_v45, %v4773_v60  ;;  %v4811_v7 = vand.u32 4294901760, %v792_v51  ;;  %v4829_v51 = vsub.f32 %v3779_v10, %v3779_v10  ;;  %v72_v10 = vadd.s32 184, %v4236_v1  ;;  %3837 = vmatpush.msk.msrb.mxu1 %vm4276_vm15, %v7137_v32 }
  0x49   :  { %7143 = vst [vmem:[#allocation64_spill] sm:$0xff] %v4676_v61  ;;  %v73_v61 = vadd.s32 192, %v4236_v1  ;;  %651 = vmatpush.msrb.mxu0 %v4502_v6  ;;  %3857 = vmatpush.msk.msrb.mxu2 %vm4790_vm11, %v7137_v32  ;;  %v69_v6 = vadd.s32 160, %v4236_v1 }
  0x4a   :  { %7144 = vst [vmem:[#allocation65_spill] sm:$0xff] %v4686_v5  ;;  %v74_v5 = vadd.s32 200, %v4236_v1  ;;  %794 = vmatpush.msrb.mxu3 %v4811_v7  ;;  %3838 = vmatpush.msk.msrb.mxu1 %vm4293_vm0, %v7137_v32 }
  0x4b   :  { %7145 = vst [vmem:[#allocation66_spill] sm:$0xff] %v4695_v62  ;;  %vm124_vm2 = vcmp.ge.s32.totalorder %v73_v61, %v4242_v4  ;;  %vm174_vm5 = vcmp.lt.s32.totalorder %v73_v61, %v4251_v11  ;;  %655 = vmatpush.msrb.mxu0 %v4529_v19  ;;  %508 = vmatmul.f32.vlgmr.msra.gmra.mxu1 %v4923_v0 }
  0x4c   :  { %7146 = vst [vmem:[#allocation67_spill] sm:$0xff] %v4702_v36  ;;  %vm125_vm14 = vcmp.ge.s32.totalorder %v74_v5, %v4242_v4  ;;  %vm175_vm13 = vcmp.lt.s32.totalorder %v74_v5, %v4251_v11  ;;  %3839 = vmatpush.msk.msrb.mxu1 %vm4315_vm1, %v7137_v32 }
  0x4d   :  { %7147 = vst [vmem:[#allocation68_spill] sm:$0xff] %v4708_v54  ;;  %v4814_v54 = vand.u32 4294901760, %v4788_v58  ;;  %vm4825_vm6 = vmand %vm125_vm14, %vm175_vm13  ;;  %vm123_vm13 = vcmp.ge.s32.totalorder %v72_v10, %v4242_v4  ;;  %659 = vmatpush.msrb.mxu0 %v4558_v37  ;;  %v67_v37 = vadd.s32 144, %v4236_v1 }
  0x4e   :  { %7148 = vst [vmem:[#allocation69_spill] sm:$0xff] %v4713_v14  ;;  %v7174_v16 = vsel %vm4825_vm6, 4294967295, %v7173_v16  ;;  %v4848_v14 = vand.u32 4294901760, %v4829_v51  ;;  %vm4850_vm14 = vmand %vm124_vm2, %vm174_vm5  ;;  %vm173_vm5 = vcmp.lt.s32.totalorder %v72_v10, %v4251_v11  ;;  %3840 = vmatpush.msk.msrb.mxu1 %vm4334_vm3, %v7137_v32  ;;  %3858 = vmatpush.msk.msrb.mxu2 %vm4825_vm6, %v7137_v32 }
  0x4f   :  { %7151 = vst [vmem:[#allocation70_spill] sm:$0xff] %v4720_v18  ;;  %v804_v5 = vsub.f32 %v4788_v58, %v4814_v54  ;;  %vm4879_vm2 = vmand %vm123_vm13, %vm173_vm5  ;;  %663 = vmatpush.msrb.mxu0 %v4567_v46 }
  0x50   :  { %7154 = vst [vmem:[#allocation71_spill] sm:$0xff] %v4744_v41  ;;  %v816_v27 = vsub.f32 %v4829_v51, %v4848_v14  ;;  %v7186_v22 = vsel %vm4879_vm2, 4294967295, %v7185_v22  ;;  %vm4906_vm13 = vmand %vm122_vm10, %vm172_vm7  ;;  %vm170_vm7 = vcmp.lt.s32.totalorder %v69_v6, %v4251_v11  ;;  %3841 = vmatpush.msk.msrb.mxu1 %vm4354_vm4, %v7137_v32  ;;  %3859 = vmatpush.msk.msrb.mxu2 %vm4850_vm14, %v7137_v32 }
  0x51   :  { %7155 = vst [vmem:[#allocation72_spill] sm:$0xff] %v4752_v47  ;;  %v4863_v49 = vand.u32 4294901760, %v804_v5  ;;  %v7192_v31 = vsel %vm4906_vm13, 4294967295, %v7191_v31  ;;  %667 = vmatpush.msrb.mxu0 %v4618_v20  ;;  %v65_v20 = vadd.s32 128, %v4236_v1 }
  0x52   :  { %7156 = vst [vmem:[#allocation73_spill] sm:$0xff] %v4756_v45  ;;  %v4899_v56 = vand.u32 4294901760, %v816_v27  ;;  %v3775_v27 = vsel %vm4906_vm13, 1.0, %v7136_v23  ;;  %3860 = vmatpush.msk.msrb.mxu2 %vm4879_vm2, %v7137_v32 }
  0x53   :  { %7157 = vst [vmem:[#allocation74_spill] sm:$0xff] %v4759_v52  ;;  %v4802_v52 = vsub.f32 %v3780_v30, %v3780_v30  ;;  %v4820_v30 = vand.u32 4294901760, %v798_v50  ;;  %v3778_v50 = vsel %vm4825_vm6, 1.0, %v7136_v23  ;;  %671 = vmatpush.msrb.mxu0 %v4641_v55 }
  0x54   :  { %7158 = vst [vmem:[#allocation75_spill] sm:$0xff] %v4762_v40  ;;  %v4854_v61 = vsub.f32 %v3778_v50, %v3778_v50  ;;  %v3777_v50 = vsel %vm4850_vm14, 1.0, %v7136_v23  ;;  %3861 = vmatpush.msk.msrb.mxu2 %vm4906_vm13, %v7137_v32 }
  0x55   :  { %7161 = vst [vmem:[#allocation76_spill] sm:$0xff] %v4773_v60  ;;  %v4823_v39 = vand.u32 4294901760, %v4802_v52  ;;  %800 = vmatpush.msrb.mxu3 %v4820_v30  ;;  %v4883_v10 = vsub.f32 %v3777_v50, %v3777_v50  ;;  %v70_v50 = vadd.s32 168, %v4236_v1  ;;  %675 = vmatpush.msrb.mxu0 %v4663_v25  ;;  %v7232_v25 = vmov 0 }
  0x56   :  { %7164 = vst [vmem:[#allocation77_spill] sm:$0xff] %v4788_v58  ;;  %v4877_v5 = vand.u32 4294901760, %v4854_v61 }
  0x57   :  { %7167 = vst [vmem:[#allocation78_spill] sm:$0xff] %v7166_v34  ;;  %v810_v44 = vsub.f32 %v4802_v52, %v4823_v39  ;;  %806 = vmatpush.msrb.mxu3 %v4863_v49  ;;  %v4904_v15 = vand.u32 4294901760, %v4883_v10  ;;  %vm121_vm5 = vcmp.ge.s32.totalorder %v70_v50, %v4242_v4  ;;  %vm171_vm15 = vcmp.lt.s32.totalorder %v70_v50, %v4251_v11 }
  0x58   :  { %7168 = vst [vmem:[#allocation79_spill] sm:$0xff] %v4802_v52  ;;  %vm4934_vm10 = vmand %vm121_vm5, %vm171_vm15  ;;  %v7197_v50 = vmov 0  ;;  %vm120_vm15 = vcmp.ge.s32.totalorder %v69_v6, %v4242_v4  ;;  %v7209_v6 = vmov 0  ;;  %679 = vmatpush.msrb.mxu0 %v4672_v3 }
  0x59   :  { %7169 = vst [vmem:[#allocation80_spill] sm:$0xff] %v4811_v7  ;;  %v7178_v7 = vmov 0  ;;  %v4872_v47 = vand.u32 4294901760, %v810_v44  ;;  %v3776_v44 = vsel %vm4879_vm2, 1.0, %v7136_v23  ;;  %v7198_v50 = vsel %vm4934_vm10, 4294967295, %v7197_v50  ;;  %vm4981_vm3 = vmand %vm120_vm15, %vm170_vm7  ;;  %3862 = vmatpush.msk.msrb.mxu2 %vm4934_vm10, %v7137_v32 }
  0x5a   :  { %7170 = vst [vmem:[#allocation81_spill] sm:$0xff] %v4814_v54  ;;  %v7179_v7 = vsel %vm4850_vm14, 4294967295, %v7178_v7  ;;  %v4910_v2 = vsub.f32 %v3776_v44, %v3776_v44  ;;  %vm118_vm7 = vcmp.ge.s32.totalorder %v67_v37, %v4242_v4  ;;  %vm7220_vm2 = vnez %v7085_v43  ;;  %683 = vmatpush.msrb.mxu0 %v4702_v36 }
  0x5b   :  { %7171 = vst [vmem:[#allocation82_spill] sm:$0xff] %v4820_v30  ;;  %v822_v30 = vsub.f32 %v4854_v61, %v4877_v5  ;;  %812 = vmatpush.msrb.mxu3 %v4872_v47  ;;  %3863 = vmatpush.msk.msrb.mxu2 %vm4981_vm3, %v7137_v32 }
  0x5c   :  { %7172 = vst [vmem:[#allocation83_spill] sm:$0xff] %v4823_v39  ;;  %v4932_v21 = vand.u32 4294901760, %v4910_v2 }
  0x5d   :  { %7175 = vst [vmem:[#allocation84_spill] sm:$0xff] %v7174_v16  ;;  %v4927_v44 = vand.u32 4294901760, %v822_v30  ;;  %v4947_v30 = vsub.f32 %v42_v13, %v4923_v0  ;;  %818 = vmatpush.msrb.mxu3 %v4899_v56 }
  0x5e   :  { %7176 = vst [vmem:[#allocation85_spill] sm:$0xff] %v4829_v51 }
  0x5f   :  { %7177 = vst [vmem:[#allocation86_spill] sm:$0xff] %v4848_v14  ;;  %824 = vmatpush.msrb.mxu3 %v4927_v44  ;;  %566 = vmatmul.f32.vlgmr.msra.gmra.mxu2 %v4947_v30 }
  0x60   :  { %7180 = vst [vmem:[#allocation87_spill] sm:$0xff] %v7179_v7 }
  0x61   :  { %7181 = vst [vmem:[#allocation88_spill] sm:$0xff] %v4854_v61 }
  0x62   :  { %7182 = vst [vmem:[#allocation89_spill] sm:$0xff] %v4863_v49  ;;  %v828_v49 = vsub.f32 %v4883_v10, %v4904_v15 }
  0x63   :  { %7183 = vst [vmem:[#allocation90_spill] sm:$0xff] %v4872_v47  ;;  %v3774_v47 = vsel %vm4934_vm10, 1.0, %v7136_v23 }
  0x64   :  { %7184 = vst [vmem:[#allocation91_spill] sm:$0xff] %v4877_v5  ;;  %v4938_v5 = vsub.f32 %v3775_v27, %v3775_v27  ;;  %v68_v27 = vadd.s32 152, %v4236_v1  ;;  %v4956_v26 = vand.u32 4294901760, %v828_v49  ;;  %v4963_v34 = vsub.f32 %v3774_v47, %v3774_v47 }
  0x65   :  { %7187 = vst [vmem:[#allocation92_spill] sm:$0xff] %v7186_v22  ;;  %v6838_v49 = vand.u32 4294901760, %v4947_v30 }
  0x66   :  { %7188 = vst [vmem:[#allocation93_spill] sm:$0xff] %v4883_v10  ;;  %v4961_v13 = vand.u32 4294901760, %v4938_v5  ;;  %vm119_vm5 = vcmp.ge.s32.totalorder %v68_v27, %v4242_v4  ;;  %v4986_v29 = vand.u32 4294901760, %v4963_v34  ;;  %vm169_vm1 = vcmp.lt.s32.totalorder %v68_v27, %v4251_v11  ;;  %830 = vmatpush.msrb.mxu3 %v4956_v26 }
  0x67   :  { %7189 = vst [vmem:[#allocation94_spill] sm:$0xff] %v4899_v56  ;;  %v7205_v56 = vmov 0  ;;  %vm4998_vm15 = vmand %vm119_vm5, %vm169_vm1  ;;  %v3773_v27 = vsel %vm4981_vm3, 1.0, %v7136_v23  ;;  %vm7214_vm1 = vnez %v7080_v38  ;;  %vm168_vm5 = vcmp.lt.s32.totalorder %v67_v37, %v4251_v11 }
  0x68   :  { %7190 = vst [vmem:[#allocation95_spill] sm:$0xff] %v4904_v15  ;;  %v834_v15 = vsub.f32 %v4910_v2, %v4932_v21  ;;  %v840_v19 = vsub.f32 %v4938_v5, %v4961_v13  ;;  %v7206_v56 = vsel %vm4981_vm3, 4294967295, %v7205_v56  ;;  %v7210_v6 = vsel %vm4998_vm15, 4294967295, %v7209_v6  ;;  %3842 = vmatpush.msk.msrb.mxu1 %vm7214_vm1, %v7137_v32  ;;  %vm5033_vm4 = vmand %vm118_vm7, %vm168_vm5  ;;  %3864 = vmatpush.msk.msrb.mxu2 %vm4998_vm15, %v7137_v32 }
  0x69   :  { %7193 = vst [vmem:[#allocation96_spill] sm:$0xff] %v7192_v31  ;;  %v3772_v7 = vsel %vm4998_vm15, 1.0, %v7136_v23  ;;  %v7222_v37 = vmov 0  ;;  %vm166_vm7 = vcmp.lt.s32.totalorder %v65_v20, %v4251_v11  ;;  %vm7230_vm5 = vnez %v7100_v59 }
  0x6a   :  { %7194 = vst [vmem:[#allocation97_spill] sm:$0xff] %v4910_v2  ;;  %v4977_v47 = vand.u32 4294901760, %v834_v15  ;;  %v397_v15 = vsub.f32 %v4947_v30, %v6838_v49  ;;  %v5009_v33 = vand.u32 4294901760, %v840_v19  ;;  %v846_v49 = vsub.f32 %v4963_v34, %v4986_v29  ;;  %3843 = vmatpush.msk.msrb.mxu1 %vm7220_vm2, %v7137_v32  ;;  %3865 = vmatpush.msk.msrb.mxu2 %vm5033_vm4, %v7137_v32 }
  0x6b   :  { %7195 = vst [vmem:[#allocation98_spill] sm:$0xff] %v4927_v44  ;;  %v66_v44 = vadd.s32 136, %v4236_v1  ;;  %v5026_v19 = vsub.f32 %v3772_v7, %v3772_v7 }
  0x6c   :  { %7196 = vst [vmem:[#allocation99_spill] sm:$0xff] %v4932_v21  ;;  %v45_v21 = vld [vmem:[#allocation2 + $0x18] sm:$0xff]  ;;  %836 = vmatpush.msrb.mxu3 %v4977_v47  ;;  %v5060_v43 = vand.u32 4294901760, %v846_v49 }
  0x6d   :  { %7199 = vst [vmem:[#allocation100_spill] sm:$0xff] %v7198_v50  ;;  %vm117_vm1 = vcmp.ge.s32.totalorder %v66_v44, %v4242_v4  ;;  %vm167_vm0 = vcmp.lt.s32.totalorder %v66_v44, %v4251_v11  ;;  %v5046_v7 = vand.u32 4294901760, %v5026_v19  ;;  %v5055_v44 = vand.u32 4294901760, %v45_v21 }
  0x6e   :  { %7200 = vst [vmem:[#allocation101_spill] sm:$0xff] %v4938_v5  ;;  %vm5048_vm14 = vmand %vm117_vm1, %vm167_vm0  ;;  %842 = vmatpush.msrb.mxu3 %v5009_v33  ;;  %vm7227_vm0 = vnez %v7094_v53  ;;  %vm116_vm1 = vcmp.ge.s32.totalorder %v65_v20, %v4242_v4 }
  0x6f   :  { %7201 = vst [vmem:[#allocation102_spill] sm:$0xff] %v4956_v26  ;;  %v7217_v26 = vmov 0  ;;  %v7223_v37 = vsel %vm5048_vm14, 4294967295, %v7222_v37  ;;  %3844 = vmatpush.msk.msrb.mxu1 %vm7227_vm0, %v7137_v32  ;;  %v858_v49 = vsub.f32 %v5026_v19, %v5046_v7  ;;  %v403_v55 = vsub.f32 %v45_v21, %v5055_v44  ;;  %vm5097_vm0 = vmand %vm116_vm1, %vm166_vm7  ;;  %3866 = vmatpush.msk.msrb.mxu2 %vm5048_vm14, %v7137_v32 }
  0x70   :  { %7202 = vst [vmem:[#allocation103_spill] sm:$0xff] %v4961_v13  ;;  %v5013_v13 = vsub.f32 %v3773_v27, %v3773_v27  ;;  %v398_v27 = vand.u32 4294901760, %v397_v15  ;;  %v7218_v26 = vsel %vm5033_vm4, 4294967295, %v7217_v26  ;;  %v3771_v15 = vsel %vm5033_vm4, 1.0, %v7136_v23  ;;  %848 = vmatpush.msrb.mxu3 %v5060_v43  ;;  %512 = vmatmul.f32.gmra.mxu1 %v5055_v44 }
  0x71   :  { %7203 = vst [vmem:[#allocation104_spill] sm:$0xff] %v4963_v34  ;;  %v5064_v31 = vsub.f32 %v3771_v15, %v3771_v15  ;;  %3845 = vmatpush.msk.msrb.mxu1 %vm7230_vm5, %v7137_v32  ;;  %v7233_v25 = vsel %vm5097_vm0, 4294967295, %v7232_v25  ;;  %v3769_v59 = vsel %vm5097_vm0, 1.0, %v7136_v23  ;;  %vm7239_vm1 = vnez %v7105_v63  ;;  %571 = vmatmul.f32.gmra.mxu2 %v403_v55 }
  0x72   :  { %7204 = vst [vmem:[#allocation105_spill] sm:$0xff] %v4977_v47  ;;  %v5031_v46 = vand.u32 4294901760, %v5013_v13  ;;  %v43_v47 = vld [vmem:[#allocation2 + $0x8] sm:$0xff]  ;;  %399 = vmatmul.f32.vlgmr.msra.gmra.mxu0 %v398_v27  ;;  %v5115_v50 = vsub.f32 %v3769_v59, %v3769_v59  ;;  %vm7242_vm7 = vnez %v7111_v12  ;;  %3867 = vmatpush.msk.msrb.mxu2 %vm5097_vm0, %v7137_v32  ;;  %vm7249_vm5 = vnez %v7132_v42 }
  0x73   :  { %7207 = vst [vmem:[#allocation106_spill] sm:$0xff] %v7206_v56  ;;  %v5082_v15 = vand.u32 4294901760, %v5064_v31  ;;  %v5087_v53 = vand.u32 4294901760, %v43_v47  ;;  %v5113_v56 = vand.u32 4294901760, %v858_v49  ;;  %3846 = vmatpush.msk.msrb.mxu1 %vm7239_vm1, %v7137_v32  ;;  %890 = vmatpush.msra.mxu0 %v4695_v62  ;;  %vm7243_vm1 = vnez %v7118_v28 }
  0x74   :  { %7208 = vst [vmem:[#allocation107_spill] sm:$0xff] %v4986_v29  ;;  %v852_v38 = vsub.f32 %v5013_v13, %v5031_v46  ;;  %v3770_v29 = vsel %vm5048_vm14, 1.0, %v7136_v23  ;;  %995 = vmatpush.msra.mxu2 %v4720_v18  ;;  %v85_v62 = vadd.s32 288, %v4236_v1 }
  0x75   :  { %7211 = vst [vmem:[#allocation108_spill] sm:$0xff] %v7210_v6  ;;  %3847 = vmatpush.msk.msrb.mxu1 %vm7242_vm7, %v7137_v32  ;;  %893 = vmatpush.msra.mxu0 %v4744_v41  ;;  %vm7245_vm7 = vnez %v7123_v57  ;;  %v7291_v41 = vmov 0 }
  0x76   :  { %7212 = vst [vmem:[#allocation109_spill] sm:$0xff] %v5009_v33  ;;  %v5085_v33 = vsub.f32 %v3770_v29, %v3770_v29  ;;  %v5095_v21 = vand.u32 4294901760, %v852_v38  ;;  %v864_v29 = vsub.f32 %v5064_v31, %v5082_v15  ;;  %v7236_v38 = vand.u32 4294901760, %v4947_v30  ;;  %999 = vmatpush.msra.mxu2 %v4762_v40 }
  0x77   :  { %7213 = vst [vmem:[#allocation110_spill] sm:$0xff] %v5013_v13  ;;  %v5126_v30 = vsub.f32 %v43_v47, %v5087_v53  ;;  %3848 = vmatpush.msk.msrb.mxu1 %vm7243_vm1, %v7137_v32  ;;  %896 = vmatpush.msra.mxu0 %v4756_v45  ;;  %vm7248_vm1 = vnez %v7141_v24 }
  0x78   :  { %7215 = vst [vmem:[#allocation111_spill] sm:$0xff] %v5026_v19  ;;  %v5105_v20 = vand.u32 4294901760, %v5085_v33  ;;  %610 = vmatmul.f32.vlgmr.msra.gmra.mxu3 %v7236_v38  ;;  %v5130_v59 = vand.u32 4294901760, %v864_v29  ;;  %v5133_v38 = vand.u32 4294901760, %v5115_v50  ;;  %1003 = vmatpush.msra.mxu2 %v4773_v60 }
  0x79   :  { %7216 = vst [vmem:[#allocation112_spill] sm:$0xff] %v5031_v46  ;;  %854 = vmatpush.msrb.mxu3 %v5095_v21  ;;  %v6881_v36 = vand.u32 4294901760, %v5126_v30  ;;  %3849 = vmatpush.msk.msrb.mxu1 %vm7245_vm7, %v7137_v32  ;;  %vm7247_vm7 = vnez %v7127_v9 }
  0x7a   :  { %7219 = vst [vmem:[#allocation113_spill] sm:$0xff] %v7218_v26  ;;  %v870_v27 = vsub.f32 %v5085_v33, %v5105_v20  ;;  %v876_v47 = vsub.f32 %v5115_v50, %v5133_v38  ;;  %899 = vmatpush.msra.mxu0 %v4788_v58  ;;  %1007 = vmatpush.msra.mxu2 %v4814_v54  ;;  %v7286_v54 = vmov 0 }
  0x7b   :  { %7221 = vst [vmem:[#allocation114_spill] sm:$0xff] %v5046_v7  ;;  %v404_v7 = vand.u32 4294901760, %v403_v55  ;;  %860 = vmatpush.msrb.mxu3 %v5113_v56  ;;  %3850 = vmatpush.msk.msrb.mxu1 %vm7247_vm7, %v7137_v32 }
  0x7c   :  { %7224 = vst [vmem:[#allocation115_spill] sm:$0xff] %v7223_v37  ;;  %v5149_v29 = vand.u32 4294901760, %v870_v27  ;;  %v5163_v27 = vand.u32 4294901760, %v876_v47  ;;  %v46_v47 = vld [vmem:[#allocation2 + $0x20] sm:$0xff]  ;;  %902 = vmatpush.msra.mxu0 %v4802_v52  ;;  %1011 = vmatpush.msra.mxu2 %v4823_v39  ;;  %v7274_v52 = vmov 0 }
  0x7d   :  { %7225 = vst [vmem:[#allocation116_spill] sm:$0xff] %v5060_v43  ;;  %v405_v49 = vsub.f32 %v403_v55, %v404_v7  ;;  %866 = vmatpush.msrb.mxu3 %v5130_v59  ;;  %3851 = vmatpush.msk.msrb.mxu1 %vm7249_vm5, %v7137_v32  ;;  %v7321_v43 = vmov 0 }
  0x7e   :  { %7226 = vst [vmem:[#allocation117_spill] sm:$0xff] %v5064_v31  ;;  %905 = vmatpush.msra.mxu0 %v4829_v51  ;;  %726 = vmatmul.f32.vlgmr.msrb.gmra.mxu1 %v4923_v0 }
  0x7f   :  { %7228 = vst [vmem:[#allocation118_spill] sm:$0xff] %v5082_v15  ;;  %v406_v3 = vand.u32 4294901760, %v405_v49  ;;  %872 = vmatpush.msrb.mxu3 %v5149_v29  ;;  %v769_v49 = vsub.f32 %v5126_v30, %v6881_v36  ;;  %3868 = vmatpush.msk.msra.mxu1 %vm7248_vm1, %v7137_v32  ;;  %v7251_v36 = vld [vmem:[#allocation91_spill] sm:$0xff] }
  0x80   :  { %7229 = vst [vmem:[#allocation119_spill] sm:$0xff] %v5085_v33  ;;  %616 = vmatmul.f32.gmra.mxu3 %v404_v7  ;;  %908 = vmatpush.msra.mxu0 %v4854_v61  ;;  %v7255_v61 = vld [vmem:[#allocation87_spill] sm:$0xff] }
  0x81   :  { %7231 = vst [vmem:[#allocation120_spill] sm:$0xff] %v5095_v21  ;;  %407 = vmatmul.f32.gmra.mxu0 %v406_v3  ;;  %878 = vmatpush.msrb.mxu3 %v5163_v27  ;;  %v770_v55 = vand.u32 4294901760, %v769_v49  ;;  %v5192_v3 = vand.u32 4294901760, %v46_v47  ;;  %v96_v49 = vadd.s32 376, %v4236_v1 }
  0x82   :  { %7234 = vst [vmem:[#allocation121_spill] sm:$0xff] %v7233_v25  ;;  %3869 = vmatpush.msk.msra.mxu1 %vm4715_vm8, %v7137_v32  ;;  %911 = vmatpush.msra.mxu0 %v4883_v10  ;;  %v7253_v10 = vld [vmem:[#allocation95_spill] sm:$0xff]  ;;  %v83_v25 = vadd.s32 272, %v4236_v1 }
  0x83   :  { %7235 = vst [vmem:[#allocation122_spill] sm:$0xff] %v5105_v20  ;;  %3884 = vmatpush.msk.msra.mxu3 %vm7248_vm1, %v7137_v32  ;;  %771 = vmatmul.f32.vlgmr.msrb.gmra.mxu2 %v770_v55  ;;  %vm7250_vm1 = vnez %v7153_v17  ;;  %v5206_v7 = vsub.f32 %v46_v47, %v5192_v3  ;;  %v95_v47 = vadd.s32 368, %v4236_v1 }
  0x84   :  { %7237 = vst [vmem:[#allocation123_spill] sm:$0xff] %v5113_v56  ;;  %3870 = vmatpush.msk.msra.mxu1 %vm7250_vm1, %v7137_v32  ;;  %1015 = vmatpush.msra.mxu2 %v4848_v14  ;;  %v91_v14 = vadd.s32 336, %v4236_v1 }
  0x85   :  { %7238 = vst [vmem:[#allocation124_spill] sm:$0xff] %v5115_v50  ;;  %3885 = vmatpush.msk.msra.mxu3 %vm4715_vm8, %v7137_v32  ;;  %v6895_v55 = vand.u32 4294901760, %v5206_v7  ;;  %914 = vmatpush.msra.mxu0 %v4910_v2  ;;  %vm196_vm8 = vcmp.lt.s32.totalorder %v95_v47, %v4251_v11 }
  0x86   :  { %7240 = vst [vmem:[#allocation125_spill] sm:$0xff] %v5130_v59  ;;  %3871 = vmatpush.msk.msra.mxu1 %vm4764_vm9, %v7137_v32  ;;  %1019 = vmatpush.msra.mxu2 %v7251_v36  ;;  %v7268_v36 = vmov 0 }
  0x87   :  { %7241 = vst [vmem:[#allocation126_spill] sm:$0xff] %v5133_v38  ;;  %3886 = vmatpush.msk.msra.mxu3 %vm7250_vm1, %v7137_v32  ;;  %917 = vmatpush.msra.mxu0 %v4938_v5  ;;  %vm197_vm1 = vcmp.lt.s32.totalorder %v96_v49, %v4251_v11  ;;  %v777_v2 = vsub.f32 %v5206_v7, %v6895_v55  ;;  %v94_v5 = vadd.s32 360, %v4236_v1  ;;  %v7257_v55 = vmov 0 }
  0x88   :  { %7244 = vst [vmem:[#allocation127_spill] sm:$0xff] %v5149_v29  ;;  %880 = vmatmul.f32.vlgmr.msrb.gmra.mxu3 %v5087_v53  ;;  %3872 = vmatpush.msk.msra.mxu1 %vm4775_vm12, %v7137_v32 }
  0x89   :  { %7246 = vst [vmem:[#allocation128_spill] sm:$0xff] %v5163_v27  ;;  %685 = vmatmul.f32.vlgmr.msrb.gmra.mxu0 %v4923_v0  ;;  %3887 = vmatpush.msk.msra.mxu3 %vm4764_vm9, %v7137_v32  ;;  %v7252_v0 = vld [vmem:[#allocation78_spill] sm:$0xff]  ;;  %vm147_vm9 = vcmp.ge.s32.totalorder %v96_v49, %v4242_v4  ;;  %v7254_v49 = vld [vmem:[#allocation99_spill] sm:$0xff]  ;;  %v7296_v27 = vmov 0 }
  0x8a   :  { %1023 = vmatpush.msra.mxu2 %v7253_v10  ;;  %3873 = vmatpush.msk.msra.mxu1 %vm4790_vm11, %v7137_v32  ;;  %v93_v10 = vadd.s32 352, %v4236_v1  ;;  %vm5260_vm5 = vmand %vm147_vm9, %vm197_vm1  ;;  %vm145_vm9 = vcmp.ge.s32.totalorder %v94_v5, %v4242_v4  ;;  %vm195_vm1 = vcmp.lt.s32.totalorder %v94_v5, %v4251_v11  ;;  %v7263_v5 = vld [vmem:[#allocation107_spill] sm:$0xff] }
  0x8b   :  { %3888 = vmatpush.msk.msra.mxu3 %vm4775_vm12, %v7137_v32  ;;  %vm146_vm12 = vcmp.ge.s32.totalorder %v95_v47, %v4242_v4  ;;  %920 = vmatpush.msra.mxu0 %v4963_v34  ;;  %v7258_v55 = vsel %vm5260_vm5, 4294967295, %v7257_v55  ;;  %v7259_v47 = vld [vmem:[#allocation103_spill] sm:$0xff]  ;;  %v7260_v34 = vmov 0 }
  0x8c   :  { %1027 = vmatpush.msra.mxu2 %v7254_v49  ;;  %3874 = vmatpush.msk.msra.mxu1 %vm4825_vm6, %v7137_v32  ;;  %vm5266_vm7 = vmand %vm146_vm12, %vm196_vm8  ;;  %v778_v49 = vand.u32 4294901760, %v777_v2  ;;  %vm144_vm8 = vcmp.ge.s32.totalorder %v93_v10, %v4242_v4  ;;  %vm194_vm12 = vcmp.lt.s32.totalorder %v93_v10, %v4251_v11  ;;  %v92_v2 = vadd.s32 344, %v4236_v1 }
  0x8d   :  { %3889 = vmatpush.msk.msra.mxu3 %vm4790_vm11, %v7137_v32  ;;  %vm7256_vm11 = vnez %v7255_v61  ;;  %923 = vmatpush.msra.mxu0 %v5013_v13  ;;  %v7261_v34 = vsel %vm5266_vm7, 4294967295, %v7260_v34  ;;  %v3800_v13 = vsel %vm5260_vm5, 1.0, %v7136_v23  ;;  %v7265_v10 = vmov 0 }
  0x8e   :  { %1031 = vmatpush.msra.mxu2 %v7259_v47  ;;  %3875 = vmatpush.msk.msra.mxu1 %vm7256_vm11, %v7137_v32  ;;  %v7329_v47 = vand.u32 4294901760, %v5206_v7 }
  0x8f   :  { %3890 = vmatpush.msk.msra.mxu3 %vm4825_vm6, %v7137_v32  ;;  %vm7262_vm6 = vnez %v7186_v22  ;;  %926 = vmatpush.msra.mxu0 %v5026_v19  ;;  %v3799_v19 = vsel %vm5266_vm7, 1.0, %v7136_v23  ;;  %v47_v22 = vld [vmem:[#allocation2 + $0x28] sm:$0xff] }
  0x90   :  { %3876 = vmatpush.msk.msra.mxu1 %vm7262_vm6, %v7137_v32  ;;  %1035 = vmatpush.msra.mxu2 %v7263_v5  ;;  %v5305_v5 = vsub.f32 %v3800_v13, %v3800_v13 }
  0x91   :  { %3891 = vmatpush.msk.msra.mxu3 %vm7256_vm11, %v7137_v32  ;;  %689 = vmatmul.f32.gmra.mxu0 %v5055_v44  ;;  %vm5297_vm11 = vmand %vm145_vm9, %vm195_vm1  ;;  %vm143_vm9 = vcmp.ge.s32.totalorder %v92_v2, %v4242_v4  ;;  %vm193_vm1 = vcmp.lt.s32.totalorder %v92_v2, %v4251_v11 }
  0x92   :  { %929 = vmatpush.msra.mxu0 %v5064_v31  ;;  %v7266_v10 = vsel %vm5297_vm11, 4294967295, %v7265_v10  ;;  %3877 = vmatpush.msk.msra.mxu1 %vm4906_vm13, %v7137_v32  ;;  %7267 = vst [vmem:[#allocation78_spill] sm:$0xff] %v5305_v5  ;;  %v5314_v31 = vsub.f32 %v3799_v19, %v3799_v19  ;;  %v3798_v13 = vsel %vm5297_vm11, 1.0, %v7136_v23  ;;  %v7272_v19 = vld [vmem:[#allocation114_spill] sm:$0xff] }
  0x93   :  { %3892 = vmatpush.msk.msra.mxu3 %vm7262_vm6, %v7137_v32  ;;  %1039 = vmatpush.msra.mxu2 %v5031_v46  ;;  %vm5307_vm6 = vmand %vm144_vm8, %vm194_vm12  ;;  %v5348_v39 = vsub.f32 %v3798_v13, %v3798_v13  ;;  %v88_v13 = vadd.s32 312, %v4236_v1  ;;  %v81_v46 = vadd.s32 256, %v4236_v1 }
  0x94   :  { %v7269_v36 = vsel %vm5307_vm6, 4294967295, %v7268_v36  ;;  %779 = vmatmul.f32.gmra.mxu2 %v778_v49  ;;  %7271 = vst [vmem:[#allocation129_spill] sm:$0xff] %v5314_v31  ;;  %932 = vmatpush.msra.mxu0 %v5085_v33  ;;  %v90_v49 = vadd.s32 328, %v4236_v1  ;;  %v3797_v2 = vsel %vm5307_vm6, 1.0, %v7136_v23  ;;  %v89_v33 = vadd.s32 320, %v4236_v1  ;;  %vm5337_vm8 = vmand %vm143_vm9, %vm193_vm1 }
  0x95   :  { %3893 = vmatpush.msk.msra.mxu3 %vm4906_vm13, %v7137_v32  ;;  %3878 = vmatpush.msk.msra.mxu1 %vm4934_vm10, %v7137_v32  ;;  %v7275_v52 = vsel %vm5337_vm8, 4294967295, %v7274_v52  ;;  %7277 = vst [vmem:[#allocation131_spill] sm:$0xff] %v5348_v39  ;;  %v5359_v58 = vsub.f32 %v3797_v2, %v3797_v2  ;;  %vm7280_vm9 = vcmp.lt.s32.totalorder %v91_v14, %v4251_v11  ;;  %v87_v2 = vadd.s32 304, %v4236_v1 }
  0x96   :  { %1043 = vmatpush.msra.mxu2 %v7272_v19  ;;  %884 = vmatmul.f32.gmra.mxu3 %v5192_v3  ;;  %v5342_v19 = vand.u32 4294901760, %v5305_v5  ;;  %vm7281_vm1 = vcmp.ge.s32.totalorder %v91_v14, %v4242_v4  ;;  %v5405_v45 = vand.u32 4294901760, %v5348_v39 }
  0x97   :  { %3894 = vmatpush.msk.msra.mxu3 %vm4934_vm10, %v7137_v32  ;;  %935 = vmatpush.msra.mxu0 %v5115_v50  ;;  %v5353_v50 = vand.u32 4294901760, %v5314_v31  ;;  %7279 = vst [vmem:[#allocation133_spill] sm:$0xff] %v5359_v58  ;;  %vm190_vm10 = vcmp.lt.s32.totalorder %v89_v33, %v4251_v11 }
  0x98   :  { %7276 = vst [vmem:[#allocation130_spill] sm:$0xff] %v5342_v19  ;;  %3879 = vmatpush.msk.msra.mxu1 %vm4981_vm3, %v7137_v32  ;;  %1047 = vmatpush.msra.mxu2 %v5082_v15  ;;  %v3796_v15 = vsel %vm5337_vm8, 1.0, %v7136_v23 }
  0x99   :  { %3895 = vmatpush.msk.msra.mxu3 %vm4981_vm3, %v7137_v32  ;;  %938 = vmatmul.f32.vlgmr.msra.gmra.mxu0 %v5126_v30  ;;  %7278 = vst [vmem:[#allocation132_spill] sm:$0xff] %v5353_v50  ;;  %vm5381_vm3 = vmand %vm7281_vm1, %vm7280_vm9  ;;  %v1164_v14 = vsub.f32 %v5314_v31, %v5353_v50  ;;  %vm7284_vm9 = vcmp.lt.s32.totalorder %v90_v49, %v4251_v11 }
  0x9a   :  { %3900 = vmatpush.msk.msrb.mxu0 %vm5260_vm5, %v7137_v32  ;;  %730 = vmatmul.f32.gmra.mxu1 %v5055_v44  ;;  %v7282_v44 = vmov 0  ;;  %vm7285_vm1 = vcmp.ge.s32.totalorder %v90_v49, %v4242_v4  ;;  %7288 = vst [vmem:[#allocation134_spill] sm:$0xff] %v5405_v45  ;;  %v5411_v60 = vsub.f32 %v3796_v15, %v3796_v15  ;;  %v5420_v49 = vand.u32 4294901760, %v5359_v58 }
  0x9b   :  { %3896 = vmatpush.msk.msra.mxu3 %vm4998_vm15, %v7137_v32  ;;  %3880 = vmatpush.msk.msra.mxu1 %vm4998_vm15, %v7137_v32  ;;  %v7283_v44 = vsel %vm5381_vm3, 4294967295, %v7282_v44  ;;  %vm5400_vm12 = vmand %vm7285_vm1, %vm7284_vm9  ;;  %vm7290_vm15 = vcmp.ge.s32.totalorder %v89_v33, %v4242_v4  ;;  %vm139_vm9 = vcmp.ge.s32.totalorder %v88_v13, %v4242_v4  ;;  %vm189_vm1 = vcmp.lt.s32.totalorder %v88_v13, %v4251_v11 }
  0x9c   :  { %1051 = vmatpush.msra.mxu2 %v5105_v20  ;;  %3901 = vmatpush.msk.msrb.mxu0 %vm5266_vm7, %v7137_v32  ;;  %v1158_v20 = vsub.f32 %v5305_v5, %v5342_v19  ;;  %v7287_v54 = vsel %vm5400_vm12, 4294967295, %v7286_v54  ;;  %7289 = vst [vmem:[#allocation135_spill] sm:$0xff] %v5411_v60  ;;  %vm5415_vm13 = vmand %vm7290_vm15, %vm190_vm10  ;;  %v3795_v33 = vsel %vm5381_vm3, 1.0, %v7136_v23  ;;  %v86_v15 = vadd.s32 296, %v4236_v1 }
  0x9d   :  { %3897 = vmatpush.msk.msra.mxu3 %vm5033_vm4, %v7137_v32  ;;  %3881 = vmatpush.msk.msra.mxu1 %vm5033_vm4, %v7137_v32  ;;  %v7292_v41 = vsel %vm5415_vm13, 4294967295, %v7291_v41  ;;  %7293 = vst [vmem:[#allocation136_spill] sm:$0xff] %v5420_v49  ;;  %vm138_vm10 = vcmp.ge.s32.totalorder %v87_v2, %v4242_v4  ;;  %vm188_vm15 = vcmp.lt.s32.totalorder %v87_v2, %v4251_v11  ;;  %v5450_v18 = vand.u32 4294901760, %v1164_v14 }
  0x9e   :  { %1055 = vmatpush.msra.mxu2 %v5133_v38  ;;  %3902 = vmatpush.msk.msrb.mxu0 %vm5297_vm11, %v7137_v32  ;;  %v3794_v38 = vsel %vm5400_vm12, 1.0, %v7136_v23  ;;  %v5448_v40 = vand.u32 4294901760, %v1158_v20  ;;  %v1170_v20 = vsub.f32 %v5348_v39, %v5405_v45  ;;  %v1176_v13 = vsub.f32 %v5359_v58, %v5420_v49 }
  0x9f   :  { %3898 = vmatpush.msk.msra.mxu3 %vm5048_vm14, %v7137_v32  ;;  %1057 = vmatmul.f32.vlgmr.msra.gmra.mxu2 %v5087_v53  ;;  %7295 = vst [vmem:[#allocation138_spill] sm:$0xff] %v5450_v18  ;;  %v5471_v14 = vsub.f32 %v3795_v33, %v3795_v33  ;;  %v5474_v37 = vand.u32 4294901760, %v5411_v60  ;;  %v5480_v29 = vsub.f32 %v3794_v38, %v3794_v38  ;;  %v84_v33 = vadd.s32 280, %v4236_v1 }
  0xa0   :  { %3882 = vmatpush.msk.msra.mxu1 %vm5048_vm14, %v7137_v32  ;;  %1262 = vmatpush.msrb.mxu2 %v5305_v5  ;;  %7294 = vst [vmem:[#allocation137_spill] sm:$0xff] %v5448_v40  ;;  %vm5456_vm14 = vmand %vm139_vm9, %vm189_vm1  ;;  %v3793_v5 = vsel %vm5415_vm13, 1.0, %v7136_v23  ;;  %vm137_vm1 = vcmp.ge.s32.totalorder %v86_v15, %v4242_v4  ;;  %vm187_vm4 = vcmp.lt.s32.totalorder %v86_v15, %v4251_v11  ;;  %v82_v15 = vadd.s32 264, %v4236_v1 }
  0xa1   :  { %3899 = vmatpush.msk.msra.mxu3 %vm5097_vm0, %v7137_v32  ;;  %v7297_v27 = vsel %vm5456_vm14, 4294967295, %v7296_v27  ;;  %3903 = vmatpush.msk.msrb.mxu0 %vm5307_vm6, %v7137_v32  ;;  %7298 = vst [vmem:[#allocation139_spill] sm:$0xff] %v5471_v14  ;;  %vm5486_vm9 = vmand %vm138_vm10, %vm188_vm15  ;;  %v5499_v38 = vsub.f32 %v3793_v5, %v3793_v5  ;;  %v3792_v2 = vsel %vm5456_vm14, 1.0, %v7136_v23  ;;  %vm136_vm10 = vcmp.ge.s32.totalorder %v85_v62, %v4242_v4 }
  0xa2   :  { %1098 = vmatmul.f32.vlgmr.msra.gmra.mxu3 %v5087_v53  ;;  %7299 = vst [vmem:[#allocation140_spill] sm:$0xff] %v5474_v37  ;;  %1265 = vmatpush.msrb.mxu2 %v5314_v31  ;;  %v7301_v53 = vmov 0  ;;  %vm186_vm15 = vcmp.lt.s32.totalorder %v85_v62, %v4251_v11  ;;  %v7304_v31 = vand.u32 4294901760, %v5126_v30  ;;  %v5514_v5 = vand.u32 4294901760, %v1170_v20 }
  0xa3   :  { %3916 = vmatpush.msk.msrb.mxu3 %vm5260_vm5, %v7137_v32  ;;  %7300 = vst [vmem:[#allocation141_spill] sm:$0xff] %v5480_v29  ;;  %v7302_v53 = vsel %vm5486_vm9, 4294967295, %v7301_v53  ;;  %3883 = vmatpush.msk.msra.mxu1 %vm5097_vm0, %v7137_v32  ;;  %v5517_v26 = vand.u32 4294901760, %v5471_v14  ;;  %vm5523_vm0 = vmand %vm137_vm1, %vm187_vm4  ;;  %v7307_v62 = vmov 0  ;;  %v5534_v30 = vsub.f32 %v3792_v2, %v3792_v2 }
  0xa4   :  { %3904 = vmatpush.msk.msrb.mxu0 %vm5337_vm8, %v7137_v32  ;;  %7303 = vst [vmem:[#allocation142_spill] sm:$0xff] %v5499_v38  ;;  %982 = vmatmul.f32.vlgmr.msra.gmra.mxu1 %v7304_v31  ;;  %v7308_v62 = vsel %vm5523_vm0, 4294967295, %v7307_v62  ;;  %v3791_v31 = vsel %vm5486_vm9, 1.0, %v7136_v23  ;;  %vm5536_vm2 = vmand %vm136_vm10, %vm186_vm15  ;;  %v7310_v20 = vmov 0  ;;  %vm135_vm4 = vcmp.ge.s32.totalorder %v84_v33, %v4242_v4 }
  0xa5   :  { %1268 = vmatpush.msrb.mxu2 %v5348_v39  ;;  %1160 = vmatpush.msrb.mxu1 %v5448_v40  ;;  %7305 = vst [vmem:[#allocation143_spill] sm:$0xff] %v5514_v5  ;;  %v7311_v20 = vsel %vm5536_vm2, 4294967295, %v7310_v20  ;;  %vm185_vm1 = vcmp.lt.s32.totalorder %v84_v33, %v4251_v11  ;;  %v44_v39 = vld [vmem:[#allocation2 + $0x10] sm:$0xff]  ;;  %v1182_v2 = vsub.f32 %v5411_v60, %v5474_v37  ;;  %v5552_v40 = vand.u32 4294901760, %v5480_v29 }
  0xa6   :  { %3917 = vmatpush.msk.msrb.mxu3 %vm5266_vm7, %v7137_v32  ;;  %7306 = vst [vmem:[#allocation144_spill] sm:$0xff] %v5517_v26  ;;  %3905 = vmatpush.msk.msrb.mxu0 %vm5381_vm3, %v7137_v32  ;;  %v5555_v59 = vand.u32 4294901760, %v5499_v38  ;;  %vm134_vm10 = vcmp.ge.s32.totalorder %v83_v25, %v4242_v4  ;;  %vm184_vm15 = vcmp.lt.s32.totalorder %v83_v25, %v4251_v11  ;;  %v3789_v56 = vsel %vm5536_vm2, 1.0, %v7136_v23 }
  0xa7   :  { %1271 = vmatpush.msrb.mxu2 %v5359_v58  ;;  %7309 = vst [vmem:[#allocation145_spill] sm:$0xff] %v5534_v30  ;;  %1166 = vmatpush.msrb.mxu1 %v5450_v18  ;;  %v5547_v58 = vand.u32 4294901760, %v1176_v13  ;;  %v5561_v18 = vsub.f32 %v3791_v31, %v3791_v31  ;;  %v3790_v13 = vsel %vm5523_vm0, 1.0, %v7136_v23  ;;  %v1188_v6 = vsub.f32 %v5471_v14, %v5517_v26 }
  0xa8   :  { %3918 = vmatpush.msk.msrb.mxu3 %vm5297_vm11, %v7137_v32  ;;  %7313 = vst [vmem:[#allocation147_spill] sm:$0xff] %v5552_v40  ;;  %3906 = vmatpush.msk.msrb.mxu0 %vm5400_vm12, %v7137_v32  ;;  %vm5576_vm11 = vmand %vm135_vm4, %vm185_vm1  ;;  %v7316_v31 = vmov 0  ;;  %v5584_v21 = vand.u32 4294901760, %v44_v39  ;;  %v5591_v33 = vand.u32 4294901760, %v5534_v30  ;;  %vm183_vm1 = vcmp.lt.s32.totalorder %v82_v15, %v4251_v11 }
  0xa9   :  { %7312 = vst [vmem:[#allocation146_spill] sm:$0xff] %v5547_v58  ;;  %1061 = vmatmul.f32.gmra.mxu2 %v5192_v3  ;;  %943 = vmatmul.f32.gmra.mxu0 %v5206_v7  ;;  %v7317_v31 = vsel %vm5576_vm11, 4294967295, %v7316_v31  ;;  %v5603_v51 = vsub.f32 %v3790_v13, %v3790_v13  ;;  %vm5609_vm4 = vmand %vm134_vm10, %vm184_vm15  ;;  %v5620_v13 = vsub.f32 %v3789_v56, %v3789_v56  ;;  %v3788_v25 = vsel %vm5576_vm11, 1.0, %v7136_v23 }
  0xaa   :  { %7314 = vst [vmem:[#allocation148_spill] sm:$0xff] %v5555_v59  ;;  %1172 = vmatpush.msrb.mxu1 %v5514_v5  ;;  %1274 = vmatpush.msrb.mxu2 %v5411_v60  ;;  %v5599_v5 = vand.u32 4294901760, %v1182_v2  ;;  %v1194_v60 = vsub.f32 %v5480_v29, %v5552_v40  ;;  %v7322_v43 = vsel %vm5609_vm4, 4294967295, %v7321_v43  ;;  %v5618_v2 = vand.u32 4294901760, %v5561_v18 }
  0xab   :  { %7315 = vst [vmem:[#allocation149_spill] sm:$0xff] %v5561_v18  ;;  %3919 = vmatpush.msk.msrb.mxu3 %vm5307_vm6, %v7137_v32  ;;  %3907 = vmatpush.msk.msrb.mxu0 %vm5415_vm13, %v7137_v32  ;;  %vm7326_vm10 = vcmp.ge.s32.totalorder %v82_v15, %v4242_v4  ;;  %v7327_v56 = vmov 0  ;;  %vm132_vm6 = vcmp.ge.s32.totalorder %v81_v46, %v4242_v4  ;;  %v3787_v15 = vsel %vm5609_vm4, 1.0, %v7136_v23 }
  0xac   :  { %7318 = vst [vmem:[#allocation150_spill] sm:$0xff] %v5591_v33  ;;  %1102 = vmatmul.f32.gmra.mxu3 %v5192_v3  ;;  %1178 = vmatpush.msrb.mxu1 %v5547_v58  ;;  %v1200_v3 = vsub.f32 %v5499_v38, %v5555_v59  ;;  %vm5637_vm15 = vmand %vm7326_vm10, %vm183_vm1  ;;  %vm182_vm7 = vcmp.lt.s32.totalorder %v81_v46, %v4251_v11  ;;  %v5661_v7 = vand.u32 4294901760, %v5603_v51  ;;  %v5690_v11 = vand.u32 4294901760, %v5620_v13 }
  0xad   :  { %7319 = vst [vmem:[#allocation151_spill] sm:$0xff] %v5599_v5  ;;  %1277 = vmatpush.msrb.mxu2 %v5471_v14  ;;  %3920 = vmatpush.msk.msrb.mxu3 %vm5337_vm8, %v7137_v32  ;;  %v5631_v14 = vand.u32 4294901760, %v1188_v6  ;;  %v7328_v56 = vsel %vm5637_vm15, 4294967295, %v7327_v56  ;;  %v5644_v58 = vsub.f32 %v44_v39, %v5584_v21  ;;  %v1206_v6 = vsub.f32 %v5534_v30, %v5591_v33  ;;  %vm5677_vm1 = vmand %vm132_vm6, %vm182_vm7 }
  0xae   :  { %7320 = vst [vmem:[#allocation152_spill] sm:$0xff] %v5603_v51  ;;  %3908 = vmatpush.msk.msrb.mxu0 %vm5456_vm14, %v7137_v32  ;;  %988 = vmatmul.f32.gmra.mxu1 %v7329_v47  ;;  %v5658_v39 = vand.u32 4294901760, %v1194_v60  ;;  %v5663_v47 = vsub.f32 %v3788_v25, %v3788_v25  ;;  %v7334_v60 = vmov 0  ;;  %v3786_v25 = vsel %vm5637_vm15, 1.0, %v7136_v23 }
  0xaf   :  { %7323 = vst [vmem:[#allocation153_spill] sm:$0xff] %v5618_v2  ;;  %1280 = vmatpush.msrb.mxu2 %v5480_v29  ;;  %1184 = vmatpush.msrb.mxu1 %v5599_v5  ;;  %v5669_v29 = vand.u32 4294901760, %v1200_v3  ;;  %v1212_v5 = vsub.f32 %v5561_v18, %v5618_v2  ;;  %v7335_v60 = vsel %vm5677_vm1, 4294967295, %v7334_v60  ;;  %v5692_v4 = vsub.f32 %v3787_v15, %v3787_v15 }
  0xb0   :  { %7324 = vst [vmem:[#allocation154_spill] sm:$0xff] %v5620_v13  ;;  %3921 = vmatpush.msk.msrb.mxu3 %vm5381_vm3, %v7137_v32  ;;  %3909 = vmatpush.msk.msrb.mxu0 %vm5486_vm9, %v7137_v32  ;;  %v5694_v46 = vand.u32 4294901760, %v47_v22  ;;  %v1218_v15 = vsub.f32 %v5603_v51, %v5661_v7  ;;  %v5709_v3 = vand.u32 4294901760, %v5663_v47  ;;  %v1224_v61 = vsub.f32 %v5620_v13, %v5690_v11 }
  0xb1   :  { %7325 = vst [vmem:[#allocation155_spill] sm:$0xff] %v5631_v14  ;;  %1283 = vmatpush.msrb.mxu2 %v5499_v38  ;;  %1190 = vmatpush.msrb.mxu1 %v5631_v14  ;;  %v5700_v38 = vand.u32 4294901760, %v1206_v6  ;;  %v5711_v14 = vsub.f32 %v3786_v25, %v3786_v25  ;;  %v5720_v6 = vand.u32 4294901760, %v1212_v5  ;;  %v7341_v25 = vand.u32 4294901760, %v5644_v58 }
  0xb2   :  { %7330 = vst [vmem:[#allocation156_spill] sm:$0xff] %v5658_v39  ;;  %3922 = vmatpush.msk.msrb.mxu3 %vm5400_vm12, %v7137_v32  ;;  %3910 = vmatpush.msk.msrb.mxu0 %vm5523_vm0, %v7137_v32  ;;  %v5732_v16 = vand.u32 4294901760, %v5692_v4  ;;  %vm7348_vm6 = vnez %v7261_v34  ;;  %vm7349_vm7 = vnez %v7266_v10  ;;  %vm7350_vm10 = vnez %v7269_v36 }
  0xb3   :  { %7331 = vst [vmem:[#allocation157_spill] sm:$0xff] %v5661_v7  ;;  %1286 = vmatpush.msrb.mxu2 %v5534_v30  ;;  %1196 = vmatpush.msrb.mxu1 %v5658_v39  ;;  %v3785_v30 = vsel %vm5677_vm1, 1.0, %v7136_v23  ;;  %v1141_v39 = vsub.f32 %v5644_v58, %v7341_v25  ;;  %v5745_v25 = vand.u32 4294901760, %v1218_v15  ;;  %v5760_v15 = vand.u32 4294901760, %v1224_v61 }
  0xb4   :  { %7332 = vst [vmem:[#allocation158_spill] sm:$0xff] %v5663_v47  ;;  %3923 = vmatpush.msk.msrb.mxu3 %vm5415_vm13, %v7137_v32  ;;  %3911 = vmatpush.msk.msrb.mxu0 %vm5536_vm2, %v7137_v32  ;;  %v5739_v5 = vsub.f32 %v3785_v30, %v3785_v30 }
  0xb5   :  { %7333 = vst [vmem:[#allocation159_spill] sm:$0xff] %v5669_v29  ;;  %1289 = vmatpush.msrb.mxu2 %v5561_v18  ;;  %1202 = vmatpush.msrb.mxu1 %v5669_v29  ;;  %v1147_v18 = vsub.f32 %v47_v22, %v5694_v46  ;;  %v1230_v29 = vsub.f32 %v5663_v47, %v5709_v3  ;;  %v5750_v22 = vand.u32 4294901760, %v5711_v14  ;;  %v1142_v30 = vand.u32 4294901760, %v1141_v39 }
  0xb6   :  { %7336 = vst [vmem:[#allocation160_spill] sm:$0xff] %v7335_v60  ;;  %3924 = vmatpush.msk.msrb.mxu3 %vm5456_vm14, %v7137_v32  ;;  %3912 = vmatpush.msk.msrb.mxu0 %vm5576_vm11, %v7137_v32 }
  0xb7   :  { %7337 = vst [vmem:[#allocation161_spill] sm:$0xff] %v5690_v11  ;;  %1292 = vmatpush.msrb.mxu2 %v5603_v51  ;;  %1208 = vmatpush.msrb.mxu1 %v5700_v38  ;;  %v1236_v51 = vsub.f32 %v5692_v4, %v5732_v16  ;;  %v5775_v61 = vand.u32 4294901760, %v1230_v29  ;;  %v1242_v39 = vsub.f32 %v5711_v14, %v5750_v22 }
  0xb8   :  { %7338 = vst [vmem:[#allocation162_spill] sm:$0xff] %v5692_v4  ;;  %3925 = vmatpush.msk.msrb.mxu3 %vm5486_vm9, %v7137_v32  ;;  %3913 = vmatpush.msk.msrb.mxu0 %vm5609_vm4, %v7137_v32 }
  0xb9   :  { %7339 = vst [vmem:[#allocation163_spill] sm:$0xff] %v5700_v38  ;;  %1295 = vmatpush.msrb.mxu2 %v5620_v13  ;;  %1214 = vmatpush.msrb.mxu1 %v5720_v6  ;;  %v1148_v38 = vand.u32 4294901760, %v1147_v18  ;;  %v5769_v13 = vand.u32 4294901760, %v5739_v5 }
  0xba   :  { %7340 = vst [vmem:[#allocation164_spill] sm:$0xff] %v5709_v3  ;;  %3926 = vmatpush.msk.msrb.mxu3 %vm5523_vm0, %v7137_v32  ;;  %3914 = vmatpush.msk.msrb.mxu0 %vm5637_vm15, %v7137_v32 }
  0xbb   :  { %7342 = vst [vmem:[#allocation165_spill] sm:$0xff] %v5732_v16  ;;  %1298 = vmatpush.msrb.mxu2 %v5663_v47  ;;  %1220 = vmatpush.msrb.mxu1 %v5745_v25  ;;  %v5784_v47 = vand.u32 4294901760, %v1236_v51  ;;  %v1248_v29 = vsub.f32 %v5739_v5, %v5769_v13 }
  0xbc   :  { %7343 = vst [vmem:[#allocation166_spill] sm:$0xff] %v5739_v5  ;;  %3927 = vmatpush.msk.msrb.mxu3 %vm5536_vm2, %v7137_v32  ;;  %3915 = vmatpush.msk.msrb.mxu0 %vm5677_vm1, %v7137_v32 }
  0xbd   :  { %7344 = vst [vmem:[#allocation167_spill] sm:$0xff] %v5745_v25  ;;  %1301 = vmatpush.msrb.mxu2 %v5692_v4  ;;  %1143 = vmatmul.f32.vlgmr.msrb.gmra.mxu0 %v1142_v30  ;;  %v1149_v25 = vsub.f32 %v1147_v18, %v1148_v38  ;;  %v5794_v4 = vand.u32 4294901760, %v1242_v39  ;;  %v5806_v30 = vand.u32 4294901760, %v1248_v29 }
  0xbe   :  { %7345 = vst [vmem:[#allocation168_spill] sm:$0xff] %v5750_v22  ;;  %1226 = vmatpush.msrb.mxu1 %v5760_v15  ;;  %3928 = vmatpush.msk.msrb.mxu3 %vm5576_vm11, %v7137_v32 }
  0xbf   :  { %7346 = vst [vmem:[#allocation169_spill] sm:$0xff] %v5769_v13  ;;  %1367 = vmatpush.msra.mxu0 %v5342_v19  ;;  %1304 = vmatpush.msrb.mxu2 %v5711_v14  ;;  %v1150_v51 = vand.u32 4294901760, %v1149_v25  ;;  %v7347_v25 = vand.u32 4294901760, %v5644_v58 }
  0xc0   :  { %1232 = vmatpush.msrb.mxu1 %v5775_v61  ;;  %3929 = vmatpush.msk.msrb.mxu3 %vm5609_vm4, %v7137_v32 }
  0xc1   :  { %1371 = vmatpush.msra.mxu0 %v5353_v50  ;;  %1307 = vmatpush.msrb.mxu2 %v5739_v5  ;;  %v5885_v50 = vmul.u32 48, %v4236_v1 }
  0xc2   :  { %1238 = vmatpush.msrb.mxu1 %v5784_v47  ;;  %3930 = vmatpush.msk.msrb.mxu3 %vm5637_vm15, %v7137_v32 }
  0xc3   :  { %1375 = vmatpush.msra.mxu0 %v5405_v45  ;;  %1310 = vmatmul.f32.vlgmr.msrb.gmra.mxu2 %v5644_v58 }
  0xc4   :  { %1244 = vmatpush.msrb.mxu1 %v5794_v4  ;;  %3931 = vmatpush.msk.msrb.mxu3 %vm5677_vm1, %v7137_v32 }
  0xc5   :  { %1379 = vmatpush.msra.mxu0 %v5420_v49  ;;  %1354 = vmatmul.f32.vlgmr.msrb.gmra.mxu3 %v7347_v25  ;;  %v348_v49 = vadd.s32 1, %v4236_v1 }
  0xc6   :  { %1151 = vmatmul.f32.gmra.mxu0 %v1150_v51  ;;  %1250 = vmatpush.msrb.mxu1 %v5806_v30 }
  0xc7   :  { %1383 = vmatpush.msra.mxu0 %v5474_v37  ;;  %1252 = vmatmul.f32.vlgmr.msrb.gmra.mxu1 %v5584_v21  ;;  %v5887_v19 = vmul.u32 48, %v348_v49 }
  0xc8   :  { %3932 = vmatpush.msk.msra.mxu1 %vm5260_vm5, %v7137_v32  ;;  %v509_v58 = vpop.f32.mrf.mxu1  ;;  %vm7419_vm5 = vnez %v7132_v42 }
  0xc9   :  { %1387 = vmatpush.msra.mxu0 %v5517_v26 }
  0xca   :  { %3933 = vmatpush.msk.msra.mxu1 %vm7348_vm6, %v7137_v32  ;;  %vm7415_vm6 = vnez %v7127_v9 }
  0xcb   :  { %1391 = vmatpush.msra.mxu0 %v5552_v40  ;;  %1315 = vmatmul.f32.gmra.mxu2 %v1147_v18 }
  0xcc   :  { %3934 = vmatpush.msk.msra.mxu1 %vm7349_vm7, %v7137_v32  ;;  %vm7412_vm7 = vnez %v7123_v57  ;;  %v7485_v57 = vld [vmem:[#allocation67_spill] sm:$0xff] }
  0xcd   :  { %1395 = vmatpush.msra.mxu0 %v5555_v59  ;;  %1360 = vmatmul.f32.gmra.mxu3 %v1148_v38 }
  0xce   :  { %3935 = vmatpush.msk.msra.mxu1 %vm7350_vm10, %v7137_v32  ;;  %vm7409_vm10 = vnez %v7118_v28  ;;  %v7482_v28 = vld [vmem:[#allocation59_spill] sm:$0xff] }
  0xcf   :  { %1399 = vmatpush.msra.mxu0 %v5591_v33  ;;  %1256 = vmatmul.f32.gmra.mxu1 %v5694_v46 }
  0xd0   :  { %3936 = vmatpush.msk.msra.mxu1 %vm5337_vm8, %v7137_v32  ;;  %vm7406_vm8 = vnez %v7111_v12  ;;  %v7480_v12 = vld [vmem:[#allocation51_spill] sm:$0xff] }
  0xd1   :  { %1403 = vmatpush.msra.mxu0 %v5618_v2 }
  0xd2   :  { %3937 = vmatpush.msk.msra.mxu1 %vm5381_vm3, %v7137_v32  ;;  %vm7403_vm3 = vnez %v7105_v63  ;;  %v7476_v63 = vld [vmem:[#allocation128_spill] sm:$0xff] }
  0xd3   :  { %1407 = vmatpush.msra.mxu0 %v5661_v7 }
  0xd4   :  { %3938 = vmatpush.msk.msra.mxu1 %vm5400_vm12, %v7137_v32 }
  0xd5   :  { %1411 = vmatpush.msra.mxu0 %v5690_v11 }
  0xd6   :  { %3939 = vmatpush.msk.msra.mxu1 %vm5415_vm13, %v7137_v32 }
  0xd7   :  { %1415 = vmatpush.msra.mxu0 %v5709_v3 }
  0xd8   :  { %3940 = vmatpush.msk.msra.mxu1 %vm5456_vm14, %v7137_v32 }
  0xd9   :  { %1419 = vmatpush.msra.mxu0 %v5732_v16 }
  0xda   :  { %3941 = vmatpush.msk.msra.mxu1 %vm5486_vm9, %v7137_v32 }
  0xdb   :  { %1423 = vmatpush.msra.mxu0 %v5750_v22 }
  0xdc   :  { %3942 = vmatpush.msk.msra.mxu1 %vm5523_vm0, %v7137_v32 }
  0xdd   :  { %1427 = vmatpush.msra.mxu0 %v5769_v13 }
  0xde   :  { %1429 = vmatmul.f32.vlgmr.msra.gmra.mxu0 %v5584_v21  ;;  %3943 = vmatpush.msk.msra.mxu1 %vm5536_vm2, %v7137_v32  ;;  %vm7021_vm2 = vcmask 64512  }
  0xe0   :  { %3944 = vmatpush.msk.msra.mxu1 %vm5576_vm11, %v7137_v32 }
  0xe2   :  { %3945 = vmatpush.msk.msra.mxu1 %vm5609_vm4, %v7137_v32  ;;  %v567_v38 = vpop.f32.mrf.mxu2 }
  0xe4   :  { %3946 = vmatpush.msk.msra.mxu1 %vm5637_vm15, %v7137_v32 }
  0xe6   :  { %1433 = vmatmul.f32.gmra.mxu0 %v5694_v46  ;;  %3947 = vmatpush.msk.msra.mxu1 %vm5677_vm1, %v7137_v32 }
  0xe7   :  { %1470 = vmatmul.f32.vlgmr.msra.gmra.mxu1 %v5584_v21 }
  0xed   :  { %v513_v51 = vpop.f32.mrf.mxu1 }
  0xef   :  { %1474 = vmatmul.f32.gmra.mxu1 %v5694_v46  ;;  %v400_v18 = vpop.f32.mrf.mxu0 }
  0xf0   :  { %v510_v3 = vadd.f32 %v509_v58, %v400_v18 }
  0xf2   :  { %v568_v2 = vadd.f32 %v567_v38, %v510_v3  ;;  %v7351_v3 = vld [vmem:[#allocation11_spill] sm:$0xff] }
  0xf3   :  { %vm345_vm1 = vcmp.ge.s32.totalorder %v7351_v3, %v5885_v50  ;;  %vm350_vm15 = vcmp.lt.s32.totalorder %v7351_v3, %v5887_v19  ;;  %v342_v60 = vadd.s32 128, %v7351_v3 }
  0xf4   :  { %v572_v25 = vpop.f32.mrf.mxu2  ;;  %vm5893_vm4 = vmand %vm345_vm1, %vm350_vm15 }
  0xf5   :  { %v3801_v1 = vsel %vm5893_vm4, 1.0, %v7136_v23  ;;  %3950 = vmatpush.msk.msrb.mxu1 %vm5893_vm4, %v7137_v32  ;;  %3948 = vmatpush.msk.msra.mxu2 %vm5893_vm4, %v7137_v32  ;;  %vm346_vm15 = vcmp.ge.s32.totalorder %v342_v60, %v5885_v50  ;;  %vm351_vm1 = vcmp.lt.s32.totalorder %v342_v60, %v5887_v19 }
  0xf6   :  { %v5906_v49 = vsub.f32 %v3801_v1, %v3801_v1  ;;  %vm5924_vm11 = vmand %vm346_vm15, %vm351_vm1 }
  0xf7   :  { %3952 = vmatpush.msk.msra.mxu1 %vm5924_vm11, %v7137_v32 }
  0xf8   :  { %7354 = vst [vmem:[#allocation11_spill] sm:$0xff] %v5906_v49  ;;  %1568 = vmatpush.msrb.mxu2 %v5906_v49 }
  0xfb   :  { %v611_v29 = vpop.f32.mrf.mxu3  ;;  %v727_v16 = vpop.f32.mrf.mxu1 }
  0xfc   :  { %v612_v21 = vadd.f32 %v611_v29, %v568_v2  ;;  %v7352_v2 = vmov 0 }
  0xfd   :  { %v7353_v2 = vsel %vm5893_vm4, 4294967295, %v7352_v2 }
  0xfe   :  { %v408_v39 = vpop.f32.mrf.mxu0 }
  0xff   :  { %v514_v59 = vadd.f32 %v513_v51, %v408_v39 }
 0x101   :  { %v573_v26 = vadd.f32 %v572_v25, %v514_v59 }
 0x103   :  { %v617_v22 = vpop.f32.mrf.mxu3 }
 0x104   :  { %v618_v5 = vadd.f32 %v617_v22, %v573_v26 }
 0x106   :  { %v686_v13 = vpop.f32.mrf.mxu0  ;;  %v772_v7 = vpop.f32.mrf.mxu2 }
 0x107   :  { %v687_v45 = vadd.f32 %v686_v13, %v612_v21  ;;  %v5909_v13 = vand.u32 4294901760, %v5906_v49 }
 0x109   :  { %v728_v59 = vadd.f32 %v727_v16, %v687_v45  ;;  %7355 = vst [vmem:[#allocation170_spill] sm:$0xff] %v5909_v13  ;;  %v1539_v39 = vsub.f32 %v5906_v49, %v5909_v13  ;;  %1628 = vmatpush.msrb.mxu0 %v5909_v13 }
 0x10b   :  { %v881_v40 = vpop.f32.mrf.mxu3  ;;  %v773_v45 = vadd.f32 %v772_v7, %v728_v59  ;;  %v5915_v51 = vand.u32 4294901760, %v1539_v39 }
 0x10d   :  { %v882_v29 = vadd.f32 %v881_v40, %v773_v45  ;;  %1541 = vmatpush.msra.mxu3 %v5915_v51 }
 0x10e   :  { %v690_v11 = vpop.f32.mrf.mxu0 }
 0x10f   :  { %v691_v26 = vadd.f32 %v690_v11, %v618_v5  ;;  %3949 = vmatpush.msk.msrb.mxu3 %vm5893_vm4, %v7137_v32 }
 0x116   :  { %v939_v46 = vpop.f32.mrf.mxu0 }
 0x117   :  { %v731_v33 = vpop.f32.mrf.mxu1  ;;  %v780_v37 = vpop.f32.mrf.mxu2  ;;  %v940_v25 = vadd.f32 %v939_v46, %v882_v29  ;;  %v7356_v29 = vmov 0 }
 0x118   :  { %v732_v38 = vadd.f32 %v731_v33, %v691_v26  ;;  %v7357_v29 = vsel %vm5924_vm11, 4294967295, %v7356_v29 }
 0x119   :  { %v885_v18 = vpop.f32.mrf.mxu3  ;;  %7358 = vst [vmem:[#allocation171_spill] sm:$0xff] %v7357_v29 }
 0x11a   :  { %v781_v21 = vadd.f32 %v780_v37, %v732_v38 }
 0x11c   :  { %v886_v59 = vadd.f32 %v885_v18, %v781_v21 }
 0x121   :  { %v983_v58 = vpop.f32.mrf.mxu1 }
 0x122   :  { %v1058_v22 = vpop.f32.mrf.mxu2  ;;  %v984_v33 = vadd.f32 %v983_v58, %v940_v25 }
 0x124   :  { %v1059_v26 = vadd.f32 %v1058_v22, %v984_v33 }
 0x125   :  { %v1099_v11 = vpop.f32.mrf.mxu3 }
 0x126   :  { %v944_v16 = vpop.f32.mrf.mxu0  ;;  %v1100_v45 = vadd.f32 %v1099_v11, %v1059_v26 }
 0x127   :  { %v945_v13 = vadd.f32 %v944_v16, %v886_v59  ;;  %v3802_v16 = vsel %vm5924_vm11, 1.0, %v7136_v23 }
 0x12b   :  { %v989_v5 = vpop.f32.mrf.mxu1 }
 0x12c   :  { %v1062_v1 = vpop.f32.mrf.mxu2  ;;  %v990_v39 = vadd.f32 %v989_v5, %v945_v13  ;;  %v5934_v13 = vsub.f32 %v3802_v16, %v3802_v16 }
 0x12e   :  { %v1063_v18 = vadd.f32 %v1062_v1, %v990_v39  ;;  %7359 = vst [vmem:[#allocation172_spill] sm:$0xff] %v5934_v13  ;;  %1745 = vmatpush.msra.mxu0 %v5934_v13  ;;  %v7360_v1 = vmov 0 }
 0x12f   :  { %v1103_v40 = vpop.f32.mrf.mxu3 }
 0x130   :  { %v1104_v60 = vadd.f32 %v1103_v40, %v1063_v18 }
 0x13a   :  { %v1144_v7 = vpop.f32.mrf.mxu0 }
 0x13b   :  { %v1145_v37 = vadd.f32 %v1144_v7, %v1100_v45 }
 0x143   :  { %v1152_v46 = vpop.f32.mrf.mxu0 }
 0x144   :  { %v1253_v49 = vpop.f32.mrf.mxu1  ;;  %v1153_v21 = vadd.f32 %v1152_v46, %v1104_v60 }
 0x145   :  { %v1254_v58 = vadd.f32 %v1253_v49, %v1145_v37  ;;  %v343_v49 = vadd.s32 256, %v7351_v3  ;;  %v5950_v37 = vand.u32 4294901760, %v5934_v13 }
 0x146   :  { %v1311_v38 = vpop.f32.mrf.mxu2 }
 0x147   :  { %v1312_v5 = vadd.f32 %v1311_v38, %v1254_v58  ;;  %vm347_vm15 = vcmp.ge.s32.totalorder %v343_v49, %v5885_v50  ;;  %vm352_vm1 = vcmp.lt.s32.totalorder %v343_v49, %v5887_v19  ;;  %7364 = vst [vmem:[#allocation175_spill] sm:$0xff] %v5950_v37  ;;  %v1716_v18 = vsub.f32 %v5934_v13, %v5950_v37 }
 0x148   :  { %v1355_v22 = vpop.f32.mrf.mxu3  ;;  %vm5940_vm4 = vmand %vm347_vm15, %vm352_vm1 }
 0x149   :  { %v1356_v7 = vadd.f32 %v1355_v22, %v1312_v5  ;;  %v7361_v1 = vsel %vm5940_vm4, 4294967295, %v7360_v1  ;;  %v3803_v40 = vsel %vm5940_vm4, 1.0, %v7136_v23 }
 0x14a   :  { %7362 = vst [vmem:[#allocation173_spill] sm:$0xff] %v7361_v1  ;;  %v5947_v39 = vsub.f32 %v3803_v40, %v3803_v40 }
 0x14c   :  { %v1257_v11 = vpop.f32.mrf.mxu1  ;;  %7363 = vst [vmem:[#allocation174_spill] sm:$0xff] %v5947_v39  ;;  %v5953_v19 = vand.u32 4294901760, %v5947_v39 }
 0x14d   :  { %v1258_v33 = vadd.f32 %v1257_v11, %v1153_v21  ;;  %v5960_v11 = vand.u32 4294901760, %v1716_v18 }
 0x14e   :  { %v1316_v59 = vpop.f32.mrf.mxu2  ;;  %7365 = vst [vmem:[#allocation176_spill] sm:$0xff] %v5953_v19  ;;  %v1893_v23 = vsub.f32 %v5947_v39, %v5953_v19 }
 0x14f   :  { %v1317_v3 = vadd.f32 %v1316_v59, %v1258_v33  ;;  %7366 = vst [vmem:[#allocation177_spill] sm:$0xff] %v5960_v11 }
 0x150   :  { %v1361_v50 = vpop.f32.mrf.mxu3  ;;  %v5964_v5 = vand.u32 4294901760, %v1893_v23  ;;  %v7370_v23 = vld [vmem:[#allocation15_spill] sm:$0xff] }
 0x151   :  { %v1362_v16 = vadd.f32 %v1361_v50, %v1317_v3 }
 0x152   :  { %7367 = vst [vmem:[#allocation178_spill] sm:$0xff] %v5964_v5 }
 0x15b   :  { %v1430_v25 = vpop.f32.mrf.mxu0 }
 0x15c   :  { %v1431_v26 = vadd.f32 %v1430_v25, %v1356_v7 }
 0x163   :  { %v1434_v58 = vpop.f32.mrf.mxu0 }
 0x164   :  { %v1471_v45 = vpop.f32.mrf.mxu1  ;;  %v1435_v25 = vadd.f32 %v1434_v58, %v1362_v16  ;;  %v7368_v58 = vld [vmem:[#allocation12_spill] sm:$0xff]  ;;  %v7371_v16 = vld [vmem:[#allocation13_spill] sm:$0xff] }
 0x165   :  { %v1472_v46 = vadd.f32 %v1471_v45, %v1431_v26  ;;  %vm7369_vm15 = vnez %v7368_v58  ;;  %vm7372_vm1 = vnez %v7371_v16  ;;  %v7436_v58 = vld [vmem:[#allocation94_spill] sm:$0xff] }
 0x166   :  { %v7438_v16 = vld [vmem:[#allocation98_spill] sm:$0xff] }
 0x167   :  { %v1478_v38 = vmul.f32 0.020833334, %v1472_v46 }
 0x169   :  { %v1482_v22 = vsel %vm7021_vm2, %v1478_v38, 0 }
 0x16a   :  { %v5962_v60 = vand.u32 4294901760, %v1482_v22 }
 0x16c   :  { %v5967_v21 = vsub.f32 %v1482_v22, %v5962_v60  ;;  %v1475_v49 = vpop.f32.mrf.mxu1  ;;  %1543 = vmatmul.f32.vlgmr.msra.gmra.mxu3 %v5962_v60  ;;  %1630 = vmatmul.f32.vlgmr.msrb.gmra.mxu0 %v5962_v60  ;;  %v7373_v22 = vld [vmem:[#allocation17_spill] sm:$0xff] }
 0x16d   :  { %v1476_v7 = vadd.f32 %v1475_v49, %v1435_v25  ;;  %1656 = vmatmul.f32.vlgmr.msrb.gmra.mxu1 %v5962_v60  ;;  %1718 = vmatpush.msra.mxu3 %v5960_v11  ;;  %v7374_v25 = vld [vmem:[#allocation14_spill] sm:$0xff]  ;;  %v7376_v49 = vld [vmem:[#allocation20_spill] sm:$0xff] }
 0x16e   :  { %v5974_v33 = vand.u32 4294901760, %v5967_v21  ;;  %3954 = vmatpush.msk.msrb.mxu0 %vm5940_vm4, %v7137_v32  ;;  %1895 = vmatpush.msrb.mxu1 %v5964_v5  ;;  %v6291_v5 = vld [vmem:[#allocation2] sm:$0xff] }
 0x16f   :  { %v1479_v59 = vmul.f32 0.020833334, %v1476_v7  ;;  %v7377_v7 = vld [vmem:[#allocation16_spill] sm:$0xff] }
 0x170   :  { %v1507_v26 = vsub.f32 %v5967_v21, %v5974_v33 }
 0x171   :  { %v1485_v40 = vsel %vm7021_vm2, %v1479_v59, 0  ;;  %vm7375_vm2 = vnez %v7374_v25  ;;  %v7379_v59 = vld [vmem:[#allocation23_spill] sm:$0xff]  ;;  %v7442_v25 = vld [vmem:[#allocation102_spill] sm:$0xff] }
 0x172   :  { %v5983_v45 = vand.u32 4294901760, %v1485_v40  ;;  %v1508_v3 = vand.u32 4294901760, %v1507_v26  ;;  %v7380_v26 = vld [vmem:[#allocation18_spill] sm:$0xff] }
 0x174   :  { %v5986_v46 = vsub.f32 %v1485_v40, %v5983_v45  ;;  %1509 = vmatmul.f32.vlgmr.msra.gmra.mxu2 %v1508_v3  ;;  %1547 = vmatmul.f32.gmra.mxu3 %v5983_v45  ;;  %v7382_v40 = vld [vmem:[#allocation26_spill] sm:$0xff] }
 0x175   :  { %1634 = vmatmul.f32.gmra.mxu0 %v5983_v45  ;;  %1660 = vmatmul.f32.gmra.mxu1 %v5983_v45 }
 0x176   :  { %v5992_v50 = vand.u32 4294901760, %v5986_v46  ;;  %3951 = vmatpush.msk.msra.mxu2 %vm5924_vm11, %v7137_v32 }
 0x178   :  { %v1515_v38 = vsub.f32 %v5986_v46, %v5992_v50 }
 0x17a   :  { %v1516_v18 = vand.u32 4294901760, %v1515_v38  ;;  %v7385_v38 = vld [vmem:[#allocation29_spill] sm:$0xff] }
 0x17c   :  { %1517 = vmatmul.f32.gmra.mxu2 %v1516_v18  ;;  %1600 = vmatmul.f32.vlgmr.msrb.gmra.mxu3 %v5974_v33 }
 0x17d   :  { %1748 = vmatmul.f32.vlgmr.msra.gmra.mxu0 %v5967_v21  ;;  %1777 = vmatmul.f32.vlgmr.msra.gmra.mxu1 %v5974_v33 }
 0x17e   :  { %3953 = vmatpush.msk.msrb.mxu3 %vm5924_vm11, %v7137_v32  ;;  %1982 = vmatpush.msra.mxu0 %v5953_v19  ;;  %vm7381_vm11 = vnez %v7380_v26  ;;  %v7450_v26 = vld [vmem:[#allocation109_spill] sm:$0xff] }
 0x17f   :  { %3956 = vmatpush.msk.msra.mxu1 %vm5940_vm4, %v7137_v32 }
 0x184   :  { %1571 = vmatmul.f32.vlgmr.msrb.gmra.mxu2 %v5967_v21  ;;  %1606 = vmatmul.f32.gmra.mxu3 %v5992_v50 }
 0x185   :  { %1753 = vmatmul.f32.gmra.mxu0 %v5986_v46  ;;  %1783 = vmatmul.f32.gmra.mxu1 %v5992_v50 }
 0x186   :  { %1805 = vmatpush.msrb.mxu2 %v5950_v37 }
 0x18c   :  { %1576 = vmatmul.f32.gmra.mxu2 %v5986_v46  ;;  %1720 = vmatmul.f32.vlgmr.msra.gmra.mxu3 %v5962_v60 }
 0x18d   :  { %1863 = vmatmul.f32.vlgmr.msrb.gmra.mxu0 %v1508_v3  ;;  %1897 = vmatmul.f32.vlgmr.msrb.gmra.mxu1 %v5962_v60 }
 0x18e   :  { %3955 = vmatpush.msk.msra.mxu3 %vm5940_vm4, %v7137_v32  ;;  %3973 = vmatpush.msk.msrb.mxu1 %vm7369_vm15, %v7137_v32  ;;  %vm7378_vm4 = vnez %v7377_v7  ;;  %v7446_v7 = vld [vmem:[#allocation105_spill] sm:$0xff] }
 0x18f   :  { %2186 = vmatpush.msrb.mxu0 %v7370_v23  ;;  %v7386_v23 = vld [vmem:[#allocation30_spill] sm:$0xff] }
 0x190   :  { %3974 = vmatpush.msk.msrb.mxu1 %vm7372_vm1, %v7137_v32 }
 0x191   :  { %2189 = vmatpush.msrb.mxu0 %v7373_v22  ;;  %v7387_v22 = vld [vmem:[#allocation24_spill] sm:$0xff] }
 0x192   :  { %3975 = vmatpush.msk.msrb.mxu1 %vm7375_vm2, %v7137_v32  ;;  %vm7388_vm9 = vnez %v7387_v22 }
 0x193   :  { %2192 = vmatpush.msrb.mxu0 %v7376_v49  ;;  %v7389_v49 = vld [vmem:[#allocation32_spill] sm:$0xff] }
 0x194   :  { %1686 = vmatmul.f32.vlgmr.msra.gmra.mxu2 %v1508_v3  ;;  %1724 = vmatmul.f32.gmra.mxu3 %v5983_v45  ;;  %v7383_v3 = vld [vmem:[#allocation21_spill] sm:$0xff] }
 0x195   :  { %1871 = vmatmul.f32.gmra.mxu0 %v1516_v18  ;;  %1901 = vmatmul.f32.gmra.mxu1 %v5983_v45  ;;  %vm7384_vm0 = vnez %v7383_v3  ;;  %v7455_v3 = vld [vmem:[#allocation116_spill] sm:$0xff] }
 0x196   :  { %1922 = vmatpush.msra.mxu2 %v5947_v39  ;;  %3976 = vmatpush.msk.msrb.mxu1 %vm7378_vm4, %v7137_v32  ;;  %v7395_v39 = vld [vmem:[#allocation34_spill] sm:$0xff] }
 0x197   :  { %2195 = vmatpush.msrb.mxu0 %v7379_v59  ;;  %v7390_v59 = vld [vmem:[#allocation33_spill] sm:$0xff]  ;;  %vm7396_vm13 = vnez %v7395_v39 }
 0x198   :  { %3977 = vmatpush.msk.msrb.mxu1 %vm7381_vm11, %v7137_v32  ;;  %v7468_v39 = vld [vmem:[#allocation125_spill] sm:$0xff] }
 0x199   :  { %2198 = vmatpush.msrb.mxu0 %v7382_v40  ;;  %v7391_v40 = vld [vmem:[#allocation27_spill] sm:$0xff] }
 0x19a   :  { %3978 = vmatpush.msk.msrb.mxu1 %vm7384_vm0, %v7137_v32  ;;  %vm7392_vm14 = vnez %v7391_v40 }
 0x19b   :  { %2201 = vmatpush.msrb.mxu0 %v7385_v38  ;;  %v7394_v38 = vld [vmem:[#allocation35_spill] sm:$0xff] }
 0x19c   :  { %1694 = vmatmul.f32.gmra.mxu2 %v1516_v18  ;;  %1833 = vmatmul.f32.vlgmr.msrb.gmra.mxu3 %v5962_v60  ;;  %v7393_v18 = vld [vmem:[#allocation39_spill] sm:$0xff] }
 0x19d   :  { %1984 = vmatmul.f32.vlgmr.msra.gmra.mxu0 %v5962_v60  ;;  %2010 = vmatmul.f32.vlgmr.msra.gmra.mxu1 %v5962_v60 }
 0x19e   :  { %2084 = vmatpush.msrb.mxu3 %v7386_v23  ;;  %3979 = vmatpush.msk.msrb.mxu1 %vm7388_vm9, %v7137_v32  ;;  %v7397_v23 = vld [vmem:[#allocation42_spill] sm:$0xff] }
 0x19f   :  { %2204 = vmatpush.msrb.mxu0 %v7389_v49  ;;  %v7398_v49 = vld [vmem:[#allocation37_spill] sm:$0xff] }
 0x1a0   :  { %2090 = vmatpush.msrb.mxu3 %v7390_v59  ;;  %3980 = vmatpush.msk.msrb.mxu1 %vm7392_vm14, %v7137_v32  ;;  %v7399_v59 = vld [vmem:[#allocation38_spill] sm:$0xff] }
 0x1a1   :  { %2207 = vmatpush.msrb.mxu0 %v7393_v18  ;;  %vm7400_vm12 = vnez %v7399_v59  ;;  %v7401_v18 = vld [vmem:[#allocation45_spill] sm:$0xff]  ;;  %v7472_v59 = vld [vmem:[#allocation127_spill] sm:$0xff] }
 0x1a2   :  { %2096 = vmatpush.msrb.mxu3 %v7394_v38  ;;  %3981 = vmatpush.msk.msrb.mxu1 %vm7396_vm13, %v7137_v32  ;;  %v7402_v38 = vld [vmem:[#allocation40_spill] sm:$0xff] }
 0x1a3   :  { %2210 = vmatpush.msrb.mxu0 %v7397_v23  ;;  %v7405_v23 = vld [vmem:[#allocation44_spill] sm:$0xff] }
 0x1a4   :  { %1807 = vmatmul.f32.vlgmr.msrb.gmra.mxu2 %v5962_v60  ;;  %1837 = vmatmul.f32.gmra.mxu3 %v5983_v45  ;;  %v7404_v60 = vld [vmem:[#allocation48_spill] sm:$0xff] }
 0x1a5   :  { %1988 = vmatmul.f32.gmra.mxu0 %v5983_v45  ;;  %2014 = vmatmul.f32.gmra.mxu1 %v5983_v45 }
 0x1a6   :  { %2102 = vmatpush.msrb.mxu3 %v7398_v49  ;;  %3957 = vmatpush.msk.msrb.mxu2 %vm7369_vm15, %v7137_v32  ;;  %v7407_v49 = vld [vmem:[#allocation53_spill] sm:$0xff] }
 0x1a7   :  { %3982 = vmatpush.msk.msrb.mxu1 %vm7400_vm12, %v7137_v32  ;;  %2213 = vmatpush.msrb.mxu0 %v7401_v18  ;;  %v7408_v18 = vld [vmem:[#allocation47_spill] sm:$0xff] }
 0x1a8   :  { %2108 = vmatpush.msrb.mxu3 %v7402_v38  ;;  %3958 = vmatpush.msk.msrb.mxu2 %vm7372_vm1, %v7137_v32  ;;  %v7410_v38 = vld [vmem:[#allocation55_spill] sm:$0xff] }
 0x1a9   :  { %3983 = vmatpush.msk.msrb.mxu1 %vm7403_vm3, %v7137_v32  ;;  %2216 = vmatpush.msrb.mxu0 %v7404_v60  ;;  %v7411_v60 = vld [vmem:[#allocation49_spill] sm:$0xff] }
 0x1aa   :  { %2114 = vmatpush.msrb.mxu3 %v7405_v23  ;;  %3959 = vmatpush.msk.msrb.mxu2 %vm7375_vm2, %v7137_v32  ;;  %v7416_v23 = vld [vmem:[#allocation60_spill] sm:$0xff] }
 0x1ab   :  { %3984 = vmatpush.msk.msrb.mxu1 %vm7406_vm8, %v7137_v32  ;;  %2219 = vmatpush.msrb.mxu0 %v7407_v49  ;;  %v7417_v49 = vld [vmem:[#allocation54_spill] sm:$0xff] }
 0x1ac   :  { %1811 = vmatmul.f32.gmra.mxu2 %v5983_v45  ;;  %1954 = vmatmul.f32.vlgmr.msra.gmra.mxu3 %v5974_v33  ;;  %v7413_v33 = vld [vmem:[#allocation58_spill] sm:$0xff]  ;;  %v7414_v45 = vld [vmem:[#allocation52_spill] sm:$0xff] }
 0x1ad   :  { %2120 = vmatpush.msrb.mxu3 %v7408_v18  ;;  %3960 = vmatpush.msk.msrb.mxu2 %vm7378_vm4, %v7137_v32  ;;  %v7418_v18 = vld [vmem:[#allocation57_spill] sm:$0xff] }
 0x1ae   :  { %3985 = vmatpush.msk.msrb.mxu1 %vm7409_vm10, %v7137_v32  ;;  %2222 = vmatpush.msrb.mxu0 %v7410_v38  ;;  %v7420_v38 = vld [vmem:[#allocation62_spill] sm:$0xff] }
 0x1af   :  { %2126 = vmatpush.msrb.mxu3 %v7411_v60  ;;  %3961 = vmatpush.msk.msrb.mxu2 %vm7381_vm11, %v7137_v32  ;;  %v7421_v60 = vld [vmem:[#allocation64_spill] sm:$0xff] }
 0x1b0   :  { %3986 = vmatpush.msk.msrb.mxu1 %vm7412_vm7, %v7137_v32  ;;  %2225 = vmatpush.msrb.mxu0 %v7413_v33  ;;  %v7425_v33 = vld [vmem:[#allocation80_spill] sm:$0xff] }
 0x1b1   :  { %2132 = vmatpush.msrb.mxu3 %v7414_v45  ;;  %3962 = vmatpush.msk.msrb.mxu2 %vm7384_vm0, %v7137_v32  ;;  %v7427_v45 = vld [vmem:[#allocation68_spill] sm:$0xff] }
 0x1b2   :  { %3987 = vmatpush.msk.msrb.mxu1 %vm7415_vm6, %v7137_v32  ;;  %2228 = vmatpush.msrb.mxu0 %v7416_v23  ;;  %v7428_v23 = vld [vmem:[#allocation82_spill] sm:$0xff] }
 0x1b3   :  { %2138 = vmatpush.msrb.mxu3 %v7417_v49  ;;  %3963 = vmatpush.msk.msrb.mxu2 %vm7388_vm9, %v7137_v32  ;;  %vm7423_vm9 = vnez %v7141_v24  ;;  %v7429_v49 = vld [vmem:[#allocation69_spill] sm:$0xff] }
 0x1b4   :  { %1925 = vmatmul.f32.vlgmr.msra.gmra.mxu2 %v5967_v21  ;;  %1960 = vmatmul.f32.gmra.mxu3 %v5992_v50  ;;  %v7422_v21 = vld [vmem:[#allocation74_spill] sm:$0xff]  ;;  %v7424_v50 = vld [vmem:[#allocation65_spill] sm:$0xff] }
 0x1b5   :  { %2144 = vmatpush.msrb.mxu3 %v7418_v18  ;;  %3964 = vmatpush.msk.msrb.mxu2 %vm7392_vm14, %v7137_v32  ;;  %vm7426_vm14 = vnez %v7150_v8  ;;  %v7431_v18 = vld [vmem:[#allocation89_spill] sm:$0xff] }
 0x1b6   :  { %3988 = vmatpush.msk.msrb.mxu1 %vm7419_vm5, %v7137_v32  ;;  %2231 = vmatpush.msrb.mxu0 %v7420_v38  ;;  %v7432_v38 = vld [vmem:[#allocation72_spill] sm:$0xff] }
 0x1b7   :  { %2150 = vmatpush.msrb.mxu3 %v7421_v60  ;;  %3965 = vmatpush.msk.msrb.mxu2 %vm7396_vm13, %v7137_v32  ;;  %v7439_v60 = vld [vmem:[#allocation19_spill] sm:$0xff] }
 0x1b8   :  { %2456 = vmatpush.msra.mxu1 %v7422_v21  ;;  %4005 = vmatpush.msk.msra.mxu0 %vm7423_vm9, %v7137_v32  ;;  %vm7430_vm9 = vnez %v7153_v17  ;;  %v7440_v21 = vld [vmem:[#allocation84_spill] sm:$0xff] }
 0x1b9   :  { %2156 = vmatpush.msrb.mxu3 %v7424_v50  ;;  %3966 = vmatpush.msk.msrb.mxu2 %vm7400_vm12, %v7137_v32  ;;  %v7443_v50 = vld [vmem:[#allocation22_spill] sm:$0xff] }
 0x1ba   :  { %2462 = vmatpush.msra.mxu1 %v7425_v33  ;;  %4006 = vmatpush.msk.msra.mxu0 %vm7426_vm14, %v7137_v32  ;;  %vm7433_vm14 = vnez %v7160_v35  ;;  %v7444_v33 = vld [vmem:[#allocation87_spill] sm:$0xff] }
 0x1bb   :  { %2162 = vmatpush.msrb.mxu3 %v7427_v45  ;;  %3967 = vmatpush.msk.msrb.mxu2 %vm7403_vm3, %v7137_v32  ;;  %v7447_v45 = vld [vmem:[#allocation25_spill] sm:$0xff] }
 0x1bc   :  { %1930 = vmatmul.f32.gmra.mxu2 %v5986_v46  ;;  %2468 = vmatpush.msra.mxu1 %v7428_v23  ;;  %v7434_v46 = vld [vmem:[#allocation90_spill] sm:$0xff]  ;;  %v7448_v23 = vld [vmem:[#allocation92_spill] sm:$0xff] }
 0x1bd   :  { %2168 = vmatpush.msrb.mxu3 %v7429_v49  ;;  %3968 = vmatpush.msk.msrb.mxu2 %vm7406_vm8, %v7137_v32  ;;  %v7452_v49 = vld [vmem:[#allocation28_spill] sm:$0xff] }
 0x1be   :  { %4007 = vmatpush.msk.msra.mxu0 %vm7430_vm9, %v7137_v32  ;;  %2474 = vmatpush.msra.mxu1 %v7431_v18  ;;  %vm7435_vm9 = vnez %v7163_v48  ;;  %v7453_v18 = vld [vmem:[#allocation96_spill] sm:$0xff]  ;;  %v7499_v48 = vld [vmem:[#allocation79_spill] sm:$0xff] }
 0x1bf   :  { %2174 = vmatpush.msrb.mxu3 %v7432_v38  ;;  %3969 = vmatpush.msk.msrb.mxu2 %vm7409_vm10, %v7137_v32  ;;  %v7457_v38 = vld [vmem:[#allocation31_spill] sm:$0xff] }
 0x1c0   :  { %4008 = vmatpush.msk.msra.mxu0 %vm7433_vm14, %v7137_v32  ;;  %2480 = vmatpush.msra.mxu1 %v7434_v46  ;;  %v7458_v46 = vld [vmem:[#allocation100_spill] sm:$0xff] }
 0x1c1   :  { %3989 = vmatpush.msk.msra.mxu3 %vm7369_vm15, %v7137_v32  ;;  %3970 = vmatpush.msk.msrb.mxu2 %vm7412_vm7, %v7137_v32  ;;  %vm7437_vm15 = vnez %v7252_v0 }
 0x1c2   :  { %4009 = vmatpush.msk.msra.mxu0 %vm7435_vm9, %v7137_v32  ;;  %2486 = vmatpush.msra.mxu1 %v7436_v58  ;;  %v7461_v58 = vld [vmem:[#allocation36_spill] sm:$0xff] }
 0x1c3   :  { %3990 = vmatpush.msk.msra.mxu3 %vm7372_vm1, %v7137_v32  ;;  %3971 = vmatpush.msk.msrb.mxu2 %vm7415_vm6, %v7137_v32  ;;  %vm7441_vm1 = vnez %v7440_v21  ;;  %v7505_v21 = vld [vmem:[#allocation95_spill] sm:$0xff] }
 0x1c4   :  { %4010 = vmatpush.msk.msra.mxu0 %vm7437_vm15, %v7137_v32  ;;  %2492 = vmatpush.msra.mxu1 %v7438_v16  ;;  %v7462_v16 = vld [vmem:[#allocation106_spill] sm:$0xff] }
 0x1c5   :  { %3991 = vmatpush.msk.msra.mxu3 %vm7375_vm2, %v7137_v32  ;;  %3972 = vmatpush.msk.msrb.mxu2 %vm7419_vm5, %v7137_v32  ;;  %vm7445_vm2 = vnez %v7444_v33 }
 0x1c6   :  { %4011 = vmatpush.msk.msra.mxu0 %vm7441_vm1, %v7137_v32  ;;  %2498 = vmatpush.msra.mxu1 %v7442_v25  ;;  %v7466_v25 = vld [vmem:[#allocation108_spill] sm:$0xff] }
 0x1c7   :  { %3992 = vmatpush.msk.msra.mxu3 %vm7378_vm4, %v7137_v32  ;;  %2291 = vmatpush.msra.mxu2 %v7439_v60  ;;  %vm7449_vm4 = vnez %v7448_v23  ;;  %v7465_v60 = vld [vmem:[#allocation41_spill] sm:$0xff] }
 0x1c8   :  { %4012 = vmatpush.msk.msra.mxu0 %vm7445_vm2, %v7137_v32  ;;  %2504 = vmatpush.msra.mxu1 %v7446_v7  ;;  %vm7454_vm2 = vnez %v7453_v18  ;;  %v7470_v7 = vld [vmem:[#allocation113_spill] sm:$0xff] }
 0x1c9   :  { %3993 = vmatpush.msk.msra.mxu3 %vm7381_vm11, %v7137_v32  ;;  %2295 = vmatpush.msra.mxu2 %v7443_v50  ;;  %vm7451_vm11 = vnez %v7387_v22  ;;  %v7460_v22 = vld [vmem:[#allocation120_spill] sm:$0xff]  ;;  %v7469_v50 = vld [vmem:[#allocation43_spill] sm:$0xff] }
 0x1ca   :  { %4013 = vmatpush.msk.msra.mxu0 %vm7449_vm4, %v7137_v32  ;;  %2510 = vmatpush.msra.mxu1 %v7450_v26  ;;  %vm7459_vm4 = vnez %v7458_v46  ;;  %v7474_v26 = vld [vmem:[#allocation115_spill] sm:$0xff]  ;;  %v7512_v46 = vld [vmem:[#allocation104_spill] sm:$0xff] }
 0x1cb   :  { %3994 = vmatpush.msk.msra.mxu3 %vm7384_vm0, %v7137_v32  ;;  %2299 = vmatpush.msra.mxu2 %v7447_v45  ;;  %vm7456_vm0 = vnez %v7391_v40  ;;  %v7464_v40 = vld [vmem:[#allocation123_spill] sm:$0xff]  ;;  %v7473_v45 = vld [vmem:[#allocation46_spill] sm:$0xff] }
 0x1cc   :  { %4014 = vmatpush.msk.msra.mxu0 %vm7454_vm2, %v7137_v32  ;;  %2516 = vmatpush.msra.mxu1 %v7455_v3  ;;  %v7478_v3 = vld [vmem:[#allocation121_spill] sm:$0xff] }
 0x1cd   :  { %3995 = vmatpush.msk.msra.mxu3 %vm7451_vm11, %v7137_v32  ;;  %2303 = vmatpush.msra.mxu2 %v7452_v49  ;;  %vm7463_vm11 = vnez %v7462_v16  ;;  %v7477_v49 = vld [vmem:[#allocation50_spill] sm:$0xff] }
 0x1ce   :  { %4015 = vmatpush.msk.msra.mxu0 %vm7459_vm4, %v7137_v32  ;;  %2522 = vmatpush.msra.mxu1 %v7460_v22  ;;  %v7483_v22 = vld [vmem:[#allocation61_spill] sm:$0xff] }
 0x1cf   :  { %3996 = vmatpush.msk.msra.mxu3 %vm7456_vm0, %v7137_v32  ;;  %2307 = vmatpush.msra.mxu2 %v7457_v38  ;;  %vm7467_vm0 = vnez %v7466_v25  ;;  %v7481_v38 = vld [vmem:[#allocation56_spill] sm:$0xff]  ;;  %v7516_v25 = vld [vmem:[#allocation137_spill] sm:$0xff] }
 0x1d0   :  { %4016 = vmatpush.msk.msra.mxu0 %vm7463_vm11, %v7137_v32  ;;  %2528 = vmatpush.msra.mxu1 %v7464_v40 }
 0x1d1   :  { %3997 = vmatpush.msk.msra.mxu3 %vm7396_vm13, %v7137_v32  ;;  %2311 = vmatpush.msra.mxu2 %v7461_v58  ;;  %vm7471_vm13 = vnez %v7470_v7  ;;  %v7484_v58 = vld [vmem:[#allocation63_spill] sm:$0xff] }
 0x1d2   :  { %4017 = vmatpush.msk.msra.mxu0 %vm7467_vm0, %v7137_v32  ;;  %2534 = vmatpush.msra.mxu1 %v7468_v39 }
 0x1d3   :  { %3998 = vmatpush.msk.msra.mxu3 %vm7400_vm12, %v7137_v32  ;;  %2315 = vmatpush.msra.mxu2 %v7465_v60  ;;  %vm7475_vm12 = vnez %v7474_v26 }
 0x1d4   :  { %4018 = vmatpush.msk.msra.mxu0 %vm7471_vm13, %v7137_v32  ;;  %2540 = vmatpush.msra.mxu1 %v7472_v59 }
 0x1d5   :  { %3999 = vmatpush.msk.msra.mxu3 %vm7403_vm3, %v7137_v32  ;;  %2319 = vmatpush.msra.mxu2 %v7469_v50  ;;  %vm7479_vm3 = vnez %v7478_v3  ;;  %v7527_v3 = vld [vmem:[#allocation78_spill] sm:$0xff] }
 0x1d6   :  { %4019 = vmatpush.msk.msra.mxu0 %vm7475_vm12, %v7137_v32  ;;  %2546 = vmatpush.msra.mxu1 %v7476_v63 }
 0x1d7   :  { %4000 = vmatpush.msk.msra.mxu3 %vm7406_vm8, %v7137_v32  ;;  %2323 = vmatpush.msra.mxu2 %v7473_v45  ;;  %vm7487_vm8 = vnez %v7150_v8 }
 0x1d8   :  { %4020 = vmatpush.msk.msra.mxu0 %vm7479_vm3, %v7137_v32 }
 0x1d9   :  { %4001 = vmatpush.msk.msra.mxu3 %vm7409_vm10, %v7137_v32  ;;  %2327 = vmatpush.msra.mxu2 %v7477_v49  ;;  %vm7528_vm10 = vnez %v7261_v34 }
 0x1db   :  { %4002 = vmatpush.msk.msra.mxu3 %vm7412_vm7, %v7137_v32  ;;  %2331 = vmatpush.msra.mxu2 %v7480_v12  ;;  %vm7523_vm7 = vnez %v7258_v55  ;;  %v7562_v55 = vld [vmem:[#allocation160_spill] sm:$0xff] }
 0x1dd   :  { %4003 = vmatpush.msk.msra.mxu3 %vm7415_vm6, %v7137_v32  ;;  %2335 = vmatpush.msra.mxu2 %v7481_v38  ;;  %vm7489_vm6 = vnez %v7153_v17  ;;  %v7495_v17 = vld [vmem:[#allocation81_spill] sm:$0xff] }
 0x1df   :  { %4004 = vmatpush.msk.msra.mxu3 %vm7419_vm5, %v7137_v32  ;;  %2339 = vmatpush.msra.mxu2 %v7482_v28  ;;  %vm7486_vm5 = vnez %v7141_v24 }
 0x1e1   :  { %2343 = vmatpush.msra.mxu2 %v7483_v22 }
 0x1e3   :  { %2347 = vmatpush.msra.mxu2 %v7484_v58 }
 0x1e5   :  { %2351 = vmatpush.msra.mxu2 %v7485_v57 }
 0x1e9   :  { %v1631_v45 = vpop.f32.mrf.mxu0 }
 0x1ea   :  { %v1657_v38 = vpop.f32.mrf.mxu1 }
 0x1ef   :  { %v1544_v40 = vpop.f32.mrf.mxu3 }
 0x1f2   :  { %v1635_v1 = vpop.f32.mrf.mxu0 }
 0x1f7   :  { %v1510_v60 = vpop.f32.mrf.mxu2  ;;  %v1548_v39 = vpop.f32.mrf.mxu3 }
 0x1f8   :  { %v1545_v59 = vadd.f32 %v1544_v40, %v1510_v60 }
 0x1ff   :  { %v1518_v50 = vpop.f32.mrf.mxu2  ;;  %v1601_v9 = vpop.f32.mrf.mxu3 }
 0x200   :  { %v1549_v28 = vadd.f32 %v1548_v39, %v1518_v50 }
 0x207   :  { %v1572_v63 = vpop.f32.mrf.mxu2  ;;  %v1607_v12 = vpop.f32.mrf.mxu3 }
 0x208   :  { %v1573_v49 = vadd.f32 %v1572_v63, %v1545_v59  ;;  %v1661_v59 = vpop.f32.mrf.mxu1 }
 0x20a   :  { %v1602_v42 = vadd.f32 %v1601_v9, %v1573_v49 }
 0x20c   :  { %v1632_v37 = vadd.f32 %v1631_v45, %v1602_v42  ;;  %v1749_v45 = vpop.f32.mrf.mxu0  ;;  %v7490_v42 = vld [vmem:[#allocation75_spill] sm:$0xff] }
 0x20e   :  { %v1658_v19 = vadd.f32 %v1657_v38, %v1632_v37 }
 0x20f   :  { %v1577_v22 = vpop.f32.mrf.mxu2  ;;  %v1721_v29 = vpop.f32.mrf.mxu3 }
 0x210   :  { %v2018_v58 = vsub.f32 %v6291_v5, %v1658_v19  ;;  %v1578_v57 = vadd.f32 %v1577_v22, %v1549_v28  ;;  %v6301_v19 = vld [vmem:[#allocation2 + $0x18] sm:$0xff]  ;;  %v1778_v22 = vpop.f32.mrf.mxu1 }
 0x212   :  { %v1608_v11 = vadd.f32 %v1607_v12, %v1578_v57  ;;  %v2024_v13 = vmul.f32 %v2018_v58, %v2018_v58  ;;  %v7491_v58 = vld [vmem:[#allocation66_spill] sm:$0xff] }
 0x214   :  { %v1636_v40 = vadd.f32 %v1635_v1, %v1608_v11  ;;  %v6294_v60 = vand.u32 4294901760, %v2024_v13  ;;  %v7488_v1 = vld [vmem:[#allocation70_spill] sm:$0xff] }
 0x216   :  { %v1662_v63 = vadd.f32 %v1661_v59, %v1636_v40  ;;  %2176 = vmatmul.f32.vlgmr.msrb.gmra.mxu3 %v6294_v60  ;;  %v2063_v39 = vsub.f32 %v2024_v13, %v6294_v60  ;;  %v7493_v59 = vld [vmem:[#allocation76_spill] sm:$0xff] }
 0x217   :  { %4021 = vmatpush.msk.msrb.mxu3 %vm7486_vm5, %v7137_v32  ;;  %v1687_v37 = vpop.f32.mrf.mxu2  ;;  %v1725_v38 = vpop.f32.mrf.mxu3 }
 0x218   :  { %v2021_v50 = vsub.f32 %v6301_v19, %v1662_v63  ;;  %2234 = vmatmul.f32.vlgmr.msrb.gmra.mxu0 %v2063_v39  ;;  %v2064_v9 = vand.u32 4294901760, %v2063_v39  ;;  %v1722_v28 = vadd.f32 %v1721_v29, %v1687_v37  ;;  %v7492_v29 = vld [vmem:[#allocation71_spill] sm:$0xff] }
 0x219   :  { %4022 = vmatpush.msk.msrb.mxu3 %vm7487_vm8, %v7137_v32  ;;  %2663 = vmatpush.msrb.mxu0 %v7488_v1  ;;  %v7498_v1 = vld [vmem:[#allocation83_spill] sm:$0xff] }
 0x21a   :  { %2278 = vmatmul.f32.vlgmr.msrb.gmra.mxu1 %v2064_v9  ;;  %v2065_v11 = vsub.f32 %v2063_v39, %v2064_v9  ;;  %v2027_v13 = vmul.f32 %v2021_v50, %v2021_v50  ;;  %v1750_v40 = vadd.f32 %v1749_v45, %v1722_v28  ;;  %v7494_v39 = vld [vmem:[#allocation73_spill] sm:$0xff]  ;;  %v1754_v50 = vpop.f32.mrf.mxu0 }
 0x21b   :  { %4023 = vmatpush.msk.msrb.mxu3 %vm7489_vm6, %v7137_v32  ;;  %4037 = vmatpush.msk.msrb.mxu1 %vm7486_vm5, %v7137_v32  ;;  %v7496_v9 = vld [vmem:[#allocation77_spill] sm:$0xff]  ;;  %vm7555_vm5 = vnez %v7311_v20 }
 0x21c   :  { %v2066_v49 = vand.u32 4294901760, %v2065_v11  ;;  %v6314_v12 = vand.u32 4294901760, %v2027_v13  ;;  %2667 = vmatpush.msrb.mxu0 %v7490_v42  ;;  %v1779_v11 = vadd.f32 %v1778_v22, %v1750_v40  ;;  %v1784_v42 = vpop.f32.mrf.mxu1  ;;  %v7503_v22 = vld [vmem:[#allocation91_spill] sm:$0xff]  ;;  %v7506_v40 = vld [vmem:[#allocation93_spill] sm:$0xff] }
 0x21d   :  { %4024 = vmatpush.msk.msrb.mxu3 %vm7433_vm14, %v7137_v32  ;;  %4038 = vmatpush.msk.msrb.mxu1 %vm7487_vm8, %v7137_v32  ;;  %vm7557_vm8 = vnez %v7317_v31  ;;  %v7578_v20 = vld [vmem:[#allocation161_spill] sm:$0xff]  ;;  %v7579_v31 = vld [vmem:[#allocation164_spill] sm:$0xff] }
 0x21e   :  { %2067 = vmatmul.f32.vlgmr.msrb.gmra.mxu2 %v2066_v49  ;;  %2180 = vmatmul.f32.gmra.mxu3 %v6314_v12  ;;  %v2071_v24 = vsub.f32 %v2027_v13, %v6314_v12 }
 0x21f   :  { %2558 = vmatpush.msrb.mxu2 %v7491_v58  ;;  %4025 = vmatpush.msk.msrb.mxu3 %vm7435_vm9, %v7137_v32  ;;  %v1695_v57 = vpop.f32.mrf.mxu2  ;;  %v1834_v13 = vpop.f32.mrf.mxu3  ;;  %v6370_v58 = vld [vmem:[#allocation2 + $0x8] sm:$0xff] }
 0x220   :  { %4039 = vmatpush.msk.msrb.mxu1 %vm7489_vm6, %v7137_v32  ;;  %2239 = vmatmul.f32.gmra.mxu0 %v2071_v24  ;;  %v2072_v8 = vand.u32 4294901760, %v2071_v24  ;;  %v1726_v35 = vadd.f32 %v1725_v38, %v1695_v57  ;;  %v7501_v38 = vld [vmem:[#allocation86_spill] sm:$0xff]  ;;  %vm7559_vm6 = vnez %v7322_v43  ;;  %v7580_v43 = vld [vmem:[#allocation165_spill] sm:$0xff] }
 0x221   :  { %2561 = vmatpush.msrb.mxu2 %v7492_v29  ;;  %4026 = vmatpush.msk.msrb.mxu3 %vm7437_vm15, %v7137_v32 }
 0x222   :  { %2671 = vmatpush.msrb.mxu0 %v7493_v59  ;;  %4040 = vmatpush.msk.msrb.mxu1 %vm7433_vm14, %v7137_v32  ;;  %v2073_v63 = vsub.f32 %v2071_v24, %v2072_v8  ;;  %vm7497_vm14 = vnez %v7444_v33  ;;  %v1755_v28 = vadd.f32 %v1754_v50, %v1726_v35  ;;  %v7502_v24 = vld [vmem:[#allocation85_spill] sm:$0xff]  ;;  %v7507_v33 = vld [vmem:[#allocation99_spill] sm:$0xff] }
 0x223   :  { %2284 = vmatmul.f32.gmra.mxu1 %v2072_v8  ;;  %2564 = vmatpush.msrb.mxu2 %v7494_v39  ;;  %v7504_v8 = vld [vmem:[#allocation88_spill] sm:$0xff]  ;;  %v7508_v50 = vld [vmem:[#allocation97_spill] sm:$0xff]  ;;  %v7509_v35 = vld [vmem:[#allocation103_spill] sm:$0xff] }
 0x224   :  { %4027 = vmatpush.msk.msrb.mxu3 %vm7441_vm1, %v7137_v32  ;;  %2675 = vmatpush.msrb.mxu0 %v7495_v17  ;;  %v2074_v37 = vand.u32 4294901760, %v2073_v63  ;;  %v1785_v59 = vadd.f32 %v1784_v42, %v1755_v28  ;;  %v1864_v63 = vpop.f32.mrf.mxu0  ;;  %v1898_v18 = vpop.f32.mrf.mxu1  ;;  %v7513_v42 = vld [vmem:[#allocation112_spill] sm:$0xff]  ;;  %v7514_v28 = vld [vmem:[#allocation110_spill] sm:$0xff] }
 0x225   :  { %4041 = vmatpush.msk.msrb.mxu1 %vm7435_vm9, %v7137_v32  ;;  %2567 = vmatpush.msrb.mxu2 %v7496_v9  ;;  %vm7500_vm9 = vnez %v7448_v23 }
 0x226   :  { %4028 = vmatpush.msk.msrb.mxu3 %vm7497_vm14, %v7137_v32  ;;  %2679 = vmatpush.msrb.mxu0 %v7498_v1 }
 0x227   :  { %4042 = vmatpush.msk.msrb.mxu1 %vm7437_vm15, %v7137_v32  ;;  %2075 = vmatmul.f32.gmra.mxu2 %v2074_v37  ;;  %v1808_v45 = vpop.f32.mrf.mxu2  ;;  %v1838_v37 = vpop.f32.mrf.mxu3  ;;  %vm7532_vm15 = vnez %v7266_v10 }
 0x228   :  { %2394 = vmatmul.f32.vlgmr.msra.gmra.mxu3 %v6294_v60  ;;  %2570 = vmatpush.msrb.mxu2 %v7499_v48  ;;  %v1809_v49 = vadd.f32 %v1808_v45, %v1779_v11  ;;  %v6408_v11 = vld [vmem:[#allocation2 + $0x20] sm:$0xff] }
 0x229   :  { %4029 = vmatpush.msk.msrb.mxu3 %vm7500_vm9, %v7137_v32  ;;  %2683 = vmatpush.msrb.mxu0 %v7501_v38  ;;  %v7511_v45 = vld [vmem:[#allocation107_spill] sm:$0xff] }
 0x22a   :  { %4043 = vmatpush.msk.msrb.mxu1 %vm7441_vm1, %v7137_v32  ;;  %v1835_v0 = vadd.f32 %v1834_v13, %v1809_v49  ;;  %2573 = vmatpush.msrb.mxu2 %v7502_v24  ;;  %v7515_v24 = vld [vmem:[#allocation114_spill] sm:$0xff]  ;;  %vm7535_vm1 = vnez %v7269_v36  ;;  %v7568_v36 = vld [vmem:[#allocation11_spill] sm:$0xff] }
 0x22b   :  { %4030 = vmatpush.msk.msrb.mxu3 %vm7454_vm2, %v7137_v32  ;;  %2687 = vmatpush.msrb.mxu0 %v7503_v22 }
 0x22c   :  { %v2019_v57 = vsub.f32 %v6370_v58, %v1835_v0  ;;  %4044 = vmatpush.msk.msrb.mxu1 %vm7497_vm14, %v7137_v32  ;;  %2576 = vmatpush.msrb.mxu2 %v7504_v8  ;;  %v1872_v0 = vpop.f32.mrf.mxu0  ;;  %vm7561_vm14 = vnez %v7328_v56  ;;  %v7583_v56 = vld [vmem:[#allocation168_spill] sm:$0xff] }
 0x22d   :  { %4031 = vmatpush.msk.msrb.mxu3 %vm7459_vm4, %v7137_v32  ;;  %2691 = vmatpush.msrb.mxu0 %v7505_v21  ;;  %v1899_v21 = vadd.f32 %v1898_v18, %v1864_v63 }
 0x22e   :  { %v2025_v29 = vmul.f32 %v2019_v57, %v2019_v57  ;;  %4045 = vmatpush.msk.msrb.mxu1 %vm7500_vm9, %v7137_v32  ;;  %2579 = vmatpush.msrb.mxu2 %v7506_v40  ;;  %v7517_v57 = vld [vmem:[#allocation111_spill] sm:$0xff]  ;;  %v1902_v40 = vpop.f32.mrf.mxu1  ;;  %vm7563_vm9 = vnez %v7562_v55 }
 0x22f   :  { %4032 = vmatpush.msk.msrb.mxu3 %vm7463_vm11, %v7137_v32  ;;  %2695 = vmatpush.msrb.mxu0 %v7507_v33  ;;  %v1812_v39 = vpop.f32.mrf.mxu2  ;;  %v7520_v33 = vld [vmem:[#allocation117_spill] sm:$0xff]  ;;  %v1955_v63 = vpop.f32.mrf.mxu3 }
 0x230   :  { %v6389_v17 = vand.u32 4294901760, %v2025_v29  ;;  %4046 = vmatpush.msk.msrb.mxu1 %vm7454_vm2, %v7137_v32  ;;  %2353 = vmatmul.f32.vlgmr.msra.gmra.mxu2 %v6294_v60  ;;  %v1813_v23 = vadd.f32 %v1812_v39, %v1785_v59  ;;  %v7510_v60 = vld [vmem:[#allocation101_spill] sm:$0xff]  ;;  %v7519_v59 = vld [vmem:[#allocation138_spill] sm:$0xff]  ;;  %vm7538_vm2 = vnez %v7275_v52 }
 0x231   :  { %2398 = vmatmul.f32.gmra.mxu3 %v6314_v12  ;;  %2582 = vmatpush.msrb.mxu2 %v7508_v50  ;;  %v7521_v39 = vld [vmem:[#allocation122_spill] sm:$0xff] }
 0x232   :  { %v6398_v9 = vsub.f32 %v2025_v29, %v6389_v17  ;;  %4033 = vmatpush.msk.msrb.mxu3 %vm7467_vm0, %v7137_v32  ;;  %2699 = vmatpush.msrb.mxu0 %v7509_v35  ;;  %v1839_v1 = vadd.f32 %v1838_v37, %v1813_v23  ;;  %v7518_v29 = vld [vmem:[#allocation118_spill] sm:$0xff]  ;;  %v7522_v23 = vld [vmem:[#allocation143_spill] sm:$0xff] }
 0x233   :  { %4047 = vmatpush.msk.msrb.mxu1 %vm7459_vm4, %v7137_v32  ;;  %2585 = vmatpush.msrb.mxu2 %v7510_v60  ;;  %v7524_v37 = vld [vmem:[#allocation119_spill] sm:$0xff]  ;;  %v7525_v50 = vld [vmem:[#allocation126_spill] sm:$0xff]  ;;  %v7529_v60 = vld [vmem:[#allocation124_spill] sm:$0xff]  ;;  %vm7541_vm4 = vnez %v7283_v44 }
 0x234   :  { %v2022_v13 = vsub.f32 %v6408_v11, %v1839_v1  ;;  %4034 = vmatpush.msk.msrb.mxu3 %vm7471_vm13, %v7137_v32  ;;  %2703 = vmatpush.msrb.mxu0 %v7511_v45  ;;  %v2436_v48 = vand.u32 4294901760, %v6398_v9  ;;  %v7526_v1 = vld [vmem:[#allocation146_spill] sm:$0xff]  ;;  %v1985_v18 = vpop.f32.mrf.mxu0  ;;  %v7571_v44 = vld [vmem:[#allocation140_spill] sm:$0xff] }
 0x235   :  { %4048 = vmatpush.msk.msrb.mxu1 %vm7463_vm11, %v7137_v32  ;;  %2588 = vmatpush.msrb.mxu2 %v7512_v46  ;;  %v7530_v46 = vld [vmem:[#allocation151_spill] sm:$0xff]  ;;  %vm7544_vm11 = vnez %v7287_v54  ;;  %v7569_v52 = vld [vmem:[#allocation134_spill] sm:$0xff] }
 0x236   :  { %v2028_v49 = vmul.f32 %v2022_v13, %v2022_v13  ;;  %2548 = vmatmul.f32.vlgmr.msra.gmra.mxu1 %v6389_v17  ;;  %4035 = vmatpush.msk.msrb.mxu3 %vm7475_vm12, %v7137_v32  ;;  %v2437_v16 = vsub.f32 %v6398_v9, %v2436_v48  ;;  %v7573_v54 = vld [vmem:[#allocation147_spill] sm:$0xff] }
 0x237   :  { %2707 = vmatpush.msrb.mxu0 %v7513_v42  ;;  %4049 = vmatpush.msk.msrb.mxu1 %vm7467_vm0, %v7137_v32  ;;  %v1926_v22 = vpop.f32.mrf.mxu2  ;;  %vm7546_vm0 = vnez %v7292_v41  ;;  %v7574_v41 = vld [vmem:[#allocation148_spill] sm:$0xff] }
 0x238   :  { %v6428_v38 = vand.u32 4294901760, %v2028_v49  ;;  %2591 = vmatpush.msrb.mxu2 %v7514_v28  ;;  %4036 = vmatpush.msk.msrb.mxu3 %vm7479_vm3, %v7137_v32  ;;  %v2438_v7 = vand.u32 4294901760, %v2437_v16  ;;  %v2011_v16 = vpop.f32.mrf.mxu1 }
 0x239   :  { %2711 = vmatpush.msrb.mxu0 %v7515_v24  ;;  %4050 = vmatpush.msk.msrb.mxu1 %vm7471_vm13, %v7137_v32  ;;  %vm7549_vm13 = vnez %v7297_v27  ;;  %v7575_v27 = vld [vmem:[#allocation150_spill] sm:$0xff] }
 0x23a   :  { %2828 = vmatpush.msra.mxu3 %v7516_v25  ;;  %2357 = vmatmul.f32.gmra.mxu2 %v6314_v12  ;;  %v6443_v8 = vsub.f32 %v2028_v49, %v6428_v38  ;;  %v1927_v12 = vadd.f32 %v1926_v22, %v1899_v21  ;;  %v7531_v49 = vld [vmem:[#allocation129_spill] sm:$0xff]  ;;  %v7534_v22 = vld [vmem:[#allocation131_spill] sm:$0xff]  ;;  %v1961_v25 = vpop.f32.mrf.mxu3 }
 0x23b   :  { %2594 = vmatpush.msrb.mxu2 %v7517_v57  ;;  %2650 = vmatmul.f32.vlgmr.msrb.gmra.mxu3 %v2436_v48  ;;  %v1903_v48 = vadd.f32 %v1902_v40, %v1872_v0  ;;  %v7533_v0 = vld [vmem:[#allocation155_spill] sm:$0xff] }
 0x23c   :  { %2715 = vmatpush.msrb.mxu0 %v7518_v29  ;;  %4051 = vmatpush.msk.msrb.mxu1 %vm7475_vm12, %v7137_v32  ;;  %v2444_v26 = vand.u32 4294901760, %v6443_v8  ;;  %v1956_v35 = vadd.f32 %v1955_v63, %v1927_v12  ;;  %v7537_v29 = vld [vmem:[#allocation133_spill] sm:$0xff]  ;;  %v1989_v40 = vpop.f32.mrf.mxu0  ;;  %v7542_v63 = vld [vmem:[#allocation163_spill] sm:$0xff]  ;;  %vm7551_vm12 = vnez %v7302_v53 }
 0x23d   :  { %2834 = vmatpush.msra.mxu3 %v7519_v59  ;;  %2597 = vmatpush.msrb.mxu2 %v7520_v33  ;;  %v7540_v59 = vld [vmem:[#allocation135_spill] sm:$0xff]  ;;  %v6504_v33 = vld [vmem:[#allocation2 + $0x10] sm:$0xff] }
 0x23e   :  { %2719 = vmatpush.msrb.mxu0 %v7521_v39  ;;  %4052 = vmatpush.msk.msrb.mxu1 %vm7479_vm3, %v7137_v32  ;;  %v2445_v45 = vsub.f32 %v6443_v8, %v2444_v26  ;;  %v1986_v42 = vadd.f32 %v1985_v18, %v1956_v35  ;;  %vm7553_vm3 = vnez %v7308_v62  ;;  %v7576_v53 = vld [vmem:[#allocation153_spill] sm:$0xff] }
 0x23f   :  { %2840 = vmatpush.msra.mxu3 %v7522_v23  ;;  %2439 = vmatmul.f32.vlgmr.msra.gmra.mxu0 %v2438_v7  ;;  %v1931_v13 = vpop.f32.mrf.mxu2  ;;  %v7539_v7 = vld [vmem:[#allocation159_spill] sm:$0xff]  ;;  %v7577_v62 = vld [vmem:[#allocation157_spill] sm:$0xff] }
 0x240   :  { %4069 = vmatpush.msk.msra.mxu1 %vm7523_vm7, %v7137_v32  ;;  %2600 = vmatpush.msrb.mxu2 %v7524_v37  ;;  %v1932_v28 = vadd.f32 %v1931_v13, %v1903_v48  ;;  %v2446_v24 = vand.u32 4294901760, %v2445_v45  ;;  %v2012_v57 = vadd.f32 %v2011_v16, %v1986_v42  ;;  %v7543_v23 = vld [vmem:[#allocation139_spill] sm:$0xff]  ;;  %v7545_v37 = vld [vmem:[#allocation141_spill] sm:$0xff]  ;;  %v7554_v45 = vld [vmem:[#allocation152_spill] sm:$0xff] }
 0x241   :  { %2552 = vmatmul.f32.gmra.mxu1 %v6428_v38  ;;  %2723 = vmatpush.msrb.mxu0 %v7525_v50  ;;  %v7565_v42 = vld [vmem:[#allocation130_spill] sm:$0xff]  ;;  %v7570_v16 = vld [vmem:[#allocation136_spill] sm:$0xff] }
 0x242   :  { %2846 = vmatpush.msra.mxu3 %v7526_v1  ;;  %4070 = vmatpush.msk.msra.mxu1 %vm7528_vm10, %v7137_v32  ;;  %v1962_v21 = vadd.f32 %v1961_v25, %v1932_v28  ;;  %v2020_v12 = vsub.f32 %v6504_v33, %v2012_v57  ;;  %v7547_v1 = vld [vmem:[#allocation167_spill] sm:$0xff]  ;;  %v7567_v28 = vld [vmem:[#allocation132_spill] sm:$0xff]  ;;  %v7585_v25 = vld [vmem:[#allocation170_spill] sm:$0xff] }
 0x243   :  { %2930 = vmatpush.msra.mxu0 %v7527_v3  ;;  %2603 = vmatpush.msrb.mxu2 %v7529_v60  ;;  %v6539_v3 = vld [vmem:[#allocation2 + $0x28] sm:$0xff]  ;;  %v7550_v60 = vld [vmem:[#allocation145_spill] sm:$0xff] }
 0x244   :  { %2852 = vmatpush.msra.mxu3 %v7530_v46  ;;  %4071 = vmatpush.msk.msra.mxu1 %vm7532_vm15, %v7137_v32  ;;  %v1990_v39 = vadd.f32 %v1989_v40, %v1962_v21  ;;  %v2026_v50 = vmul.f32 %v2020_v12, %v2020_v12  ;;  %v7558_v46 = vld [vmem:[#allocation158_spill] sm:$0xff] }
 0x245   :  { %4053 = vmatpush.msk.msra.mxu2 %vm7523_vm7, %v7137_v32  ;;  %2933 = vmatpush.msra.mxu0 %v7531_v49  ;;  %v7564_v49 = vld [vmem:[#allocation166_spill] sm:$0xff] }
 0x246   :  { %2606 = vmatmul.f32.vlgmr.msrb.gmra.mxu2 %v6398_v9  ;;  %2656 = vmatmul.f32.gmra.mxu3 %v2444_v26  ;;  %v7536_v9 = vld [vmem:[#allocation156_spill] sm:$0xff]  ;;  %v2015_v26 = vpop.f32.mrf.mxu1 }
 0x247   :  { %4054 = vmatpush.msk.msra.mxu2 %vm7528_vm10, %v7137_v32  ;;  %2858 = vmatpush.msra.mxu3 %v7533_v0  ;;  %v2016_v35 = vadd.f32 %v2015_v26, %v1990_v39  ;;  %v7572_v0 = vld [vmem:[#allocation144_spill] sm:$0xff] }
 0x248   :  { %2936 = vmatpush.msra.mxu0 %v7534_v22  ;;  %4072 = vmatpush.msk.msra.mxu1 %vm7535_vm1, %v7137_v32  ;;  %v7584_v22 = vld [vmem:[#allocation169_spill] sm:$0xff] }
 0x249   :  { %4055 = vmatpush.msk.msra.mxu2 %vm7532_vm15, %v7137_v32  ;;  %2864 = vmatpush.msra.mxu3 %v7536_v9  ;;  %v2023_v18 = vsub.f32 %v6539_v3, %v2016_v35  ;;  %v7586_v9 = vld [vmem:[#allocation172_spill] sm:$0xff] }
 0x24a   :  { %2939 = vmatpush.msra.mxu0 %v7537_v29  ;;  %4073 = vmatpush.msk.msra.mxu1 %vm7538_vm2, %v7137_v32 }
 0x24b   :  { %2447 = vmatmul.f32.gmra.mxu0 %v2446_v24  ;;  %2766 = vmatmul.f32.vlgmr.msrb.gmra.mxu1 %v6389_v17  ;;  %v2029_v13 = vmul.f32 %v2023_v18, %v2023_v18  ;;  %v7581_v24 = vld [vmem:[#allocation171_spill] sm:$0xff] }
 0x24c   :  { %4056 = vmatpush.msk.msra.mxu2 %vm7535_vm1, %v7137_v32  ;;  %2870 = vmatpush.msra.mxu3 %v7539_v7 }
 0x24d   :  { %2942 = vmatpush.msra.mxu0 %v7540_v59  ;;  %4074 = vmatpush.msk.msra.mxu1 %vm7541_vm4, %v7137_v32  ;;  %v6577_v48 = vand.u32 4294901760, %v2029_v13 }
 0x24e   :  { %4057 = vmatpush.msk.msra.mxu2 %vm7538_vm2, %v7137_v32  ;;  %2876 = vmatpush.msra.mxu3 %v7542_v63 }
 0x24f   :  { %2945 = vmatpush.msra.mxu0 %v7543_v23  ;;  %4075 = vmatpush.msk.msra.mxu1 %vm7544_vm11, %v7137_v32 }
 0x250   :  { %2611 = vmatmul.f32.gmra.mxu2 %v6443_v8  ;;  %2882 = vmatpush.msra.mxu3 %v5720_v6  ;;  %v7548_v6 = vld [vmem:[#allocation142_spill] sm:$0xff]  ;;  %v6537_v8 = vand.u32 4294901760, %v2026_v50 }
 0x251   :  { %4058 = vmatpush.msk.msra.mxu2 %vm7541_vm4, %v7137_v32  ;;  %2948 = vmatpush.msra.mxu0 %v7545_v37 }
 0x252   :  { %4076 = vmatpush.msk.msra.mxu1 %vm7546_vm0, %v7137_v32  ;;  %2888 = vmatpush.msra.mxu3 %v7547_v1 }
 0x253   :  { %4059 = vmatpush.msk.msra.mxu2 %vm7544_vm11, %v7137_v32  ;;  %2951 = vmatpush.msra.mxu0 %v7548_v6 }
 0x254   :  { %4077 = vmatpush.msk.msra.mxu1 %vm7549_vm13, %v7137_v32  ;;  %2725 = vmatmul.f32.vlgmr.msrb.gmra.mxu0 %v6389_v17  ;;  %v7552_v17 = vld [vmem:[#allocation149_spill] sm:$0xff] }
 0x255   :  { %2770 = vmatmul.f32.gmra.mxu1 %v6428_v38  ;;  %4060 = vmatpush.msk.msra.mxu2 %vm7546_vm0, %v7137_v32 }
 0x256   :  { %2894 = vmatpush.msra.mxu3 %v5760_v15  ;;  %2954 = vmatpush.msra.mxu0 %v7550_v60  ;;  %v2807_v15 = vsub.f32 %v2026_v50, %v6537_v8 }
 0x257   :  { %4078 = vmatpush.msk.msra.mxu1 %vm7551_vm12, %v7137_v32  ;;  %4061 = vmatpush.msk.msra.mxu2 %vm7549_vm13, %v7137_v32 }
 0x258   :  { %2900 = vmatpush.msra.mxu3 %v5775_v61  ;;  %2957 = vmatpush.msra.mxu0 %v7552_v17  ;;  %v7556_v61 = vld [vmem:[#allocation154_spill] sm:$0xff] }
 0x259   :  { %4079 = vmatpush.msk.msra.mxu1 %vm7553_vm3, %v7137_v32  ;;  %4062 = vmatpush.msk.msra.mxu2 %vm7551_vm12, %v7137_v32 }
 0x25a   :  { %2906 = vmatpush.msra.mxu3 %v5784_v47  ;;  %2960 = vmatpush.msra.mxu0 %v7554_v45  ;;  %v2808_v47 = vand.u32 4294901760, %v2807_v15 }
 0x25b   :  { %4080 = vmatpush.msk.msra.mxu1 %vm7555_vm5, %v7137_v32  ;;  %4063 = vmatpush.msk.msra.mxu2 %vm7553_vm3, %v7137_v32 }
 0x25c   :  { %2912 = vmatpush.msra.mxu3 %v5794_v4  ;;  %2963 = vmatpush.msra.mxu0 %v7556_v61  ;;  %v7560_v4 = vld [vmem:[#allocation162_spill] sm:$0xff] }
 0x25d   :  { %4081 = vmatpush.msk.msra.mxu1 %vm7557_vm8, %v7137_v32  ;;  %2729 = vmatmul.f32.gmra.mxu0 %v6428_v38  ;;  %v2815_v38 = vsub.f32 %v2029_v13, %v6577_v48 }
 0x25e   :  { %4064 = vmatpush.msk.msra.mxu2 %vm7555_vm5, %v7137_v32  ;;  %2918 = vmatpush.msra.mxu3 %v5806_v30  ;;  %v2809_v30 = vsub.f32 %v2807_v15, %v2808_v47 }
 0x25f   :  { %2966 = vmatpush.msra.mxu0 %v7558_v46  ;;  %4082 = vmatpush.msk.msra.mxu1 %vm7559_vm6, %v7137_v32 }
 0x260   :  { %2920 = vmatmul.f32.vlgmr.msra.gmra.mxu3 %v6537_v8  ;;  %4065 = vmatpush.msk.msra.mxu2 %vm7557_vm8, %v7137_v32  ;;  %v2810_v34 = vand.u32 4294901760, %v2809_v30 }
 0x261   :  { %4085 = vmatpush.msk.msrb.mxu3 %vm7523_vm7, %v7137_v32  ;;  %2969 = vmatpush.msra.mxu0 %v7560_v4  ;;  %vm7566_vm7 = vnez %v7353_v2 }
 0x262   :  { %4083 = vmatpush.msk.msra.mxu1 %vm7561_vm14, %v7137_v32  ;;  %4066 = vmatpush.msk.msra.mxu2 %vm7559_vm6, %v7137_v32 }
 0x263   :  { %4086 = vmatpush.msk.msrb.mxu3 %vm7528_vm10, %v7137_v32  ;;  %2972 = vmatpush.msra.mxu0 %v5711_v14  ;;  %v2816_v14 = vand.u32 4294901760, %v2815_v38  ;;  %vm7582_vm10 = vnez %v7581_v24  ;;  %v7595_v24 = vld [vmem:[#allocation174_spill] sm:$0xff] }
 0x264   :  { %4084 = vmatpush.msk.msra.mxu1 %vm7563_vm9, %v7137_v32  ;;  %4067 = vmatpush.msk.msra.mxu2 %vm7561_vm14, %v7137_v32 }
 0x265   :  { %3022 = vmatmul.f32.vlgmr.msra.gmra.mxu1 %v2808_v47  ;;  %4087 = vmatpush.msk.msrb.mxu3 %vm7532_vm15, %v7137_v32  ;;  %v2817_v10 = vsub.f32 %v2815_v38, %v2816_v14 }
 0x266   :  { %2975 = vmatpush.msra.mxu0 %v7564_v49  ;;  %4068 = vmatpush.msk.msra.mxu2 %vm7563_vm9, %v7137_v32 }
 0x267   :  { %2978 = vmatmul.f32.vlgmr.msra.gmra.mxu0 %v2807_v15  ;;  %4088 = vmatpush.msk.msrb.mxu3 %vm7535_vm1, %v7137_v32 }
 0x268   :  { %2811 = vmatmul.f32.vlgmr.msra.gmra.mxu2 %v2810_v34  ;;  %2924 = vmatmul.f32.gmra.mxu3 %v6577_v48 }
 0x269   :  { %3035 = vmatpush.msrb.mxu2 %v7565_v42  ;;  %4089 = vmatpush.msk.msrb.mxu3 %vm7538_vm2, %v7137_v32 }
 0x26a   :  { %4101 = vmatpush.msk.msrb.mxu0 %vm7566_vm7, %v7137_v32  ;;  %3230 = vmatpush.msrb.mxu1 %v5915_v51  ;;  %v2818_v51 = vand.u32 4294901760, %v2817_v10 }
 0x26b   :  { %3039 = vmatpush.msrb.mxu2 %v7567_v28  ;;  %4090 = vmatpush.msk.msrb.mxu3 %vm7541_vm4, %v7137_v32  ;;  %vm7587_vm4 = vcmask 64512  }
 0x26c   :  { %3257 = vmatpush.msra.mxu0 %v7568_v36  ;;  %4102 = vmatpush.msk.msra.mxu1 %vm7566_vm7, %v7137_v32 }
 0x26d   :  { %3028 = vmatmul.f32.gmra.mxu1 %v2816_v14  ;;  %3043 = vmatpush.msrb.mxu2 %v7569_v52 }
 0x26e   :  { %4091 = vmatpush.msk.msrb.mxu3 %vm7544_vm11, %v7137_v32 }
 0x26f   :  { %2983 = vmatmul.f32.gmra.mxu0 %v2815_v38  ;;  %3047 = vmatpush.msrb.mxu2 %v7570_v16 }
 0x270   :  { %4092 = vmatpush.msk.msrb.mxu3 %vm7546_vm0, %v7137_v32  ;;  %2819 = vmatmul.f32.gmra.mxu2 %v2818_v51 }
 0x271   :  { %3051 = vmatpush.msrb.mxu2 %v7571_v44 }
 0x272   :  { %4093 = vmatpush.msk.msrb.mxu3 %vm7549_vm13, %v7137_v32 }
 0x273   :  { %3055 = vmatpush.msrb.mxu2 %v7572_v0 }
 0x274   :  { %4094 = vmatpush.msk.msrb.mxu3 %vm7551_vm12, %v7137_v32 }
 0x275   :  { %3059 = vmatpush.msrb.mxu2 %v7573_v54 }
 0x276   :  { %4095 = vmatpush.msk.msrb.mxu3 %vm7553_vm3, %v7137_v32  ;;  %vm7592_vm3 = vmmov %vm7587_vm4 }
 0x277   :  { %3063 = vmatpush.msrb.mxu2 %v7574_v41 }
 0x278   :  { %4096 = vmatpush.msk.msrb.mxu3 %vm7555_vm5, %v7137_v32 }
 0x279   :  { %3067 = vmatpush.msrb.mxu2 %v7575_v27 }
 0x27a   :  { %4097 = vmatpush.msk.msrb.mxu3 %vm7557_vm8, %v7137_v32 }
 0x27b   :  { %3071 = vmatpush.msrb.mxu2 %v7576_v53 }
 0x27c   :  { %4098 = vmatpush.msk.msrb.mxu3 %vm7559_vm6, %v7137_v32 }
 0x27d   :  { %3075 = vmatpush.msrb.mxu2 %v7577_v62 }
 0x27e   :  { %4099 = vmatpush.msk.msrb.mxu3 %vm7561_vm14, %v7137_v32 }
 0x27f   :  { %3079 = vmatpush.msrb.mxu2 %v7578_v20 }
 0x280   :  { %4100 = vmatpush.msk.msrb.mxu3 %vm7563_vm9, %v7137_v32 }
 0x281   :  { %3138 = vmatmul.f32.vlgmr.msrb.gmra.mxu3 %v6537_v8  ;;  %3083 = vmatpush.msrb.mxu2 %v7579_v31 }
 0x282   :  { %4103 = vmatpush.msk.msra.mxu3 %vm7566_vm7, %v7137_v32 }
 0x283   :  { %3087 = vmatpush.msrb.mxu2 %v7580_v43 }
 0x284   :  { %4105 = vmatpush.msk.msrb.mxu3 %vm7582_vm10, %v7137_v32 }
 0x285   :  { %3091 = vmatpush.msrb.mxu2 %v7583_v56 }
 0x287   :  { %3095 = vmatpush.msrb.mxu2 %v7584_v22 }
 0x288   :  { %3097 = vmatmul.f32.vlgmr.msrb.gmra.mxu2 %v6537_v8 }
 0x289   :  { %3142 = vmatmul.f32.gmra.mxu3 %v6577_v48  ;;  %3317 = vmatpush.msra.mxu2 %v7585_v25 }
 0x28b   :  { %3434 = vmatpush.msrb.mxu2 %v7586_v9 }
 0x290   :  { %3101 = vmatmul.f32.gmra.mxu2 %v6577_v48 }
 0x295   :  { %v2235_v21 = vpop.f32.mrf.mxu0 }
 0x297   :  { %v2279_v40 = vpop.f32.mrf.mxu1 }
 0x299   :  { %v2177_v2 = vpop.f32.mrf.mxu3 }
 0x29d   :  { %v2240_v59 = vpop.f32.mrf.mxu0 }
 0x2a0   :  { %v2285_v63 = vpop.f32.mrf.mxu1 }
 0x2a1   :  { %v2068_v57 = vpop.f32.mrf.mxu2  ;;  %v2181_v29 = vpop.f32.mrf.mxu3 }
 0x2a2   :  { %v2178_v26 = vadd.f32 %v2177_v2, %v2068_v57 }
 0x2a4   :  { %v2236_v35 = vadd.f32 %v2235_v21, %v2178_v26 }
 0x2a6   :  { %v2280_v8 = vadd.f32 %v2279_v40, %v2236_v35 }
 0x2aa   :  { %v2076_v7 = vpop.f32.mrf.mxu2 }
 0x2ab   :  { %v2395_v12 = vpop.f32.mrf.mxu3  ;;  %v2182_v6 = vadd.f32 %v2181_v29, %v2076_v7 }
 0x2ad   :  { %v2241_v13 = vadd.f32 %v2240_v59, %v2182_v6 }
 0x2af   :  { %v2286_v48 = vadd.f32 %v2285_v63, %v2241_v13 }
 0x2b3   :  { %v2354_v39 = vpop.f32.mrf.mxu2  ;;  %v2549_v1 = vpop.f32.mrf.mxu1 }
 0x2b4   :  { %v2399_v37 = vpop.f32.mrf.mxu3  ;;  %v2355_v60 = vadd.f32 %v2354_v39, %v2280_v8 }
 0x2b6   :  { %v2396_v45 = vadd.f32 %v2395_v12, %v2355_v60 }
 0x2bc   :  { %v2440_v23 = vpop.f32.mrf.mxu0 }
 0x2bd   :  { %v2358_v50 = vpop.f32.mrf.mxu2  ;;  %v2441_v47 = vadd.f32 %v2440_v23, %v2396_v45 }
 0x2be   :  { %v2651_v17 = vpop.f32.mrf.mxu3  ;;  %v2553_v61 = vpop.f32.mrf.mxu1  ;;  %v2359_v46 = vadd.f32 %v2358_v50, %v2286_v48 }
 0x2bf   :  { %v2550_v30 = vadd.f32 %v2549_v1, %v2441_v47 }
 0x2c0   :  { %v2400_v49 = vadd.f32 %v2399_v37, %v2359_v46 }
 0x2c8   :  { %v2448_v18 = vpop.f32.mrf.mxu0  ;;  %v2767_v42 = vpop.f32.mrf.mxu1 }
 0x2c9   :  { %v2607_v15 = vpop.f32.mrf.mxu2  ;;  %v2657_v38 = vpop.f32.mrf.mxu3  ;;  %v2449_v14 = vadd.f32 %v2448_v18, %v2400_v49 }
 0x2ca   :  { %v2608_v34 = vadd.f32 %v2607_v15, %v2550_v30 }
 0x2cb   :  { %v2554_v36 = vadd.f32 %v2553_v61, %v2449_v14 }
 0x2cc   :  { %v2652_v10 = vadd.f32 %v2651_v17, %v2608_v34  ;;  %v7588_v34 = vld [vmem:[#allocation177_spill] sm:$0xff] }
 0x2d1   :  { %v2726_v4 = vpop.f32.mrf.mxu0 }
 0x2d2   :  { %v2727_v28 = vadd.f32 %v2726_v4, %v2652_v10  ;;  %v2771_v27 = vpop.f32.mrf.mxu1  ;;  %v7589_v10 = vld [vmem:[#allocation173_spill] sm:$0xff] }
 0x2d3   :  { %v2612_v55 = vpop.f32.mrf.mxu2  ;;  %vm7590_vm13 = vnez %v7589_v10 }
 0x2d4   :  { %v2613_v44 = vadd.f32 %v2612_v55, %v2554_v36  ;;  %v2768_v0 = vadd.f32 %v2767_v42, %v2727_v28  ;;  %v7591_v28 = vld [vmem:[#allocation178_spill] sm:$0xff] }
 0x2d6   :  { %v2658_v54 = vadd.f32 %v2657_v38, %v2613_v44 }
 0x2da   :  { %v2730_v52 = vpop.f32.mrf.mxu0 }
 0x2db   :  { %v2731_v53 = vadd.f32 %v2730_v52, %v2658_v54 }
 0x2dd   :  { %v2772_v56 = vadd.f32 %v2771_v27, %v2731_v53  ;;  %v7593_v53 = vld [vmem:[#allocation176_spill] sm:$0xff] }
 0x2e2   :  { %v3023_v9 = vpop.f32.mrf.mxu1 }
 0x2e3   :  { %v2921_v51 = vpop.f32.mrf.mxu3 }
 0x2e4   :  { %v2979_v62 = vpop.f32.mrf.mxu0 }
 0x2ea   :  { %v3029_v63 = vpop.f32.mrf.mxu1 }
 0x2eb   :  { %v2812_v16 = vpop.f32.mrf.mxu2  ;;  %v2925_v31 = vpop.f32.mrf.mxu3 }
 0x2ec   :  { %v2813_v41 = vadd.f32 %v2812_v16, %v2768_v0  ;;  %v2984_v40 = vpop.f32.mrf.mxu0 }
 0x2ee   :  { %v2922_v20 = vadd.f32 %v2921_v51, %v2813_v41 }
 0x2f0   :  { %v2980_v25 = vadd.f32 %v2979_v62, %v2922_v20  ;;  %v7594_v62 = vld [vmem:[#allocation175_spill] sm:$0xff] }
 0x2f2   :  { %v3024_v57 = vadd.f32 %v3023_v9, %v2980_v25 }
 0x2f3   :  { %v2820_v43 = vpop.f32.mrf.mxu2 }
 0x2f4   :  { %v2821_v22 = vadd.f32 %v2820_v43, %v2772_v56 }
 0x2f6   :  { %v2926_v2 = vadd.f32 %v2925_v31, %v2821_v22 }
 0x2f8   :  { %v2985_v12 = vadd.f32 %v2984_v40, %v2926_v2 }
 0x2fa   :  { %v3030_v26 = vadd.f32 %v3029_v63, %v2985_v12 }
 0x304   :  { %v3139_v21 = vpop.f32.mrf.mxu3 }
 0x30b   :  { %v3098_v29 = vpop.f32.mrf.mxu2 }
 0x30c   :  { %v3099_v7 = vadd.f32 %v3098_v29, %v3024_v57  ;;  %v3143_v35 = vpop.f32.mrf.mxu3 }
 0x30e   :  { %v3140_v59 = vadd.f32 %v3139_v21, %v3099_v7 }
 0x310   :  { %v3146_v39 = vmul.f32 0.020833334, %v3140_v59  ;;  %v6713_v59 = vld [vmem:[#allocation5] sm:$0x7] }
 0x312   :  { %v3148_v23 = vadd.f32 1e-05, %v3146_v39 }
 0x313   :  { %v3102_v37 = vpop.f32.mrf.mxu2 }
 0x314   :  { %4117 = vrsqrt.f32 %v3148_v23  ;;  %v3103_v50 = vadd.f32 %v3102_v37, %v3030_v26  ;;  %vm3156_vm1 = vweird.f32 %v3148_v23 }
 0x316   :  { %v3144_v1 = vadd.f32 %v3143_v35, %v3103_v50 }
 0x318   :  { %v3147_v6 = vmul.f32 0.020833334, %v3144_v1 }
 0x31a   :  { %v4118_v8 = vpop.eup %4117  ;;  %v3149_v18 = vadd.f32 1e-05, %v3147_v6 }
 0x31b   :  { %v3151_v60 = vmul.f32 %v4118_v8, %v3148_v23  ;;  %vm3157_vm15 = vweird.f32 %v4118_v8  ;;  %v3715_v23 = vperm.slane %v6713_v59, 0 }
 0x31c   :  { %4119 = vrsqrt.f32 %v3149_v18  ;;  %vm3158_vm2 = vmor %vm3156_vm1, %vm3157_vm15  ;;  %vm3166_vm0 = vweird.f32 %v3149_v18 }
 0x31d   :  { %v3152_v17 = vmul.f32 %v4118_v8, %v3151_v60 }
 0x31f   :  { %v3153_v15 = vmul.f32 0.5, %v3152_v17 }
 0x321   :  { %v3154_v13 = vsub.f32 1.5, %v3153_v15 }
 0x322   :  { %v4120_v45 = vpop.eup %4119 }
 0x323   :  { %v3155_v61 = vmul.f32 %v4118_v8, %v3154_v13  ;;  %v3161_v47 = vmul.f32 %v4120_v45, %v3149_v18  ;;  %vm3167_vm11 = vweird.f32 %v4120_v45 }
 0x324   :  { %vm3168_vm12 = vmor %vm3166_vm0, %vm3167_vm11 }
 0x325   :  { %v3159_v48 = vsel %vm3158_vm2, %v4118_v8, %v3155_v61  ;;  %v3162_v46 = vmul.f32 %v4120_v45, %v3161_v47 }
 0x326   :  { %v3171_v4 = vsel %vm7587_vm4, %v3159_v48, 0 }
 0x327   :  { %v3193_v30 = vand.u32 4294901760, %v3171_v4  ;;  %v3163_v38 = vmul.f32 0.5, %v3162_v46 }
 0x329   :  { %v3194_v55 = vsub.f32 %v3171_v4, %v3193_v30  ;;  %v3164_v49 = vsub.f32 1.5, %v3163_v38  ;;  %3232 = vmatmul.f32.vlgmr.msrb.gmra.mxu1 %v3193_v30  ;;  %3319 = vmatmul.f32.vlgmr.msra.gmra.mxu2 %v3193_v30 }
 0x32a   :  { %3345 = vmatmul.f32.vlgmr.msra.gmra.mxu3 %v3193_v30  ;;  %3407 = vmatpush.msrb.mxu1 %v7588_v34 }
 0x32b   :  { %v3165_v14 = vmul.f32 %v4120_v45, %v3164_v49  ;;  %v3195_v42 = vand.u32 4294901760, %v3194_v55  ;;  %4107 = vmatpush.msk.msra.mxu2 %vm7590_vm13, %v7137_v32  ;;  %3584 = vmatpush.msra.mxu3 %v7591_v28 }
 0x32d   :  { %v3169_v36 = vsel %vm3168_vm12, %v4120_v45, %v3165_v14  ;;  %v3196_v52 = vsub.f32 %v3194_v55, %v3195_v42 }
 0x32e   :  { %v3174_v51 = vsel %vm7592_vm3, %v3169_v36, 0  ;;  %v3716_v36 = vperm.slane %v6713_v59, 1 }
 0x32f   :  { %v3201_v16 = vand.u32 4294901760, %v3174_v51  ;;  %v3197_v44 = vand.u32 4294901760, %v3196_v52 }
 0x331   :  { %v3202_v0 = vsub.f32 %v3174_v51, %v3201_v16  ;;  %3198 = vmatmul.f32.vlgmr.msrb.gmra.mxu0 %v3197_v44  ;;  %3236 = vmatmul.f32.gmra.mxu1 %v3201_v16 }
 0x332   :  { %3323 = vmatmul.f32.gmra.mxu2 %v3201_v16  ;;  %3349 = vmatmul.f32.gmra.mxu3 %v3201_v16 }
 0x333   :  { %v3203_v54 = vand.u32 4294901760, %v3202_v0  ;;  %4104 = vmatpush.msk.msrb.mxu0 %vm7582_vm10, %v7137_v32 }
 0x335   :  { %v3204_v41 = vsub.f32 %v3202_v0, %v3203_v54 }
 0x337   :  { %v3205_v27 = vand.u32 4294901760, %v3204_v41 }
 0x339   :  { %3206 = vmatmul.f32.gmra.mxu0 %v3205_v27  ;;  %3289 = vmatmul.f32.vlgmr.msra.gmra.mxu1 %v3195_v42 }
 0x33a   :  { %3437 = vmatmul.f32.vlgmr.msrb.gmra.mxu2 %v3194_v55  ;;  %3466 = vmatmul.f32.vlgmr.msrb.gmra.mxu3 %v3195_v42 }
 0x33b   :  { %4106 = vmatpush.msk.msra.mxu1 %vm7582_vm10, %v7137_v32  ;;  %3671 = vmatpush.msrb.mxu2 %v7593_v53 }
 0x33c   :  { %4109 = vmatpush.msk.msrb.mxu3 %vm7590_vm13, %v7137_v32 }
 0x341   :  { %3260 = vmatmul.f32.vlgmr.msra.gmra.mxu0 %v3194_v55  ;;  %3295 = vmatmul.f32.gmra.mxu1 %v3203_v54 }
 0x342   :  { %3442 = vmatmul.f32.gmra.mxu2 %v3202_v0  ;;  %3472 = vmatmul.f32.gmra.mxu3 %v3203_v54 }
 0x343   :  { %3494 = vmatpush.msra.mxu0 %v7594_v62 }
 0x349   :  { %3265 = vmatmul.f32.gmra.mxu0 %v3202_v0  ;;  %3409 = vmatmul.f32.vlgmr.msrb.gmra.mxu1 %v3193_v30 }
 0x34a   :  { %3552 = vmatmul.f32.vlgmr.msra.gmra.mxu2 %v3197_v44  ;;  %3586 = vmatmul.f32.vlgmr.msra.gmra.mxu3 %v3193_v30 }
 0x34b   :  { %4108 = vmatpush.msk.msrb.mxu1 %vm7590_vm13, %v7137_v32 }
 0x351   :  { %3375 = vmatmul.f32.vlgmr.msrb.gmra.mxu0 %v3197_v44  ;;  %3413 = vmatmul.f32.gmra.mxu1 %v3201_v16 }
 0x352   :  { %3560 = vmatmul.f32.gmra.mxu2 %v3205_v27  ;;  %3590 = vmatmul.f32.gmra.mxu3 %v3201_v16 }
 0x353   :  { %3611 = vmatpush.msrb.mxu0 %v7595_v24 }
 0x359   :  { %3383 = vmatmul.f32.gmra.mxu0 %v3205_v27  ;;  %3522 = vmatmul.f32.vlgmr.msra.gmra.mxu1 %v3193_v30 }
 0x35a   :  { %3673 = vmatmul.f32.vlgmr.msrb.gmra.mxu2 %v3193_v30  ;;  %3699 = vmatmul.f32.vlgmr.msrb.gmra.mxu3 %v3193_v30 }
 0x361   :  { %3496 = vmatmul.f32.vlgmr.msra.gmra.mxu0 %v3193_v30  ;;  %3526 = vmatmul.f32.gmra.mxu1 %v3201_v16 }
 0x362   :  { %3677 = vmatmul.f32.gmra.mxu2 %v3201_v16  ;;  %3703 = vmatmul.f32.gmra.mxu3 %v3201_v16 }
 0x369   :  { %3500 = vmatmul.f32.gmra.mxu0 %v3201_v16  ;;  %3643 = vmatmul.f32.vlgmr.msrb.gmra.mxu1 %v3195_v42 }
 0x371   :  { %3614 = vmatmul.f32.vlgmr.msrb.gmra.mxu0 %v3194_v55  ;;  %3649 = vmatmul.f32.gmra.mxu1 %v3203_v54 }
 0x379   :  { %3619 = vmatmul.f32.gmra.mxu0 %v3202_v0 }
 0x3a6   :  { %v3233_v32 = vpop.f32.mrf.mxu1 }
 0x3ac   :  { %v3320_v43 = vpop.f32.mrf.mxu2 }
 0x3ad   :  { %v3346_v56 = vpop.f32.mrf.mxu3 }
 0x3ae   :  { %v3199_v20 = vpop.f32.mrf.mxu0  ;;  %v3237_v31 = vpop.f32.mrf.mxu1 }
 0x3af   :  { %v3234_v9 = vadd.f32 %v3233_v32, %v3199_v20 }
 0x3b5   :  { %v3324_v2 = vpop.f32.mrf.mxu2  ;;  %v3350_v7 = vpop.f32.mrf.mxu3 }
 0x3b6   :  { %v3207_v22 = vpop.f32.mrf.mxu0  ;;  %v3290_v25 = vpop.f32.mrf.mxu1 }
 0x3b7   :  { %v3238_v39 = vadd.f32 %v3237_v31, %v3207_v22 }
 0x3bd   :  { %v3438_v1 = vpop.f32.mrf.mxu2  ;;  %v3467_v18 = vpop.f32.mrf.mxu3 }
 0x3be   :  { %v3261_v57 = vpop.f32.mrf.mxu0  ;;  %v3296_v21 = vpop.f32.mrf.mxu1 }
 0x3bf   :  { %v3262_v29 = vadd.f32 %v3261_v57, %v3234_v9 }
 0x3c1   :  { %v3291_v40 = vadd.f32 %v3290_v25, %v3262_v29 }
 0x3c3   :  { %v3321_v12 = vadd.f32 %v3320_v43, %v3291_v40 }
 0x3c5   :  { %v3347_v63 = vadd.f32 %v3346_v56, %v3321_v12  ;;  %v3443_v47 = vpop.f32.mrf.mxu2  ;;  %v3473_v48 = vpop.f32.mrf.mxu3 }
 0x3c6   :  { %v3266_v26 = vpop.f32.mrf.mxu0  ;;  %v3410_v37 = vpop.f32.mrf.mxu1 }
 0x3c7   :  { %v3708_v50 = vmul.f32 %v6291_v5, %v3347_v63  ;;  %v3267_v35 = vadd.f32 %v3266_v26, %v3238_v39 }
 0x3c9   :  { %v3721_v6 = vmul.f32 %v3715_v23, %v3708_v50  ;;  %v3297_v8 = vadd.f32 %v3296_v21, %v3267_v35 }
 0x3cb   :  { %3727 = vst [vmem:[#allocation7] sm:$0xff] %v3721_v6  ;;  %v3325_v60 = vadd.f32 %v3324_v2, %v3297_v8  ;;  %v3717_v2 = vperm.slane %v6713_v59, 2 }
 0x3cd   :  { %v3351_v17 = vadd.f32 %v3350_v7, %v3325_v60  ;;  %v3553_v38 = vpop.f32.mrf.mxu2  ;;  %v3587_v34 = vpop.f32.mrf.mxu3 }
 0x3ce   :  { %v3376_v15 = vpop.f32.mrf.mxu0  ;;  %v3414_v45 = vpop.f32.mrf.mxu1  ;;  %v3588_v62 = vadd.f32 %v3587_v34, %v3553_v38 }
 0x3cf   :  { %v3711_v13 = vmul.f32 %v6301_v19, %v3351_v17  ;;  %v3411_v46 = vadd.f32 %v3410_v37, %v3376_v15 }
 0x3d1   :  { %v3724_v61 = vmul.f32 %v3715_v23, %v3711_v13  ;;  %v3439_v30 = vadd.f32 %v3438_v1, %v3411_v46 }
 0x3d3   :  { %3730 = vst [vmem:[#allocation7 + $0x18] sm:$0xff] %v3724_v61  ;;  %v3468_v49 = vadd.f32 %v3467_v18, %v3439_v30 }
 0x3d5   :  { %v3561_v44 = vpop.f32.mrf.mxu2  ;;  %v3591_v41 = vpop.f32.mrf.mxu3 }
 0x3d6   :  { %v3384_v4 = vpop.f32.mrf.mxu0  ;;  %v3523_v5 = vpop.f32.mrf.mxu1  ;;  %v3592_v25 = vadd.f32 %v3591_v41, %v3561_v44 }
 0x3d7   :  { %v3415_v55 = vadd.f32 %v3414_v45, %v3384_v4 }
 0x3d9   :  { %v3444_v10 = vadd.f32 %v3443_v47, %v3415_v55 }
 0x3db   :  { %v3474_v16 = vadd.f32 %v3473_v48, %v3444_v10 }
 0x3dd   :  { %v3674_v43 = vpop.f32.mrf.mxu2 }
 0x3de   :  { %v3497_v14 = vpop.f32.mrf.mxu0  ;;  %v3527_v52 = vpop.f32.mrf.mxu1 }
 0x3df   :  { %v3498_v42 = vadd.f32 %v3497_v14, %v3468_v49 }
 0x3e1   :  { %v3524_v28 = vadd.f32 %v3523_v5, %v3498_v42 }
 0x3e3   :  { %v3709_v19 = vmul.f32 %v6370_v58, %v3524_v28  ;;  %v3700_v58 = vpop.f32.mrf.mxu3 }
 0x3e5   :  { %v3722_v51 = vmul.f32 %v3716_v36, %v3709_v19  ;;  %v3678_v12 = vpop.f32.mrf.mxu2 }
 0x3e6   :  { %v3501_v0 = vpop.f32.mrf.mxu0  ;;  %v3644_v32 = vpop.f32.mrf.mxu1 }
 0x3e7   :  { %3728 = vst [vmem:[#allocation7 + $0x8] sm:$0xff] %v3722_v51  ;;  %v3502_v54 = vadd.f32 %v3501_v0, %v3474_v16 }
 0x3e9   :  { %v3528_v27 = vadd.f32 %v3527_v52, %v3502_v54 }
 0x3eb   :  { %v3712_v53 = vmul.f32 %v6408_v11, %v3528_v27  ;;  %v3704_v63 = vpop.f32.mrf.mxu3 }
 0x3ed   :  { %v3725_v24 = vmul.f32 %v3716_v36, %v3712_v53 }
 0x3ee   :  { %v3615_v20 = vpop.f32.mrf.mxu0  ;;  %v3650_v7 = vpop.f32.mrf.mxu1 }
 0x3ef   :  { %3731 = vst [vmem:[#allocation7 + $0x20] sm:$0xff] %v3725_v24  ;;  %v3616_v31 = vadd.f32 %v3615_v20, %v3588_v62 }
 0x3f1   :  { %v3645_v56 = vadd.f32 %v3644_v32, %v3616_v31 }
 0x3f3   :  { %v3675_v22 = vadd.f32 %v3674_v43, %v3645_v56 }
 0x3f5   :  { %v3701_v9 = vadd.f32 %v3700_v58, %v3675_v22 }
 0x3f6   :  { %v3620_v57 = vpop.f32.mrf.mxu0 }
 0x3f7   :  { %v3710_v21 = vmul.f32 %v6504_v33, %v3701_v9  ;;  %v3621_v29 = vadd.f32 %v3620_v57, %v3592_v25 }
 0x3f9   :  { %v3723_v11 = vmul.f32 %v3717_v2, %v3710_v21  ;;  %v3651_v40 = vadd.f32 %v3650_v7, %v3621_v29 }
 0x3fb   :  { %3729 = vst [vmem:[#allocation7 + $0x10] sm:$0xff] %v3723_v11  ;;  %v3679_v39 = vadd.f32 %v3678_v12, %v3651_v40 }
 0x3fd   :  { %v3705_v23 = vadd.f32 %v3704_v63, %v3679_v39 }
 0x3ff   :  { %v3713_v59 = vmul.f32 %v6539_v3, %v3705_v23 }
 0x401   :  { %v3726_v26 = vmul.f32 %v3717_v2, %v3713_v59 }
 0x403   :  { %3732 = vst [vmem:[#allocation7 + $0x28] sm:$0xff] %v3726_v26 }
 0x404   :  { %3745 = dma.vmem_to_hbm [thread:$0]  %s3738_s1, 768, %s3740_s23, [#allocation4], %s4206_s17, %s4206_s17, %s4207_s18  }
 0x405   :  { %4203 = dma.done.wait [#allocation4], 768  }
 0x406   :  { %4204 = vsyncadd [#allocation4], 4294966528 }
 0x407   :  { %3750 = vsyncpa [#allocation3], 1 }
 0x408   :  { %3751 = vsyncpa [#allocation6], 1 }
 0x409   :  { %3752 = vsyncpa [#allocation4], 1 }

</bundles_post_ra>
